<compile_context>
chip_gen: v5e
topology: v5e:2x2
jax: 0.10.0
libtpu: 0.0.40
codegen_flags: <defaults>
</compile_context>

<pallas_src>
import jax
import jax.numpy as jnp
from jax.experimental import pallas as pl
from jax.experimental.pallas import tpu as pltpu

H_IN = 2
H_HID = 1000     # hidden width in the PyTorch module
H_PAD = 1024     # padded to a multiple of 128 lanes (zero padding is numerically exact)


def _round_up(x, m):
    return (x + m - 1) // m * m


def _disc_kernel(xz_ref, w1_ref, b1_ref, w2_ref, b2_ref, w3_ref, b3_ref, o_ref):
    # xz_ref: (TB, 2) f32
    # w1_ref: (2, 1024) f32, b1_ref: (1, 1024) f32
    # w2_ref: (1024, 1024) bf16, b2_ref: (1, 1024) f32
    # w3_ref: (1, 1024) f32 (row form of the [1024, 1] weight), b3_ref: (1, 1) f32

    # lin1 (K=2): two VPU broadcast FMAs — a K=2 MXU pass would waste the array.
    x0 = xz_ref[:, 0:1]                                     # (TB, 1)
    x1 = xz_ref[:, 1:2]                                     # (TB, 1)
    h = x0 * w1_ref[0:1, :] + x1 * w1_ref[1:2, :] + b1_ref[...]
    # F.dropout(p=0.2, training=False) -> identity (eval-mode forward), then ReLU.
    h = jnp.maximum(h, 0.0)

    # lin2: the dominant matmul — bf16 MXU pass, f32 accumulation.
    h = jnp.dot(h.astype(jnp.bfloat16), w2_ref[...],
                preferred_element_type=jnp.float32) + b2_ref[...]
    h = jnp.maximum(h, 0.0)

    # lin3 (N=1): elementwise multiply + lane reduction (XLU) instead of a
    # single-column MXU pass.
    logit = jnp.sum(h * w3_ref[...], axis=-1, keepdims=True) + b3_ref[...]
    o_ref[...] = jax.nn.sigmoid(logit)


def discriminator_forward(x, z, kernel_params, *, block_b=256):
    """x:[B,1], z:[B,1] -> sigmoid(lin3(relu(lin2(relu(lin1(cat(x,z))))))) -> [B,1]."""
    w1, b1, w2, b2, w3, b3 = kernel_params          # padded / kernel-layout params
    xz = jnp.concatenate([x, z], axis=-1).astype(jnp.float32)      # (B, 2)
    B = xz.shape[0]

    tb = min(block_b, _round_up(B, 8))              # batch tile (multiple of 8 sublanes)
    b_pad = _round_up(B, tb)
    if b_pad != B:
        xz = jnp.pad(xz, [(0, b_pad - B), (0, 0)])  # zero rows; sliced off below

    const = lambda shape: pl.BlockSpec(shape, lambda i: (0,) * len(shape))

    out = pl.pallas_call(
        _disc_kernel,
        out_shape=jax.ShapeDtypeStruct((b_pad, 1), jnp.float32),
        grid=(b_pad // tb,),
        in_specs=[
            pl.BlockSpec((tb, H_IN), lambda i: (i, 0)),   # batch tile streams over grid
            const(w1.shape), const(b1.shape),             # weights stay VMEM-resident
            const(w2.shape), const(b2.shape),
            const(w3.shape), const(b3.shape),
        ],
        out_specs=pl.BlockSpec((tb, 1), lambda i: (i, 0)),
        compiler_params=pltpu.CompilerParams(
            dimension_semantics=("parallel",),            # shard batch across TCs (v7x)
        ),
    )(xz, w1, b1, w2, b2, w3, b3)
    return out[:B]


def init_params(key):
    """Unpadded f32 params mimicking nn.Linear's U(-1/sqrt(fan_in), 1/sqrt(fan_in)).
    Weights stored as [in, out] (transpose of PyTorch's [out, in]); biases as [1, out]."""
    ks = jax.random.split(key, 6)

    def lin(kw, kb, fan_in, fan_out):
        bound = 1.0 / jnp.sqrt(fan_in)
        w = jax.random.uniform(kw, (fan_in, fan_out), jnp.float32, -bound, bound)
        b = jax.random.uniform(kb, (1, fan_out), jnp.float32, -bound, bound)
        return w, b

    w1, b1 = lin(ks[0], ks[1], H_IN, H_HID)
    w2, b2 = lin(ks[2], ks[3], H_HID, H_HID)
    w3, b3 = lin(ks[4], ks[5], H_HID, 1)
    return (w1, b1, w2, b2, w3, b3)


def prepare_params(params):
    """Pad hidden dim 1000->1024 with zeros (numerically exact) and cast the big
    weight w2 to bf16 to halve HBM traffic. w3 is laid out as a (1, 1024) row."""
    w1, b1, w2, b2, w3, b3 = params
    pc = H_PAD - H_HID
    w1p = jnp.pad(w1, [(0, 0), (0, pc)])                               # (2, 1024) f32
    b1p = jnp.pad(b1, [(0, 0), (0, pc)])                               # (1, 1024) f32
    w2p = jnp.pad(w2, [(0, pc), (0, pc)]).astype(jnp.bfloat16)         # (1024, 1024) bf16
    b2p = jnp.pad(b2, [(0, 0), (0, pc)])                               # (1, 1024) f32
    w3p = jnp.pad(w3.reshape(1, H_HID), [(0, 0), (0, pc)])             # (1, 1024) f32
    return (w1p, b1p, w2p, b2p, w3p, b3)


if __name__ == "__main__":
    key = jax.random.PRNGKey(0)
    k_params, k_x, k_z = jax.random.split(key, 3)

    params = init_params(k_params)
    kernel_params = prepare_params(params)

    B = 8
    x = jax.random.normal(k_x, (B, 1), jnp.float32)
    z = jax.random.normal(k_z, (B, 1), jnp.float32)

    out = jax.block_until_ready(discriminator_forward(x, z, kernel_params))

    # sanity: shape and sigmoid range
    assert out.shape == (B, 1)
    assert bool(jnp.all((out >= 0.0) & (out <= 1.0)))

    # Reference 1: plain JAX, unpadded, same bf16 lin2 matmul (tight tolerance).
    w1, b1, w2, b2, w3, b3 = params
    xz = jnp.concatenate([x, z], axis=-1)
    h = jnp.maximum(xz @ w1 + b1, 0.0)
    h = jnp.dot(h.astype(jnp.bfloat16), w2.astype(jnp.bfloat16),
                preferred_element_type=jnp.float32) + b2
    h = jnp.maximum(h, 0.0)
    ref_bf16 = jax.nn.sigmoid(h @ w3 + b3)
    assert bool(jnp.allclose(out, ref_bf16, atol=5e-3, rtol=5e-3))

    # Reference 2: pure f32 forward (loose tolerance — bf16 w2 is the only approx).
    h32 = jnp.maximum(xz @ w1 + b1, 0.0)
    h32 = jnp.maximum(h32 @ w2 + b2, 0.0)
    ref_f32 = jax.nn.sigmoid(h32 @ w3 + b3)
    assert bool(jnp.allclose(out, ref_f32, atol=3e-2, rtol=3e-2))

    print("KERNEL_OK")
</pallas_src>

<mosaic_0001>
module attributes {stable_mosaic.version = 11 : i64} {
  func.func @_disc_kernel(%arg0: i32, %arg1: memref<8x2xf32, #tpu.memory_space<vmem>>, %arg2: memref<2x1024xf32, #tpu.memory_space<vmem>>, %arg3: memref<1x1024xf32, #tpu.memory_space<vmem>>, %arg4: memref<1024x1024xbf16, #tpu.memory_space<vmem>>, %arg5: memref<1x1024xf32, #tpu.memory_space<vmem>>, %arg6: memref<1x1024xf32, #tpu.memory_space<vmem>>, %arg7: memref<1x1xf32, #tpu.memory_space<vmem>>, %arg8: memref<8x1xf32, #tpu.memory_space<vmem>>) attributes {dimension_semantics = [#tpu.dimension_semantics<parallel>], iteration_bounds = array<i64: 1>, scalar_prefetch = 0 : i64, scratch_operands = 0 : i64, tpu.core_type = #tpu.core_type<tc>, window_params = [{transform_indices = @transform_0, window_bounds = array<i64: 8, 2>}, {pipeline_mode = #tpu.pipeline_mode<synchronous>, transform_indices = @transform_1, window_bounds = array<i64: 2, 1024>}, {pipeline_mode = #tpu.pipeline_mode<synchronous>, transform_indices = @transform_2, window_bounds = array<i64: 1, 1024>}, {pipeline_mode = #tpu.pipeline_mode<synchronous>, transform_indices = @transform_3, window_bounds = array<i64: 1024, 1024>}, {pipeline_mode = #tpu.pipeline_mode<synchronous>, transform_indices = @transform_4, window_bounds = array<i64: 1, 1024>}, {pipeline_mode = #tpu.pipeline_mode<synchronous>, transform_indices = @transform_5, window_bounds = array<i64: 1, 1024>}, {pipeline_mode = #tpu.pipeline_mode<synchronous>, transform_indices = @transform_6, window_bounds = array<i64: 1, 1>}, {transform_indices = @transform_7, window_bounds = array<i64: 8, 1>}]} {
    %c0 = arith.constant 0 : index
    %c0_0 = arith.constant 0 : index
    %0 = vector.load %arg1[%c0, %c0_0] : memref<8x2xf32, #tpu.memory_space<vmem>>, vector<8x1xf32>
    %c0_1 = arith.constant 0 : index
    %c1 = arith.constant 1 : index
    %1 = vector.load %arg1[%c0_1, %c1] : memref<8x2xf32, #tpu.memory_space<vmem>>, vector<8x1xf32>
    %c0_2 = arith.constant 0 : index
    %c0_3 = arith.constant 0 : index
    %2 = vector.load %arg2[%c0_2, %c0_3] : memref<2x1024xf32, #tpu.memory_space<vmem>>, vector<1x1024xf32>
    %3 = vector.broadcast %0 : vector<8x1xf32> to vector<8x1024xf32>
    %4 = vector.broadcast %2 : vector<1x1024xf32> to vector<8x1024xf32>
    %5 = arith.mulf %3, %4 : vector<8x1024xf32>
    %c1_4 = arith.constant 1 : index
    %c0_5 = arith.constant 0 : index
    %6 = vector.load %arg2[%c1_4, %c0_5] : memref<2x1024xf32, #tpu.memory_space<vmem>>, vector<1x1024xf32>
    %7 = vector.broadcast %1 : vector<8x1xf32> to vector<8x1024xf32>
    %8 = vector.broadcast %6 : vector<1x1024xf32> to vector<8x1024xf32>
    %9 = arith.mulf %7, %8 : vector<8x1024xf32>
    %10 = arith.addf %5, %9 : vector<8x1024xf32>
    %c0_6 = arith.constant 0 : index
    %c0_7 = arith.constant 0 : index
    %11 = vector.load %arg3[%c0_6, %c0_7] : memref<1x1024xf32, #tpu.memory_space<vmem>>, vector<1x1024xf32>
    %12 = vector.broadcast %11 : vector<1x1024xf32> to vector<8x1024xf32>
    %13 = arith.addf %10, %12 : vector<8x1024xf32>
    %cst = arith.constant 0.000000e+00 : f32
    %14 = vector.broadcast %cst : f32 to vector<8x1024xf32>
    %15 = arith.maximumf %13, %14 : vector<8x1024xf32>
    %16 = arith.truncf %15 : vector<8x1024xf32> to vector<8x1024xbf16>
    %c0_8 = arith.constant 0 : index
    %c0_9 = arith.constant 0 : index
    %17 = vector.load %arg4[%c0_8, %c0_9] : memref<1024x1024xbf16, #tpu.memory_space<vmem>>, vector<1024x1024xbf16>
    %cst_10 = arith.constant dense<0.000000e+00> : vector<8x1024xf32>
    %18 = tpu.matmul %16, %17, %cst_10 {dimension_numbers = #tpu.dot_dimension_numbers<[1], [0], [0], [1], [0, 0, 1, 1], [], []>} : vector<8x1024xbf16>, vector<1024x1024xbf16>, vector<8x1024xf32> -> vector<8x1024xf32>
    %c0_11 = arith.constant 0 : index
    %c0_12 = arith.constant 0 : index
    %19 = vector.load %arg5[%c0_11, %c0_12] : memref<1x1024xf32, #tpu.memory_space<vmem>>, vector<1x1024xf32>
    %20 = vector.broadcast %19 : vector<1x1024xf32> to vector<8x1024xf32>
    %21 = arith.addf %18, %20 : vector<8x1024xf32>
    %cst_13 = arith.constant 0.000000e+00 : f32
    %22 = vector.broadcast %cst_13 : f32 to vector<8x1024xf32>
    %23 = arith.maximumf %21, %22 : vector<8x1024xf32>
    %c0_14 = arith.constant 0 : index
    %c0_15 = arith.constant 0 : index
    %24 = vector.load %arg6[%c0_14, %c0_15] : memref<1x1024xf32, #tpu.memory_space<vmem>>, vector<1x1024xf32>
    %25 = vector.broadcast %24 : vector<1x1024xf32> to vector<8x1024xf32>
    %26 = arith.mulf %23, %25 : vector<8x1024xf32>
    %cst_16 = arith.constant dense<0.000000e+00> : vector<8xf32>
    %27 = vector.multi_reduction <add>, %26, %cst_16 [1] : vector<8x1024xf32> to vector<8xf32>
    %28 = vector.shape_cast %27 : vector<8xf32> to vector<8x1xf32>
    %c0_17 = arith.constant 0 : index
    %c0_18 = arith.constant 0 : index
    %29 = vector.load %arg7[%c0_17, %c0_18] : memref<1x1xf32, #tpu.memory_space<vmem>>, vector<1x1xf32>
    %30 = vector.broadcast %29 : vector<1x1xf32> to vector<8x1xf32>
    %31 = arith.addf %28, %30 : vector<8x1xf32>
    %32 = arith.negf %31 : vector<8x1xf32>
    %33 = math.exp %32 : vector<8x1xf32>
    %cst_19 = arith.constant 1.000000e+00 : f32
    %34 = vector.broadcast %cst_19 : f32 to vector<8x1xf32>
    %35 = arith.addf %34, %33 : vector<8x1xf32>
    %36 = arith.divf %34, %35 : vector<8x1xf32>
    %c0_20 = arith.constant 0 : index
    %c0_21 = arith.constant 0 : index
    %37 = vector.load %arg8[%c0_20, %c0_21] : memref<8x1xf32, #tpu.memory_space<vmem>>, vector<8x1xf32>
    tpu.vector_store %arg8[%c0_20, %c0_21], %36 {strides = array<i32>} : memref<8x1xf32, #tpu.memory_space<vmem>>, vector<8x1xf32>,
    return
  }
  func.func @transform_0(%arg0: i32) -> (i32, i32) {
    %c0_i32 = arith.constant 0 : i32
    %c0_i32_0 = arith.constant 0 : i32
    return %arg0, %c0_i32 : i32, i32
  }
  func.func @transform_1(%arg0: i32) -> (i32, i32) {
    %c0_i32 = arith.constant 0 : i32
    %c0_i32_0 = arith.constant 0 : i32
    %c0_i32_1 = arith.constant 0 : i32
    return %c0_i32, %c0_i32_0 : i32, i32
  }
  func.func @transform_2(%arg0: i32) -> (i32, i32) {
    %c0_i32 = arith.constant 0 : i32
    %c0_i32_0 = arith.constant 0 : i32
    %c0_i32_1 = arith.constant 0 : i32
    return %c0_i32, %c0_i32_0 : i32, i32
  }
  func.func @transform_3(%arg0: i32) -> (i32, i32) {
    %c0_i32 = arith.constant 0 : i32
    %c0_i32_0 = arith.constant 0 : i32
    %c0_i32_1 = arith.constant 0 : i32
    return %c0_i32, %c0_i32_0 : i32, i32
  }
  func.func @transform_4(%arg0: i32) -> (i32, i32) {
    %c0_i32 = arith.constant 0 : i32
    %c0_i32_0 = arith.constant 0 : i32
    %c0_i32_1 = arith.constant 0 : i32
    return %c0_i32, %c0_i32_0 : i32, i32
  }
  func.func @transform_5(%arg0: i32) -> (i32, i32) {
    %c0_i32 = arith.constant 0 : i32
    %c0_i32_0 = arith.constant 0 : i32
    %c0_i32_1 = arith.constant 0 : i32
    return %c0_i32, %c0_i32_0 : i32, i32
  }
  func.func @transform_6(%arg0: i32) -> (i32, i32) {
    %c0_i32 = arith.constant 0 : i32
    %c0_i32_0 = arith.constant 0 : i32
    %c0_i32_1 = arith.constant 0 : i32
    return %c0_i32, %c0_i32_0 : i32, i32
  }
  func.func @transform_7(%arg0: i32) -> (i32, i32) {
    %c0_i32 = arith.constant 0 : i32
    %c0_i32_0 = arith.constant 0 : i32
    return %arg0, %c0_i32 : i32, i32
  }
}

</mosaic_0001>

<bundles_post_ra>
// kernel: tpu_custom_call.1
= control target key start
LH: loop header
LB: loop body
LE: loop exit
PB: predicated region body
PF: predicated region fallthrough
CT: control target
= control target key end

     0   :  { %s7162_s0 = inlined_call_operand.vmem [shape: f32[8,2], index: 0, kind: input, shape index: {}]   ;;  %s7163_s1 = inlined_call_operand.hbm [shape: f32[2,1024], index: 1, kind: input, shape index: {}]   ;;  %s7164_s2 = inlined_call_operand.hbm [shape: f32[1,1024], index: 2, kind: input, shape index: {}]   ;;  %s7165_s3 = inlined_call_operand.hbm [shape: bf16[1024,1024], index: 3, kind: input, shape index: {}]   ;;  %s7166_s4 = inlined_call_operand.hbm [shape: f32[1,1024], index: 4, kind: input, shape index: {}]   ;;  %s7167_s5 = inlined_call_operand.hbm [shape: f32[1,1024], index: 5, kind: input, shape index: {}]   ;;  %s7168_s6 = inlined_call_operand.<no memory space> [shape: f32[1,1], index: 6, kind: input, shape index: {}]   ;;  %s7169_s7 = inlined_call_operand.vmem [shape: f32[8,1], index: 7, kind: output, shape index: {}]  }
   0x1   :  { %v12_v0 = vstv %s7168_s6 }
   0x2   :  { %13 = vst [vmem:[#allocation2] sm:$0x1] %v12_v0 }
   0x3   :  { %14 = vsyncpa [#allocation4], 0 }
   0x4   :  { %15 = vsyncpa [#allocation6], 0  ;;  %s35_s28 = sshll.u32 %s7164_s2, 4  ;;  %s36_s28 = int_to_ptr.hbm [resolvable:$true] %s35_s28 }
   0x5   :  { %16 = vsyncpa [#allocation9], 0  ;;  %s6916_s29 = smov [#allocation5]   ;;  %s59_s10 = sshll.u32 %s7166_s4, 4  ;;  %s60_s10 = int_to_ptr.hbm [resolvable:$true] %s59_s10 }
   0x6   :  { %s37_s30 = sshll.u32 %s6916_s29, 4  ;;  %s6917_s11 = smov [#allocation8]   ;;  %s38_s30 = int_to_ptr.vmem [resolvable:$true] %s37_s30 }
   0x7   :  { %40 = dma.hbm_to_vmem [thread:$0]  %s36_s28, 128, %s38_s30, [#allocation6]  }
   0x8   :  { %s61_s6 = sshll.u32 %s6917_s11, 4  ;;  %s24_s14 = sshll.u32 %s7163_s1, 4  ;;  %s62_s6 = int_to_ptr.vmem [resolvable:$true] %s61_s6  ;;  %s25_s14 = int_to_ptr.hbm [resolvable:$true] %s24_s14 }
   0x9   :  { %64 = dma.hbm_to_vmem [thread:$0]  %s60_s10, 128, %s62_s6, [#allocation9]  }
   0xa   :  { %s45_s16 = sshll.u32 %s7165_s3, 4  ;;  %s6918_s17 = smov [#allocation3]   ;;  %s46_s16 = int_to_ptr.hbm [resolvable:$true] %s45_s16 }
   0xb   :  { %s26_s18 = sshll.u32 %s6918_s17, 4  ;;  %s6919_s4 = smov [#allocation7]   ;;  %s27_s18 = int_to_ptr.vmem [resolvable:$true] %s26_s18 }
   0xc   :  { %29 = dma.hbm_to_vmem [thread:$0]  %s25_s14, 256, %s27_s18, [#allocation4]  }
   0xd   :  { %s47_s19 = sshll.u32 %s6919_s4, 4  ;;  %s6920_s20 = smov 512   ;;  %s48_s19 = int_to_ptr.vmem [resolvable:$true] %s47_s19 }
   0xe   :  { %s6921_s21 = smov 32   ;;  %s70_s23 = sshll.u32 %s7167_s5, 4  ;;  %s71_s23 = int_to_ptr.hbm [resolvable:$true] %s70_s23 }
   0xf   :  { %53 = dma.hbm_to_vmem [thread:$0]  %s46_s16, 65536, %s48_s19, [#allocation6], %s6920_s20, %s6920_s20, %s6921_s21  }
  0x10   :  { %s6922_s24 = smov [#allocation10]  }
  0x11   :  { %s72_s25 = sshll.u32 %s6922_s24, 4  ;;  %s73_s25 = int_to_ptr.vmem [resolvable:$true] %s72_s25 }
  0x12   :  { %75 = dma.hbm_to_vmem [thread:$0]  %s71_s23, 128, %s73_s25, [#allocation9]  }
  0x13   :  { %6910 = dma.done.wait [#allocation4], 256  }
  0x14   :  { %6911 = vsyncadd [#allocation4], 4294967040 }
  0x15   :  { %6912 = dma.done.wait [#allocation6], 65664  }
  0x16   :  { %6913 = vsyncadd [#allocation6], 4294901632 }
  0x17   :  { %6914 = dma.done.wait [#allocation9], 256  }
  0x18   :  { %6915 = vsyncadd [#allocation9], 4294967040  ;;  %v6923_v1 = vmov 0   ;;  %v98_v2 = vld [vmem:[%s7162_s0] sm:$0xff]  ;;  %v4435_v3 = vld [vmem:[#allocation7 + $0x1c0] sm:$0xf] }
  0x19   :  { %6779 = vset.pattern.permute.xlu0 %v6923_v1  ;;  %v6318_v4 = vld [vmem:[#allocation7 + $0x1dc] sm:$0xf0]  ;;  %v6924_v39 = vmov 1   ;;  %vm4200_vm2 = vcmask 7168  }
  0x1a   :  { %102 = vperm.xlu0 %6779, %v98_v2   ;;  %v4436_v5 = vor.u32 %v6318_v4, %v4435_v3  ;;  %v4691_v6 = vld [vmem:[#allocation7 + $0x3c0] sm:$0xf] }
  0x1b   :  { %v6382_v7 = vld [vmem:[#allocation7 + $0x3dc] sm:$0xf0] }
  0x1c   :  { %v4947_v8 = vld [vmem:[#allocation7 + $0x5c0] sm:$0xf]  ;;  %v4692_v9 = vor.u32 %v6382_v7, %v4691_v6  ;;  %3301 = vmatpush.bf16.msra.mxu0 %v4436_v5 }
  0x1d   :  { %v6446_v10 = vld [vmem:[#allocation7 + $0x5dc] sm:$0xf0] }
  0x1e   :  { %v5203_v11 = vld [vmem:[#allocation7 + $0x7c0] sm:$0xf]  ;;  %v4948_v13 = vor.u32 %v6446_v10, %v4947_v8  ;;  %3314 = vmatpush.bf16.msra.mxu1 %v4692_v9 }
  0x1f   :  { %v6510_v12 = vld [vmem:[#allocation7 + $0x7dc] sm:$0xf0] }
  0x20   :  { %v5204_v14 = vor.u32 %v6510_v12, %v5203_v11  ;;  %v4403_v15 = vld [vmem:[#allocation7 + $0x180] sm:$0xf]  ;;  %3327 = vmatpush.bf16.msra.mxu2 %v4948_v13 }
  0x21   :  { %v6310_v16 = vld [vmem:[#allocation7 + $0x19c] sm:$0xf0] }
  0x22   :  { %v4659_v17 = vld [vmem:[#allocation7 + $0x380] sm:$0xf]  ;;  %v4404_v18 = vor.u32 %v6310_v16, %v4403_v15  ;;  %3340 = vmatpush.bf16.msra.mxu3 %v5204_v14  ;;  %6780 = vset.pattern.permute.xlu0 %v6924_v39 }
  0x23   :  { %v6374_v19 = vld [vmem:[#allocation7 + $0x39c] sm:$0xf0]  ;;  %133 = vperm.xlu0 %6780, %v98_v2  }
  0x24   :  { %v4915_v20 = vld [vmem:[#allocation7 + $0x580] sm:$0xf]  ;;  %v4660_v22 = vor.u32 %v6374_v19, %v4659_v17  ;;  %3302 = vmatpush.bf16.msra.mxu0 %v4404_v18 }
  0x25   :  { %v6438_v21 = vld [vmem:[#allocation7 + $0x59c] sm:$0xf0] }
  0x26   :  { %v4916_v23 = vor.u32 %v6438_v21, %v4915_v20  ;;  %v5171_v24 = vld [vmem:[#allocation7 + $0x780] sm:$0xf]  ;;  %3315 = vmatpush.bf16.msra.mxu1 %v4660_v22 }
  0x27   :  { %v6502_v25 = vld [vmem:[#allocation7 + $0x79c] sm:$0xf0] }
  0x28   :  { %v4371_v26 = vld [vmem:[#allocation7 + $0x140] sm:$0xf]  ;;  %v5172_v27 = vor.u32 %v6502_v25, %v5171_v24  ;;  %3328 = vmatpush.bf16.msra.mxu2 %v4916_v23 }
  0x29   :  { %v6302_v28 = vld [vmem:[#allocation7 + $0x15c] sm:$0xf0] }
  0x2a   :  { %v4627_v29 = vld [vmem:[#allocation7 + $0x340] sm:$0xf]  ;;  %v4372_v31 = vor.u32 %v6302_v28, %v4371_v26  ;;  %3341 = vmatpush.bf16.msra.mxu3 %v5172_v27 }
  0x2b   :  { %v6366_v30 = vld [vmem:[#allocation7 + $0x35c] sm:$0xf0] }
  0x2c   :  { %v4883_v32 = vld [vmem:[#allocation7 + $0x540] sm:$0xf]  ;;  %v4628_v35 = vor.u32 %v6366_v30, %v4627_v29  ;;  %3303 = vmatpush.bf16.msra.mxu0 %v4372_v31 }
  0x2d   :  { %v6430_v33 = vld [vmem:[#allocation7 + $0x55c] sm:$0xf0] }
  0x2e   :  { %v5139_v34 = vld [vmem:[#allocation7 + $0x740] sm:$0xf]  ;;  %v4884_v40 = vor.u32 %v6430_v33, %v4883_v32  ;;  %3316 = vmatpush.bf16.msra.mxu1 %v4628_v35 }
  0x2f   :  { %v6494_v36 = vld [vmem:[#allocation7 + $0x75c] sm:$0xf0] }
  0x30   :  { %v4339_v37 = vld [vmem:[#allocation7 + $0x100] sm:$0xf]  ;;  %v5140_v43 = vor.u32 %v6494_v36, %v5139_v34  ;;  %3329 = vmatpush.bf16.msra.mxu2 %v4884_v40 }
  0x31   :  { %v6294_v38 = vld [vmem:[#allocation7 + $0x11c] sm:$0xf0] }
  0x32   :  { %v4595_v41 = vld [vmem:[#allocation7 + $0x300] sm:$0xf]  ;;  %v4340_v46 = vor.u32 %v6294_v38, %v4339_v37  ;;  %3342 = vmatpush.bf16.msra.mxu3 %v5140_v43 }
  0x33   :  { %v6358_v42 = vld [vmem:[#allocation7 + $0x31c] sm:$0xf0] }
  0x34   :  { %v4851_v44 = vld [vmem:[#allocation7 + $0x500] sm:$0xf]  ;;  %v4596_v49 = vor.u32 %v6358_v42, %v4595_v41  ;;  %3304 = vmatpush.bf16.msra.mxu0 %v4340_v46 }
  0x35   :  { %v6422_v45 = vld [vmem:[#allocation7 + $0x51c] sm:$0xf0] }
  0x36   :  { %v5107_v47 = vld [vmem:[#allocation7 + $0x700] sm:$0xf]  ;;  %v4852_v52 = vor.u32 %v6422_v45, %v4851_v44  ;;  %3317 = vmatpush.bf16.msra.mxu1 %v4596_v49 }
  0x37   :  { %v6486_v48 = vld [vmem:[#allocation7 + $0x71c] sm:$0xf0] }
  0x38   :  { %v4307_v50 = vld [vmem:[#allocation7 + $0xc0] sm:$0xf]  ;;  %v5108_v55 = vor.u32 %v6486_v48, %v5107_v47  ;;  %3330 = vmatpush.bf16.msra.mxu2 %v4852_v52 }
  0x39   :  { %v6286_v51 = vld [vmem:[#allocation7 + $0xdc] sm:$0xf0] }
  0x3a   :  { %v4563_v53 = vld [vmem:[#allocation7 + $0x2c0] sm:$0xf]  ;;  %v4308_v58 = vor.u32 %v6286_v51, %v4307_v50  ;;  %3343 = vmatpush.bf16.msra.mxu3 %v5108_v55 }
  0x3b   :  { %v6350_v54 = vld [vmem:[#allocation7 + $0x2dc] sm:$0xf0] }
  0x3c   :  { %v4819_v56 = vld [vmem:[#allocation7 + $0x4c0] sm:$0xf]  ;;  %v4564_v61 = vor.u32 %v6350_v54, %v4563_v53  ;;  %3305 = vmatpush.bf16.msra.mxu0 %v4308_v58 }
  0x3d   :  { %v6414_v57 = vld [vmem:[#allocation7 + $0x4dc] sm:$0xf0] }
  0x3e   :  { %v5075_v59 = vld [vmem:[#allocation7 + $0x6c0] sm:$0xf]  ;;  %v4820_v0 = vor.u32 %v6414_v57, %v4819_v56  ;;  %3318 = vmatpush.bf16.msra.mxu1 %v4564_v61 }
  0x3f   :  { %v6478_v60 = vld [vmem:[#allocation7 + $0x6dc] sm:$0xf0] }
  0x40   :  { %v4275_v62 = vld [vmem:[#allocation7 + $0x80] sm:$0xf]  ;;  %v5076_v3 = vor.u32 %v6478_v60, %v5075_v59  ;;  %3331 = vmatpush.bf16.msra.mxu2 %v4820_v0 }
  0x41   :  { %v6278_v63 = vld [vmem:[#allocation7 + $0x9c] sm:$0xf0] }
  0x42   :  { %v4531_v1 = vld [vmem:[#allocation7 + $0x280] sm:$0xf]  ;;  %v4276_v6 = vor.u32 %v6278_v63, %v4275_v62  ;;  %3344 = vmatpush.bf16.msra.mxu3 %v5076_v3 }
  0x43   :  { %v6342_v2 = vld [vmem:[#allocation7 + $0x29c] sm:$0xf0] }
  0x44   :  { %v4787_v4 = vld [vmem:[#allocation7 + $0x480] sm:$0xf]  ;;  %v4532_v9 = vor.u32 %v6342_v2, %v4531_v1  ;;  %3306 = vmatpush.bf16.msra.mxu0 %v4276_v6 }
  0x45   :  { %v6406_v5 = vld [vmem:[#allocation7 + $0x49c] sm:$0xf0] }
  0x46   :  { %v5043_v7 = vld [vmem:[#allocation7 + $0x680] sm:$0xf]  ;;  %v4788_v12 = vor.u32 %v6406_v5, %v4787_v4  ;;  %3319 = vmatpush.bf16.msra.mxu1 %v4532_v9 }
  0x47   :  { %v6470_v8 = vld [vmem:[#allocation7 + $0x69c] sm:$0xf0] }
  0x48   :  { %v4243_v10 = vld [vmem:[#allocation7 + $0x40] sm:$0xf]  ;;  %v5044_v15 = vor.u32 %v6470_v8, %v5043_v7  ;;  %3332 = vmatpush.bf16.msra.mxu2 %v4788_v12 }
  0x49   :  { %v6270_v11 = vld [vmem:[#allocation7 + $0x5c] sm:$0xf0] }
  0x4a   :  { %v4499_v13 = vld [vmem:[#allocation7 + $0x240] sm:$0xf]  ;;  %v4244_v19 = vor.u32 %v6270_v11, %v4243_v10  ;;  %3345 = vmatpush.bf16.msra.mxu3 %v5044_v15 }
  0x4b   :  { %v6334_v14 = vld [vmem:[#allocation7 + $0x25c] sm:$0xf0] }
  0x4c   :  { %v4755_v16 = vld [vmem:[#allocation7 + $0x440] sm:$0xf]  ;;  %v4500_v23 = vor.u32 %v6334_v14, %v4499_v13  ;;  %3307 = vmatpush.bf16.msra.mxu0 %v4244_v19 }
  0x4d   :  { %v6398_v17 = vld [vmem:[#allocation7 + $0x45c] sm:$0xf0] }
  0x4e   :  { %v5011_v18 = vld [vmem:[#allocation7 + $0x640] sm:$0xf]  ;;  %v4756_v27 = vor.u32 %v6398_v17, %v4755_v16  ;;  %3320 = vmatpush.bf16.msra.mxu1 %v4500_v23 }
  0x4f   :  { %v6462_v20 = vld [vmem:[#allocation7 + $0x65c] sm:$0xf0] }
  0x50   :  { %v4211_v21 = vld [vmem:[#allocation7] sm:$0xf]  ;;  %v5012_v31 = vor.u32 %v6462_v20, %v5011_v18  ;;  %3333 = vmatpush.bf16.msra.mxu2 %v4756_v27 }
  0x51   :  { %v6262_v22 = vld [vmem:[#allocation7 + $0x1c] sm:$0xf0] }
  0x52   :  { %v4467_v24 = vld [vmem:[#allocation7 + $0x200] sm:$0xf]  ;;  %v4212_v35 = vor.u32 %v6262_v22, %v4211_v21  ;;  %3346 = vmatpush.bf16.msra.mxu3 %v5012_v31 }
  0x53   :  { %v6326_v25 = vld [vmem:[#allocation7 + $0x21c] sm:$0xf0] }
  0x54   :  { %v4723_v26 = vld [vmem:[#allocation7 + $0x400] sm:$0xf]  ;;  %v4468_v39 = vor.u32 %v6326_v25, %v4467_v24  ;;  %3308 = vmatpush.bf16.msra.mxu0 %v4212_v35 }
  0x55   :  { %v6390_v28 = vld [vmem:[#allocation7 + $0x41c] sm:$0xf0] }
  0x56   :  { %v5459_v29 = vld [vmem:[#allocation7 + $0x9c0] sm:$0xf]  ;;  %v4724_v43 = vor.u32 %v6390_v28, %v4723_v26  ;;  %3321 = vmatpush.bf16.msra.mxu1 %v4468_v39 }
  0x57   :  { %v6574_v30 = vld [vmem:[#allocation7 + $0x9dc] sm:$0xf0] }
  0x58   :  { %v4979_v32 = vld [vmem:[#allocation7 + $0x600] sm:$0xf]  ;;  %v5460_v40 = vor.u32 %v6574_v30, %v5459_v29  ;;  %3334 = vmatpush.bf16.msra.mxu2 %v4724_v43 }
  0x59   :  { %v5715_v33 = vld [vmem:[#allocation7 + $0xbc0] sm:$0xf] }
  0x5a   :  { %v6638_v34 = vld [vmem:[#allocation7 + $0xbdc] sm:$0xf0]  ;;  %3353 = vmatpush.bf16.msrb.mxu0 %v5460_v40 }
  0x5b   :  { %v6454_v36 = vld [vmem:[#allocation7 + $0x61c] sm:$0xf0]  ;;  %v5716_v44 = vor.u32 %v6638_v34, %v5715_v33 }
  0x5c   :  { %v5971_v37 = vld [vmem:[#allocation7 + $0xdc0] sm:$0xf]  ;;  %v4980_v47 = vor.u32 %v6454_v36, %v4979_v32 }
  0x5d   :  { %v6702_v38 = vld [vmem:[#allocation7 + $0xddc] sm:$0xf0]  ;;  %3366 = vmatpush.bf16.msrb.mxu1 %v5716_v44 }
  0x5e   :  { %v6227_v41 = vld [vmem:[#allocation7 + $0xfc0] sm:$0xf]  ;;  %v5972_v48 = vor.u32 %v6702_v38, %v5971_v37  ;;  %3347 = vmatpush.bf16.msra.mxu3 %v4980_v47 }
  0x5f   :  { %v6766_v42 = vld [vmem:[#allocation7 + $0xfdc] sm:$0xf0] }
  0x60   :  { %v5427_v45 = vld [vmem:[#allocation7 + $0x980] sm:$0xf]  ;;  %v6228_v51 = vor.u32 %v6766_v42, %v6227_v41  ;;  %3379 = vmatpush.bf16.msrb.mxu2 %v5972_v48 }
  0x61   :  { %v6566_v46 = vld [vmem:[#allocation7 + $0x99c] sm:$0xf0] }
  0x62   :  { %v5683_v49 = vld [vmem:[#allocation7 + $0xb80] sm:$0xf]  ;;  %v5428_v54 = vor.u32 %v6566_v46, %v5427_v45  ;;  %3392 = vmatpush.bf16.msrb.mxu3 %v6228_v51 }
  0x63   :  { %v6630_v50 = vld [vmem:[#allocation7 + $0xb9c] sm:$0xf0] }
  0x64   :  { %v5939_v52 = vld [vmem:[#allocation7 + $0xd80] sm:$0xf]  ;;  %v5684_v57 = vor.u32 %v6630_v50, %v5683_v49  ;;  %3354 = vmatpush.bf16.msrb.mxu0 %v5428_v54 }
  0x65   :  { %v6694_v53 = vld [vmem:[#allocation7 + $0xd9c] sm:$0xf0] }
  0x66   :  { %v6195_v55 = vld [vmem:[#allocation7 + $0xf80] sm:$0xf]  ;;  %v5940_v60 = vor.u32 %v6694_v53, %v5939_v52  ;;  %3367 = vmatpush.bf16.msrb.mxu1 %v5684_v57 }
  0x67   :  { %v6758_v56 = vld [vmem:[#allocation7 + $0xf9c] sm:$0xf0] }
  0x68   :  { %v5395_v58 = vld [vmem:[#allocation7 + $0x940] sm:$0xf]  ;;  %v6196_v63 = vor.u32 %v6758_v56, %v6195_v55  ;;  %3380 = vmatpush.bf16.msrb.mxu2 %v5940_v60 }
  0x69   :  { %v6558_v59 = vld [vmem:[#allocation7 + $0x95c] sm:$0xf0] }
  0x6a   :  { %v5651_v61 = vld [vmem:[#allocation7 + $0xb40] sm:$0xf]  ;;  %v5396_v2 = vor.u32 %v6558_v59, %v5395_v58  ;;  %3393 = vmatpush.bf16.msrb.mxu3 %v6196_v63 }
  0x6b   :  { %v6622_v62 = vld [vmem:[#allocation7 + $0xb5c] sm:$0xf0] }
  0x6c   :  { %v5907_v0 = vld [vmem:[#allocation7 + $0xd40] sm:$0xf]  ;;  %v5652_v5 = vor.u32 %v6622_v62, %v5651_v61  ;;  %3355 = vmatpush.bf16.msrb.mxu0 %v5396_v2 }
  0x6d   :  { %v6686_v1 = vld [vmem:[#allocation7 + $0xd5c] sm:$0xf0] }
  0x6e   :  { %v6163_v3 = vld [vmem:[#allocation7 + $0xf40] sm:$0xf]  ;;  %v5908_v6 = vor.u32 %v6686_v1, %v5907_v0  ;;  %3368 = vmatpush.bf16.msrb.mxu1 %v5652_v5  ;;  %v6988_v5 = vld [vmem:[#allocation3] ss:$2 sm:$0xff] }
  0x6f   :  { %v6750_v4 = vld [vmem:[#allocation7 + $0xf5c] sm:$0xf0] }
  0x70   :  { %v6164_v7 = vor.u32 %v6750_v4, %v6163_v3  ;;  %3381 = vmatpush.bf16.msrb.mxu2 %v5908_v6  ;;  %v5363_v8 = vld [vmem:[#allocation7 + $0x900] sm:$0xf]  ;;  %v6990_v6 = vld [vmem:[#allocation3 + $0x1] ss:$2 sm:$0xff] }
  0x71   :  { %v6550_v9 = vld [vmem:[#allocation7 + $0x91c] sm:$0xf0] }
  0x72   :  { %3394 = vmatpush.bf16.msrb.mxu3 %v6164_v7  ;;  %v5619_v10 = vld [vmem:[#allocation7 + $0xb00] sm:$0xf]  ;;  %v5364_v11 = vor.u32 %v6550_v9, %v5363_v8  ;;  %v106_v7 = vperm.slane %v6988_v5, 0  ;;  %v107_v8 = vperm.slane %v6988_v5, 1  ;;  %v108_v9 = vperm.slane %v6988_v5, 2 }
  0x73   :  { %v6614_v12 = vld [vmem:[#allocation7 + $0xb1c] sm:$0xf0] }
  0x74   :  { %v5875_v13 = vld [vmem:[#allocation7 + $0xd00] sm:$0xf]  ;;  %v5620_v15 = vor.u32 %v6614_v12, %v5619_v10  ;;  %3356 = vmatpush.bf16.msrb.mxu0 %v5364_v11  ;;  %v109_v10 = vperm.slane %v6988_v5, 3  ;;  %v6996_v11 = vld [vmem:[#allocation5] sm:$0xff]  ;;  %v137_v12 = vperm.slane %v6990_v6, 0 }
  0x75   :  { %v6678_v14 = vld [vmem:[#allocation7 + $0xd1c] sm:$0xf0] }
  0x76   :  { %v5876_v16 = vor.u32 %v6678_v14, %v5875_v13  ;;  %v6131_v17 = vld [vmem:[#allocation7 + $0xf00] sm:$0xf]  ;;  %3369 = vmatpush.bf16.msrb.mxu1 %v5620_v15  ;;  %v138_v13 = vperm.slane %v6990_v6, 1  ;;  %v139_v14 = vperm.slane %v6990_v6, 2  ;;  %v140_v15 = vperm.slane %v6990_v6, 3 }
  0x77   :  { %v6742_v18 = vld [vmem:[#allocation7 + $0xf1c] sm:$0xf0] }
  0x78   :  { %v5331_v19 = vld [vmem:[#allocation7 + $0x8c0] sm:$0xf]  ;;  %v6132_v20 = vor.u32 %v6742_v18, %v6131_v17  ;;  %3382 = vmatpush.bf16.msrb.mxu2 %v5876_v16  ;;  %v110_v16 = vperm.slane %v6988_v5, 4  ;;  %v171_v17 = vperm.slane %v6996_v11, 0  ;;  %v172_v18 = vperm.slane %v6996_v11, 1 }
  0x79   :  { %v6542_v21 = vld [vmem:[#allocation7 + $0x8dc] sm:$0xf0] }
  0x7a   :  { %v5587_v22 = vld [vmem:[#allocation7 + $0xac0] sm:$0xf]  ;;  %v5332_v24 = vor.u32 %v6542_v21, %v5331_v19  ;;  %3395 = vmatpush.bf16.msrb.mxu3 %v6132_v20  ;;  %v173_v19 = vperm.slane %v6996_v11, 2  ;;  %v174_v20 = vperm.slane %v6996_v11, 3 }
  0x7b   :  { %v6606_v23 = vld [vmem:[#allocation7 + $0xadc] sm:$0xf0] }
  0x7c   :  { %v5588_v25 = vor.u32 %v6606_v23, %v5587_v22  ;;  %v5843_v26 = vld [vmem:[#allocation7 + $0xcc0] sm:$0xf]  ;;  %3357 = vmatpush.bf16.msrb.mxu0 %v5332_v24 }
  0x7d   :  { %v6670_v27 = vld [vmem:[#allocation7 + $0xcdc] sm:$0xf0] }
  0x7e   :  { %v6099_v28 = vld [vmem:[#allocation7 + $0xec0] sm:$0xf]  ;;  %v5844_v29 = vor.u32 %v6670_v27, %v5843_v26  ;;  %3370 = vmatpush.bf16.msrb.mxu1 %v5588_v25 }
  0x7f   :  { %v6734_v30 = vld [vmem:[#allocation7 + $0xedc] sm:$0xf0] }
  0x80   :  { %v6100_v31 = vor.u32 %v6734_v30, %v6099_v28  ;;  %3383 = vmatpush.bf16.msrb.mxu2 %v5844_v29  ;;  %v5299_v32 = vld [vmem:[#allocation7 + $0x880] sm:$0xf]  ;;  %v111_v30 = vperm.slane %v6988_v5, 5 }
  0x81   :  { %v6534_v33 = vld [vmem:[#allocation7 + $0x89c] sm:$0xf0] }
  0x82   :  { %3396 = vmatpush.bf16.msrb.mxu3 %v6100_v31  ;;  %v5555_v34 = vld [vmem:[#allocation7 + $0xa80] sm:$0xf]  ;;  %v5300_v35 = vor.u32 %v6534_v33, %v5299_v32  ;;  %v112_v31 = vperm.slane %v6988_v5, 6  ;;  %v113_v32 = vperm.slane %v6988_v5, 7  ;;  %v141_v33 = vperm.slane %v6990_v6, 4 }
  0x83   :  { %v6598_v36 = vld [vmem:[#allocation7 + $0xa9c] sm:$0xf0]  ;;  %v6370_v5 = vld [vmem:[#allocation7 + $0x384] sm:$0xf] }
  0x84   :  { %v5811_v37 = vld [vmem:[#allocation7 + $0xc80] sm:$0xf]  ;;  %v5556_v39 = vor.u32 %v6598_v36, %v5555_v34  ;;  %3358 = vmatpush.bf16.msrb.mxu0 %v5300_v35 }
  0x85   :  { %v6662_v38 = vld [vmem:[#allocation7 + $0xc9c] sm:$0xf0] }
  0x86   :  { %v5812_v40 = vor.u32 %v6662_v38, %v5811_v37  ;;  %v6067_v41 = vld [vmem:[#allocation7 + $0xe80] sm:$0xf]  ;;  %3371 = vmatpush.bf16.msrb.mxu1 %v5556_v39  ;;  %v142_v38 = vperm.slane %v6990_v6, 5  ;;  %v143_v39 = vperm.slane %v6990_v6, 6 }
  0x87   :  { %v6726_v42 = vld [vmem:[#allocation7 + $0xe9c] sm:$0xf0] }
  0x88   :  { %v6068_v43 = vor.u32 %v6726_v42, %v6067_v41  ;;  %v5267_v44 = vld [vmem:[#allocation7 + $0x840] sm:$0xf]  ;;  %3384 = vmatpush.bf16.msrb.mxu2 %v5812_v40  ;;  %v144_v40 = vperm.slane %v6990_v6, 7  ;;  %v175_v41 = vperm.slane %v6996_v11, 4  ;;  %v6314_v42 = vld [vmem:[#allocation7 + $0x1c4] sm:$0xf] }
  0x89   :  { %v6526_v45 = vld [vmem:[#allocation7 + $0x85c] sm:$0xf0]  ;;  %v4661_v6 = vld [vmem:[#allocation7 + $0x3a0] sm:$0xf0] }
  0x8a   :  { %v5523_v46 = vld [vmem:[#allocation7 + $0xa40] sm:$0xf]  ;;  %v5268_v47 = vor.u32 %v6526_v45, %v5267_v44  ;;  %3397 = vmatpush.bf16.msrb.mxu3 %v6068_v43 }
  0x8b   :  { %v6590_v48 = vld [vmem:[#allocation7 + $0xa5c] sm:$0xf0] }
  0x8c   :  { %v5779_v49 = vld [vmem:[#allocation7 + $0xc40] sm:$0xf]  ;;  %v5524_v51 = vor.u32 %v6590_v48, %v5523_v46  ;;  %3359 = vmatpush.bf16.msrb.mxu0 %v5268_v47  ;;  %v6986_v4 = vpop.permute.xlu0 %102  ;;  %v4437_v47 = vld [vmem:[#allocation7 + $0x1e0] sm:$0xf0] }
  0x8d   :  { %v6654_v50 = vld [vmem:[#allocation7 + $0xc5c] sm:$0xf0]  ;;  %v122_v21 = vmul.f32 %v106_v7, %v6986_v4  ;;  %v123_v22 = vmul.f32 %v107_v8, %v6986_v4  ;;  %v124_v23 = vmul.f32 %v108_v9, %v6986_v4  ;;  %v125_v24 = vmul.f32 %v109_v10, %v6986_v4  ;;  %v6378_v48 = vld [vmem:[#allocation7 + $0x3c4] sm:$0xf] }
  0x8e   :  { %v5780_v52 = vor.u32 %v6654_v50, %v5779_v49  ;;  %v6035_v53 = vld [vmem:[#allocation7 + $0xe40] sm:$0xf]  ;;  %3372 = vmatpush.bf16.msrb.mxu1 %v5524_v51  ;;  %v4693_v49 = vld [vmem:[#allocation7 + $0x3e0] sm:$0xf0] }
  0x8f   :  { %v6718_v54 = vld [vmem:[#allocation7 + $0xe5c] sm:$0xf0]  ;;  %v6442_v50 = vld [vmem:[#allocation7 + $0x5c4] sm:$0xf] }
  0x90   :  { %v6036_v55 = vor.u32 %v6718_v54, %v6035_v53  ;;  %v5235_v56 = vld [vmem:[#allocation7 + $0x800] sm:$0xf]  ;;  %3385 = vmatpush.bf16.msrb.mxu2 %v5780_v52  ;;  %v4949_v51 = vld [vmem:[#allocation7 + $0x5e0] sm:$0xf0] }
  0x91   :  { %v6518_v57 = vld [vmem:[#allocation7 + $0x81c] sm:$0xf0]  ;;  %v6506_v52 = vld [vmem:[#allocation7 + $0x7c4] sm:$0xf]  ;;  %v4952_v9 = vor.u32 %v6442_v50, %v4949_v51 }
  0x92   :  { %v5491_v58 = vld [vmem:[#allocation7 + $0xa00] sm:$0xf]  ;;  %v5236_v59 = vor.u32 %v6518_v57, %v5235_v56  ;;  %3398 = vmatpush.bf16.msrb.mxu3 %v6036_v55  ;;  %v5205_v57 = vld [vmem:[#allocation7 + $0x7e0] sm:$0xf0] }
  0x93   :  { %v6582_v60 = vld [vmem:[#allocation7 + $0xa1c] sm:$0xf0]  ;;  %v5208_v10 = vor.u32 %v6506_v52, %v5205_v57  ;;  %v4597_v50 = vld [vmem:[#allocation7 + $0x320] sm:$0xf0] }
  0x94   :  { %v5747_v61 = vld [vmem:[#allocation7 + $0xc00] sm:$0xf]  ;;  %v5492_v63 = vor.u32 %v6582_v60, %v5491_v58  ;;  %3360 = vmatpush.bf16.msrb.mxu0 %v5236_v59  ;;  %v4440_v60 = vor.u32 %v6314_v42, %v4437_v47  ;;  %v6418_v51 = vld [vmem:[#allocation7 + $0x504] sm:$0xf] }
  0x95   :  { %v6646_v62 = vld [vmem:[#allocation7 + $0xc1c] sm:$0xf0]  ;;  %v134_v25 = vpop.permute.xlu0 %133  ;;  %v4853_v52 = vld [vmem:[#allocation7 + $0x520] sm:$0xf0] }
  0x96   :  { %v5748_v0 = vor.u32 %v6646_v62, %v5747_v61  ;;  %v6003_v1 = vld [vmem:[#allocation7 + $0xe00] sm:$0xf]  ;;  %3373 = vmatpush.bf16.msrb.mxu1 %v5492_v63  ;;  %v153_v26 = vmul.f32 %v137_v12, %v134_v25  ;;  %v154_v27 = vmul.f32 %v138_v13, %v134_v25  ;;  %v155_v28 = vmul.f32 %v139_v14, %v134_v25  ;;  %v6306_v62 = vld [vmem:[#allocation7 + $0x184] sm:$0xf] }
  0x97   :  { %v6710_v2 = vld [vmem:[#allocation7 + $0xe1c] sm:$0xf0]  ;;  %v156_v29 = vmul.f32 %v140_v15, %v134_v25  ;;  %v157_v58 = vmul.f32 %v141_v33, %v134_v25  ;;  %v158_v59 = vmul.f32 %v142_v38, %v134_v25  ;;  %v4696_v61 = vor.u32 %v6378_v48, %v4693_v49  ;;  %v4405_v63 = vld [vmem:[#allocation7 + $0x1a0] sm:$0xf0] }
  0x98   :  { %v6004_v3 = vor.u32 %v6710_v2, %v6003_v1  ;;  %3386 = vmatpush.bf16.msrb.mxu2 %v5748_v0  ;;  %v161_v34 = vadd.f32 %v153_v26, %v122_v21  ;;  %v162_v35 = vadd.f32 %v154_v27, %v123_v22  ;;  %v163_v36 = vadd.f32 %v155_v28, %v124_v23  ;;  %v6434_v12 = vld [vmem:[#allocation7 + $0x584] sm:$0xf] }
  0x99   :  { %v164_v37 = vadd.f32 %v156_v29, %v125_v24  ;;  %v159_v7 = vmul.f32 %v143_v39, %v134_v25  ;;  %v160_v8 = vmul.f32 %v144_v40, %v134_v25  ;;  %v4917_v13 = vld [vmem:[#allocation7 + $0x5a0] sm:$0xf0]  ;;  %v126_v14 = vmul.f32 %v110_v16, %v6986_v4 }
  0x9a   :  { %3399 = vmatpush.bf16.msrb.mxu3 %v6004_v3  ;;  %v187_v43 = vadd.f32 %v171_v17, %v161_v34  ;;  %v188_v44 = vadd.f32 %v172_v18, %v162_v35  ;;  %v189_v45 = vadd.f32 %v173_v19, %v163_v36  ;;  %v127_v15 = vmul.f32 %v111_v30, %v6986_v4  ;;  %v6498_v19 = vld [vmem:[#allocation7 + $0x784] sm:$0xf] }
  0x9b   :  { %v190_v46 = vadd.f32 %v174_v20, %v164_v37  ;;  %v176_v17 = vperm.slane %v6996_v11, 5  ;;  %v4408_v18 = vor.u32 %v6306_v62, %v4405_v63  ;;  %v5173_v20 = vld [vmem:[#allocation7 + $0x7a0] sm:$0xf0]  ;;  %v128_v21 = vmul.f32 %v112_v31, %v6986_v4 }
  0x9c   :  { %v195_v53 = vmax.f32 %v187_v43, 0.0  ;;  %v196_v54 = vmax.f32 %v188_v44, 0.0  ;;  %v197_v55 = vmax.f32 %v189_v45, 0.0  ;;  %v129_v22 = vmul.f32 %v113_v32, %v6986_v4  ;;  %v6298_v24 = vld [vmem:[#allocation7 + $0x144] sm:$0xf] }
  0x9d   :  { %v198_v56 = vmax.f32 %v190_v46, 0.0  ;;  %v177_v23 = vperm.slane %v6996_v11, 6  ;;  %v4664_v16 = vor.u32 %v6370_v5, %v4661_v6  ;;  %v165_v25 = vadd.f32 %v157_v58, %v126_v14  ;;  %v4373_v28 = vld [vmem:[#allocation7 + $0x160] sm:$0xf0] }
  0x9e   :  { %v7019_v0 = vpack.c.bf16 %v195_v53, %v195_v53  ;;  %v7021_v1 = vpack.c.bf16 %v196_v54, %v196_v54  ;;  %v7023_v2 = vpack.c.bf16 %v197_v55, %v197_v55  ;;  %v166_v26 = vadd.f32 %v158_v59, %v127_v15  ;;  %v6362_v29 = vld [vmem:[#allocation7 + $0x344] sm:$0xf] }
  0x9f   :  { %v7025_v3 = vpack.c.bf16 %v198_v56, %v198_v56  ;;  %v4920_v27 = vor.u32 %v6434_v12, %v4917_v13  ;;  %v4629_v30 = vld [vmem:[#allocation7 + $0x360] sm:$0xf0]  ;;  %v178_v31 = vperm.slane %v6996_v11, 7  ;;  %v167_v33 = vadd.f32 %v159_v7, %v128_v21 }
  0xa0   :  { %3309 = vmatmul.bf16.vlgmr.msra.gmra.mxu0 %v7019_v0  ;;  %3322 = vmatmul.bf16.vlgmr.msra.gmra.mxu1 %v7021_v1  ;;  %v168_v4 = vadd.f32 %v160_v8, %v129_v22  ;;  %v5176_v32 = vor.u32 %v6498_v19, %v5173_v20  ;;  %v6426_v34 = vld [vmem:[#allocation7 + $0x544] sm:$0xf]  ;;  %v4376_v38 = vor.u32 %v6298_v24, %v4373_v28 }
  0xa1   :  { %3335 = vmatmul.bf16.vlgmr.msra.gmra.mxu2 %v7023_v2  ;;  %3348 = vmatmul.bf16.vlgmr.msra.gmra.mxu3 %v7025_v3  ;;  %v4885_v35 = vld [vmem:[#allocation7 + $0x560] sm:$0xf0]  ;;  %v4632_v39 = vor.u32 %v6362_v29, %v4629_v30  ;;  %v191_v40 = vadd.f32 %v175_v41, %v165_v25  ;;  %v192_v42 = vadd.f32 %v176_v17, %v166_v26 }
  0xa2   :  { %3405 = vmatpush.bf16.msra.mxu0 %v4440_v60  ;;  %3418 = vmatpush.bf16.msra.mxu1 %v4696_v61  ;;  %v6490_v36 = vld [vmem:[#allocation7 + $0x744] sm:$0xf]  ;;  %v4888_v43 = vor.u32 %v6426_v34, %v4885_v35  ;;  %v193_v46 = vadd.f32 %v177_v23, %v167_v33  ;;  %v194_v47 = vadd.f32 %v178_v31, %v168_v4 }
  0xa3   :  { %3431 = vmatpush.bf16.msra.mxu2 %v4952_v9  ;;  %3444 = vmatpush.bf16.msra.mxu3 %v5208_v10  ;;  %v5141_v37 = vld [vmem:[#allocation7 + $0x760] sm:$0xf0]  ;;  %v199_v41 = vmax.f32 %v191_v40, 0.0  ;;  %v200_v56 = vmax.f32 %v192_v42, 0.0  ;;  %v4856_v63 = vor.u32 %v6418_v51, %v4853_v52 }
  0xa4   :  { %v6290_v44 = vld [vmem:[#allocation7 + $0x104] sm:$0xf]  ;;  %v5144_v48 = vor.u32 %v6490_v36, %v5141_v37  ;;  %v201_v61 = vmax.f32 %v193_v46, 0.0  ;;  %v202_v62 = vmax.f32 %v194_v47, 0.0 }
  0xa5   :  { %v4341_v45 = vld [vmem:[#allocation7 + $0x120] sm:$0xf0]  ;;  %v7040_v13 = vpack.c.bf16 %v199_v41, %v199_v41  ;;  %v7042_v14 = vpack.c.bf16 %v200_v56, %v200_v56 }
  0xa6   :  { %3406 = vmatpush.bf16.msra.mxu0 %v4408_v18  ;;  %3419 = vmatpush.bf16.msra.mxu1 %v4664_v16  ;;  %v6354_v49 = vld [vmem:[#allocation7 + $0x304] sm:$0xf]  ;;  %v4344_v57 = vor.u32 %v6290_v44, %v4341_v45  ;;  %v7044_v19 = vpack.c.bf16 %v201_v61, %v201_v61  ;;  %v7046_v20 = vpack.c.bf16 %v202_v62, %v202_v62 }
  0xa7   :  { %3432 = vmatpush.bf16.msra.mxu2 %v4920_v27  ;;  %3445 = vmatpush.bf16.msra.mxu3 %v5176_v32  ;;  %v6482_v53 = vld [vmem:[#allocation7 + $0x704] sm:$0xf]  ;;  %v4600_v58 = vor.u32 %v6354_v49, %v4597_v50 }
  0xa8   :  { %v5109_v54 = vld [vmem:[#allocation7 + $0x720] sm:$0xf0] }
  0xa9   :  { %v6282_v55 = vld [vmem:[#allocation7 + $0xc4] sm:$0xf]  ;;  %v5112_v5 = vor.u32 %v6482_v53, %v5109_v54 }
  0xaa   :  { %v4309_v11 = vld [vmem:[#allocation7 + $0xe0] sm:$0xf0]  ;;  %3407 = vmatpush.bf16.msra.mxu0 %v4376_v38  ;;  %3420 = vmatpush.bf16.msra.mxu1 %v4632_v39 }
  0xab   :  { %v6346_v59 = vld [vmem:[#allocation7 + $0x2c4] sm:$0xf]  ;;  %3433 = vmatpush.bf16.msra.mxu2 %v4888_v43  ;;  %3446 = vmatpush.bf16.msra.mxu3 %v5144_v48  ;;  %v4312_v10 = vor.u32 %v6282_v55, %v4309_v11 }
  0xac   :  { %v4565_v60 = vld [vmem:[#allocation7 + $0x2e0] sm:$0xf0] }
  0xad   :  { %v6410_v6 = vld [vmem:[#allocation7 + $0x4c4] sm:$0xf]  ;;  %v4568_v12 = vor.u32 %v6346_v59, %v4565_v60 }
  0xae   :  { %v4821_v7 = vld [vmem:[#allocation7 + $0x4e0] sm:$0xf0]  ;;  %3408 = vmatpush.bf16.msra.mxu0 %v4344_v57  ;;  %3421 = vmatpush.bf16.msra.mxu1 %v4600_v58 }
  0xaf   :  { %v6474_v8 = vld [vmem:[#allocation7 + $0x6c4] sm:$0xf]  ;;  %v4824_v15 = vor.u32 %v6410_v6, %v4821_v7  ;;  %3434 = vmatpush.bf16.msra.mxu2 %v4856_v63  ;;  %3447 = vmatpush.bf16.msra.mxu3 %v5112_v5 }
  0xb0   :  { %v5077_v9 = vld [vmem:[#allocation7 + $0x6e0] sm:$0xf0]  ;;  %3361 = vmatmul.bf16.vlgmr.msrb.gmra.mxu0 %v7040_v13  ;;  %3374 = vmatmul.bf16.vlgmr.msrb.gmra.mxu1 %v7042_v14 }
  0xb1   :  { %v6274_v17 = vld [vmem:[#allocation7 + $0x84] sm:$0xf]  ;;  %v5080_v21 = vor.u32 %v6474_v8, %v5077_v9  ;;  %3387 = vmatmul.bf16.vlgmr.msrb.gmra.mxu2 %v7044_v19  ;;  %3400 = vmatmul.bf16.vlgmr.msrb.gmra.mxu3 %v7046_v20 }
  0xb2   :  { %v4277_v18 = vld [vmem:[#allocation7 + $0xa0] sm:$0xf0]  ;;  %3409 = vmatpush.bf16.msra.mxu0 %v4312_v10  ;;  %3422 = vmatpush.bf16.msra.mxu1 %v4568_v12 }
  0xb3   :  { %v6338_v22 = vld [vmem:[#allocation7 + $0x284] sm:$0xf]  ;;  %v4280_v27 = vor.u32 %v6274_v17, %v4277_v18  ;;  %3435 = vmatpush.bf16.msra.mxu2 %v4824_v15  ;;  %3448 = vmatpush.bf16.msra.mxu3 %v5080_v21 }
  0xb4   :  { %v4533_v23 = vld [vmem:[#allocation7 + $0x2a0] sm:$0xf0] }
  0xb5   :  { %v6402_v16 = vld [vmem:[#allocation7 + $0x484] sm:$0xf]  ;;  %v4536_v28 = vor.u32 %v6338_v22, %v4533_v23 }
  0xb6   :  { %v4789_v24 = vld [vmem:[#allocation7 + $0x4a0] sm:$0xf0]  ;;  %3410 = vmatpush.bf16.msra.mxu0 %v4280_v27 }
  0xb7   :  { %v6466_v25 = vld [vmem:[#allocation7 + $0x684] sm:$0xf]  ;;  %v4792_v31 = vor.u32 %v6402_v16, %v4789_v24  ;;  %3423 = vmatpush.bf16.msra.mxu1 %v4536_v28 }
  0xb8   :  { %v5045_v26 = vld [vmem:[#allocation7 + $0x6a0] sm:$0xf0] }
  0xb9   :  { %v6266_v29 = vld [vmem:[#allocation7 + $0x44] sm:$0xf]  ;;  %v5048_v33 = vor.u32 %v6466_v25, %v5045_v26  ;;  %3436 = vmatpush.bf16.msra.mxu2 %v4792_v31 }
  0xba   :  { %v4245_v30 = vld [vmem:[#allocation7 + $0x60] sm:$0xf0] }
  0xbb   :  { %v6330_v4 = vld [vmem:[#allocation7 + $0x244] sm:$0xf]  ;;  %v4248_v39 = vor.u32 %v6266_v29, %v4245_v30  ;;  %3449 = vmatpush.bf16.msra.mxu3 %v5048_v33 }
  0xbc   :  { %v4501_v32 = vld [vmem:[#allocation7 + $0x260] sm:$0xf0] }
  0xbd   :  { %v6394_v34 = vld [vmem:[#allocation7 + $0x444] sm:$0xf]  ;;  %v4504_v40 = vor.u32 %v6330_v4, %v4501_v32  ;;  %3411 = vmatpush.bf16.msra.mxu0 %v4248_v39 }
  0xbe   :  { %v4757_v35 = vld [vmem:[#allocation7 + $0x460] sm:$0xf0] }
  0xbf   :  { %v6458_v36 = vld [vmem:[#allocation7 + $0x644] sm:$0xf]  ;;  %v4760_v45 = vor.u32 %v6394_v34, %v4757_v35  ;;  %3424 = vmatpush.bf16.msra.mxu1 %v4504_v40 }
  0xc0   :  { %v5013_v37 = vld [vmem:[#allocation7 + $0x660] sm:$0xf0] }
  0xc1   :  { %v6258_v38 = vld [vmem:[#allocation7 + $0x4] sm:$0xf]  ;;  %v5016_v46 = vor.u32 %v6458_v36, %v5013_v37  ;;  %3437 = vmatpush.bf16.msra.mxu2 %v4760_v45 }
  0xc2   :  { %v4213_v42 = vld [vmem:[#allocation7 + $0x20] sm:$0xf0] }
  0xc3   :  { %v6322_v43 = vld [vmem:[#allocation7 + $0x204] sm:$0xf]  ;;  %v4216_v11 = vor.u32 %v6258_v38, %v4213_v42  ;;  %3450 = vmatpush.bf16.msra.mxu3 %v5016_v46 }
  0xc4   :  { %v4469_v44 = vld [vmem:[#allocation7 + $0x220] sm:$0xf0] }
  0xc5   :  { %v6386_v47 = vld [vmem:[#allocation7 + $0x404] sm:$0xf]  ;;  %v4472_v41 = vor.u32 %v6322_v43, %v4469_v44  ;;  %3412 = vmatpush.bf16.msra.mxu0 %v4216_v11 }
  0xc6   :  { %v4725_v48 = vld [vmem:[#allocation7 + $0x420] sm:$0xf0] }
  0xc7   :  { %v6450_v49 = vld [vmem:[#allocation7 + $0x604] sm:$0xf]  ;;  %v4728_v59 = vor.u32 %v6386_v47, %v4725_v48  ;;  %3425 = vmatpush.bf16.msra.mxu1 %v4472_v41 }
  0xc8   :  { %v4981_v50 = vld [vmem:[#allocation7 + $0x620] sm:$0xf0]  ;;  %3413 = vmatmul.bf16.vlgmr.msra.gmra.mxu0 %v7019_v0 }
  0xc9   :  { %v6570_v51 = vld [vmem:[#allocation7 + $0x9c4] sm:$0xf]  ;;  %v4984_v60 = vor.u32 %v6450_v49, %v4981_v50  ;;  %3438 = vmatpush.bf16.msra.mxu2 %v4728_v59 }
  0xca   :  { %v5461_v52 = vld [vmem:[#allocation7 + $0x9e0] sm:$0xf0]  ;;  %3426 = vmatmul.bf16.vlgmr.msra.gmra.mxu1 %v7021_v1 }
  0xcb   :  { %v6634_v53 = vld [vmem:[#allocation7 + $0xbc4] sm:$0xf]  ;;  %v5464_v61 = vor.u32 %v6570_v51, %v5461_v52  ;;  %3451 = vmatpush.bf16.msra.mxu3 %v4984_v60 }
  0xcc   :  { %v5717_v54 = vld [vmem:[#allocation7 + $0xbe0] sm:$0xf0]  ;;  %3439 = vmatmul.bf16.vlgmr.msra.gmra.mxu2 %v7023_v2 }
  0xcd   :  { %v6698_v55 = vld [vmem:[#allocation7 + $0xdc4] sm:$0xf]  ;;  %v5720_v62 = vor.u32 %v6634_v53, %v5717_v54  ;;  %3457 = vmatpush.bf16.msrb.mxu0 %v5464_v61 }
  0xce   :  { %v5973_v56 = vld [vmem:[#allocation7 + $0xde0] sm:$0xf0]  ;;  %3452 = vmatmul.bf16.vlgmr.msra.gmra.mxu3 %v7025_v3 }
  0xcf   :  { %v6762_v57 = vld [vmem:[#allocation7 + $0xfc4] sm:$0xf]  ;;  %v5976_v6 = vor.u32 %v6698_v55, %v5973_v56  ;;  %3470 = vmatpush.bf16.msrb.mxu1 %v5720_v62 }
  0xd0   :  { %v6229_v58 = vld [vmem:[#allocation7 + $0xfe0] sm:$0xf0] }
  0xd1   :  { %v6562_v63 = vld [vmem:[#allocation7 + $0x984] sm:$0xf]  ;;  %v6232_v7 = vor.u32 %v6762_v57, %v6229_v58  ;;  %3483 = vmatpush.bf16.msrb.mxu2 %v5976_v6 }
  0xd2   :  { %v5429_v5 = vld [vmem:[#allocation7 + $0x9a0] sm:$0xf0] }
  0xd3   :  { %v6626_v8 = vld [vmem:[#allocation7 + $0xb84] sm:$0xf]  ;;  %v5432_v18 = vor.u32 %v6562_v63, %v5429_v5  ;;  %3496 = vmatpush.bf16.msrb.mxu3 %v6232_v7 }
  0xd4   :  { %v5685_v9 = vld [vmem:[#allocation7 + $0xba0] sm:$0xf0] }
  0xd5   :  { %v6690_v10 = vld [vmem:[#allocation7 + $0xd84] sm:$0xf]  ;;  %v5688_v21 = vor.u32 %v6626_v8, %v5685_v9  ;;  %3458 = vmatpush.bf16.msrb.mxu0 %v5432_v18 }
  0xd6   :  { %v5941_v12 = vld [vmem:[#allocation7 + $0xda0] sm:$0xf0] }
  0xd7   :  { %v6754_v15 = vld [vmem:[#allocation7 + $0xf84] sm:$0xf]  ;;  %v5944_v16 = vor.u32 %v6690_v10, %v5941_v12  ;;  %3471 = vmatpush.bf16.msrb.mxu1 %v5688_v21 }
  0xd8   :  { %v6197_v17 = vld [vmem:[#allocation7 + $0xfa0] sm:$0xf0] }
  0xd9   :  { %v6554_v22 = vld [vmem:[#allocation7 + $0x944] sm:$0xf]  ;;  %v6200_v24 = vor.u32 %v6754_v15, %v6197_v17  ;;  %3484 = vmatpush.bf16.msrb.mxu2 %v5944_v16 }
  0xda   :  { %v5397_v23 = vld [vmem:[#allocation7 + $0x960] sm:$0xf0] }
  0xdb   :  { %v6618_v25 = vld [vmem:[#allocation7 + $0xb44] sm:$0xf]  ;;  %v5400_v31 = vor.u32 %v6554_v22, %v5397_v23  ;;  %3497 = vmatpush.bf16.msrb.mxu3 %v6200_v24 }
  0xdc   :  { %v5653_v26 = vld [vmem:[#allocation7 + $0xb60] sm:$0xf0] }
  0xdd   :  { %v6682_v27 = vld [vmem:[#allocation7 + $0xd44] sm:$0xf]  ;;  %v5656_v33 = vor.u32 %v6618_v25, %v5653_v26  ;;  %3459 = vmatpush.bf16.msrb.mxu0 %v5400_v31 }
  0xde   :  { %v5909_v28 = vld [vmem:[#allocation7 + $0xd60] sm:$0xf0] }
  0xdf   :  { %v6746_v29 = vld [vmem:[#allocation7 + $0xf44] sm:$0xf]  ;;  %v5912_v34 = vor.u32 %v6682_v27, %v5909_v28  ;;  %3472 = vmatpush.bf16.msrb.mxu1 %v5656_v33 }
  0xe0   :  { %v6165_v30 = vld [vmem:[#allocation7 + $0xf60] sm:$0xf0] }
  0xe1   :  { %v6546_v4 = vld [vmem:[#allocation7 + $0x904] sm:$0xf]  ;;  %v6168_v35 = vor.u32 %v6746_v29, %v6165_v30  ;;  %3485 = vmatpush.bf16.msrb.mxu2 %v5912_v34  ;;  %v4443_v34 = vld [vmem:[#allocation7 + $0x1c8] sm:$0xf] }
  0xe2   :  { %v5365_v32 = vld [vmem:[#allocation7 + $0x920] sm:$0xf0] }
  0xe3   :  { %v6610_v36 = vld [vmem:[#allocation7 + $0xb04] sm:$0xf]  ;;  %v5368_v43 = vor.u32 %v6546_v4, %v5365_v32  ;;  %3498 = vmatpush.bf16.msrb.mxu3 %v6168_v35  ;;  %v6319_v35 = vld [vmem:[#allocation7 + $0x1e4] sm:$0xf0] }
  0xe4   :  { %v5621_v37 = vld [vmem:[#allocation7 + $0xb20] sm:$0xf0] }
  0xe5   :  { %v6674_v38 = vld [vmem:[#allocation7 + $0xd04] sm:$0xf]  ;;  %v5624_v44 = vor.u32 %v6610_v36, %v5621_v37  ;;  %3460 = vmatpush.bf16.msrb.mxu0 %v5368_v43  ;;  %v4699_v36 = vld [vmem:[#allocation7 + $0x3c8] sm:$0xf] }
  0xe6   :  { %v5877_v39 = vld [vmem:[#allocation7 + $0xd20] sm:$0xf0]  ;;  %v6383_v37 = vld [vmem:[#allocation7 + $0x3e4] sm:$0xf0] }
  0xe7   :  { %v6738_v40 = vld [vmem:[#allocation7 + $0xf04] sm:$0xf]  ;;  %v5880_v47 = vor.u32 %v6674_v38, %v5877_v39  ;;  %3473 = vmatpush.bf16.msrb.mxu1 %v5624_v44  ;;  %v4955_v38 = vld [vmem:[#allocation7 + $0x5c8] sm:$0xf] }
  0xe8   :  { %v6133_v42 = vld [vmem:[#allocation7 + $0xf20] sm:$0xf0]  ;;  %v5211_v43 = vld [vmem:[#allocation7 + $0x7c8] sm:$0xf] }
  0xe9   :  { %v6538_v45 = vld [vmem:[#allocation7 + $0x8c4] sm:$0xf]  ;;  %v6136_v48 = vor.u32 %v6738_v40, %v6133_v42  ;;  %3486 = vmatpush.bf16.msrb.mxu2 %v5880_v47  ;;  %v6447_v42 = vld [vmem:[#allocation7 + $0x5e4] sm:$0xf0]  ;;  %v4444_v47 = vor.u32 %v6319_v35, %v4443_v34 }
  0xea   :  { %v5333_v46 = vld [vmem:[#allocation7 + $0x8e0] sm:$0xf0]  ;;  %v6511_v44 = vld [vmem:[#allocation7 + $0x7e4] sm:$0xf0] }
  0xeb   :  { %v6602_v49 = vld [vmem:[#allocation7 + $0xac4] sm:$0xf]  ;;  %v5336_v55 = vor.u32 %v6538_v45, %v5333_v46  ;;  %3499 = vmatpush.bf16.msrb.mxu3 %v6136_v48  ;;  %v4700_v48 = vor.u32 %v6383_v37, %v4699_v36  ;;  %v4827_v34 = vld [vmem:[#allocation7 + $0x4c8] sm:$0xf] }
  0xec   :  { %v5589_v50 = vld [vmem:[#allocation7 + $0xae0] sm:$0xf0]  ;;  %v6415_v35 = vld [vmem:[#allocation7 + $0x4e4] sm:$0xf0] }
  0xed   :  { %v6666_v51 = vld [vmem:[#allocation7 + $0xcc4] sm:$0xf]  ;;  %v5592_v11 = vor.u32 %v6602_v49, %v5589_v50  ;;  %3461 = vmatpush.bf16.msrb.mxu0 %v5336_v55  ;;  %v4411_v49 = vld [vmem:[#allocation7 + $0x188] sm:$0xf] }
  0xee   :  { %v5845_v52 = vld [vmem:[#allocation7 + $0xce0] sm:$0xf0]  ;;  %v6311_v50 = vld [vmem:[#allocation7 + $0x1a4] sm:$0xf0] }
  0xef   :  { %v6730_v53 = vld [vmem:[#allocation7 + $0xec4] sm:$0xf]  ;;  %v5848_v57 = vor.u32 %v6666_v51, %v5845_v52  ;;  %3474 = vmatpush.bf16.msrb.mxu1 %v5592_v11  ;;  %v4956_v51 = vor.u32 %v6447_v42, %v4955_v38  ;;  %v5212_v52 = vor.u32 %v6511_v44, %v5211_v43  ;;  %v4923_v55 = vld [vmem:[#allocation7 + $0x588] sm:$0xf]  ;;  %v4828_v43 = vor.u32 %v6415_v35, %v4827_v34 }
  0xf0   :  { %v6101_v54 = vld [vmem:[#allocation7 + $0xee0] sm:$0xf0]  ;;  %v6439_v11 = vld [vmem:[#allocation7 + $0x5a4] sm:$0xf0] }
  0xf1   :  { %v6530_v41 = vld [vmem:[#allocation7 + $0x884] sm:$0xf]  ;;  %v6104_v58 = vor.u32 %v6730_v53, %v6101_v54  ;;  %3487 = vmatpush.bf16.msrb.mxu2 %v5848_v57  ;;  %v4667_v53 = vld [vmem:[#allocation7 + $0x388] sm:$0xf]  ;;  %v4412_v57 = vor.u32 %v6311_v50, %v4411_v49 }
  0xf2   :  { %v5301_v56 = vld [vmem:[#allocation7 + $0x8a0] sm:$0xf0]  ;;  %v6375_v54 = vld [vmem:[#allocation7 + $0x3a4] sm:$0xf0] }
  0xf3   :  { %v6594_v59 = vld [vmem:[#allocation7 + $0xa84] sm:$0xf]  ;;  %v5304_v6 = vor.u32 %v6530_v41, %v5301_v56  ;;  %3500 = vmatpush.bf16.msrb.mxu3 %v6104_v58  ;;  %v5179_v41 = vld [vmem:[#allocation7 + $0x788] sm:$0xf]  ;;  %v4668_v58 = vor.u32 %v6375_v54, %v4667_v53 }
  0xf4   :  { %v5557_v60 = vld [vmem:[#allocation7 + $0xaa0] sm:$0xf0]  ;;  %v6503_v56 = vld [vmem:[#allocation7 + $0x7a4] sm:$0xf0] }
  0xf5   :  { %v6658_v61 = vld [vmem:[#allocation7 + $0xc84] sm:$0xf]  ;;  %v5560_v7 = vor.u32 %v6594_v59, %v5557_v60  ;;  %3462 = vmatpush.bf16.msrb.mxu0 %v5304_v6  ;;  %v4379_v59 = vld [vmem:[#allocation7 + $0x148] sm:$0xf] }
  0xf6   :  { %v5813_v62 = vld [vmem:[#allocation7 + $0xca0] sm:$0xf0]  ;;  %v6303_v60 = vld [vmem:[#allocation7 + $0x164] sm:$0xf0] }
  0xf7   :  { %v6722_v63 = vld [vmem:[#allocation7 + $0xe84] sm:$0xf]  ;;  %v5816_v10 = vor.u32 %v6658_v61, %v5813_v62  ;;  %3475 = vmatpush.bf16.msrb.mxu1 %v5560_v7  ;;  %v4924_v61 = vor.u32 %v6439_v11, %v4923_v55  ;;  %v5180_v62 = vor.u32 %v6503_v56, %v5179_v41  ;;  %v4891_v6 = vld [vmem:[#allocation7 + $0x548] sm:$0xf] }
  0xf8   :  { %v6069_v5 = vld [vmem:[#allocation7 + $0xea0] sm:$0xf0]  ;;  %v6431_v7 = vld [vmem:[#allocation7 + $0x564] sm:$0xf0] }
  0xf9   :  { %v6522_v8 = vld [vmem:[#allocation7 + $0x844] sm:$0xf]  ;;  %v6072_v12 = vor.u32 %v6722_v63, %v6069_v5  ;;  %3488 = vmatpush.bf16.msrb.mxu2 %v5816_v10  ;;  %v4635_v63 = vld [vmem:[#allocation7 + $0x348] sm:$0xf]  ;;  %v4380_v10 = vor.u32 %v6303_v60, %v4379_v59 }
  0xfa   :  { %v5269_v9 = vld [vmem:[#allocation7 + $0x860] sm:$0xf0]  ;;  %v6367_v5 = vld [vmem:[#allocation7 + $0x364] sm:$0xf0] }
  0xfb   :  { %v6586_v15 = vld [vmem:[#allocation7 + $0xa44] sm:$0xf]  ;;  %v5272_v24 = vor.u32 %v6522_v8, %v5269_v9  ;;  %3501 = vmatpush.bf16.msrb.mxu3 %v6072_v12  ;;  %v5147_v8 = vld [vmem:[#allocation7 + $0x748] sm:$0xf]  ;;  %v4636_v12 = vor.u32 %v6367_v5, %v4635_v63 }
  0xfc   :  { %v5525_v17 = vld [vmem:[#allocation7 + $0xa60] sm:$0xf0]  ;;  %v6495_v9 = vld [vmem:[#allocation7 + $0x764] sm:$0xf0] }
  0xfd   :  { %v6650_v18 = vld [vmem:[#allocation7 + $0xc44] sm:$0xf]  ;;  %v5528_v25 = vor.u32 %v6586_v15, %v5525_v17  ;;  %3463 = vmatpush.bf16.msrb.mxu0 %v5272_v24  ;;  %v4347_v15 = vld [vmem:[#allocation7 + $0x108] sm:$0xf] }
  0xfe   :  { %v5781_v21 = vld [vmem:[#allocation7 + $0xc60] sm:$0xf0]  ;;  %v6295_v17 = vld [vmem:[#allocation7 + $0x124] sm:$0xf0] }
  0xff   :  { %v6714_v22 = vld [vmem:[#allocation7 + $0xe44] sm:$0xf]  ;;  %v5784_v29 = vor.u32 %v6650_v18, %v5781_v21  ;;  %3476 = vmatpush.bf16.msrb.mxu1 %v5528_v25  ;;  %v4892_v18 = vor.u32 %v6431_v7, %v4891_v6  ;;  %v5148_v21 = vor.u32 %v6495_v9, %v5147_v8  ;;  %v6423_v24 = vld [vmem:[#allocation7 + $0x524] sm:$0xf0] }
 0x100   :  { %v6037_v23 = vld [vmem:[#allocation7 + $0xe60] sm:$0xf0]  ;;  %v5115_v25 = vld [vmem:[#allocation7 + $0x708] sm:$0xf] }
 0x101   :  { %v6514_v16 = vld [vmem:[#allocation7 + $0x804] sm:$0xf]  ;;  %v6040_v30 = vor.u32 %v6714_v22, %v6037_v23  ;;  %3489 = vmatpush.bf16.msrb.mxu2 %v5784_v29  ;;  %v4603_v22 = vld [vmem:[#allocation7 + $0x308] sm:$0xf] }
 0x102   :  { %v5237_v26 = vld [vmem:[#allocation7 + $0x820] sm:$0xf0]  ;;  %v6359_v23 = vld [vmem:[#allocation7 + $0x324] sm:$0xf0] }
 0x103   :  { %v6578_v27 = vld [vmem:[#allocation7 + $0xa04] sm:$0xf]  ;;  %v5240_v39 = vor.u32 %v6514_v16, %v5237_v26  ;;  %3502 = vmatpush.bf16.msrb.mxu3 %v6040_v30  ;;  %v4859_v16 = vld [vmem:[#allocation7 + $0x508] sm:$0xf] }
 0x104   :  { %v5493_v28 = vld [vmem:[#allocation7 + $0xa20] sm:$0xf0]  ;;  %v6487_v26 = vld [vmem:[#allocation7 + $0x724] sm:$0xf0] }
 0x105   :  { %v6642_v31 = vld [vmem:[#allocation7 + $0xc04] sm:$0xf]  ;;  %v5496_v40 = vor.u32 %v6578_v27, %v5493_v28  ;;  %3464 = vmatpush.bf16.msrb.mxu0 %v5240_v39  ;;  %v4348_v27 = vor.u32 %v6295_v17, %v4347_v15  ;;  %v4604_v28 = vor.u32 %v6359_v23, %v4603_v22  ;;  %v4315_v29 = vld [vmem:[#allocation7 + $0xc8] sm:$0xf] }
 0x106   :  { %v5749_v33 = vld [vmem:[#allocation7 + $0xc20] sm:$0xf0]  ;;  %v6287_v30 = vld [vmem:[#allocation7 + $0xe4] sm:$0xf0] }
 0x107   :  { %v6706_v4 = vld [vmem:[#allocation7 + $0xe04] sm:$0xf]  ;;  %v5752_v45 = vor.u32 %v6642_v31, %v5749_v33  ;;  %3477 = vmatpush.bf16.msrb.mxu1 %v5496_v40  ;;  %v4860_v31 = vor.u32 %v6423_v24, %v4859_v16  ;;  %v5116_v33 = vor.u32 %v6487_v26, %v5115_v25  ;;  %v5083_v36 = vld [vmem:[#allocation7 + $0x6c8] sm:$0xf]  ;;  %v4316_v38 = vor.u32 %v6287_v30, %v4315_v29 }
 0x108   :  { %v6005_v32 = vld [vmem:[#allocation7 + $0xe20] sm:$0xf0]  ;;  %3465 = vmatmul.bf16.vlgmr.msrb.gmra.mxu0 %v7040_v13  ;;  %v6479_v37 = vld [vmem:[#allocation7 + $0x6e4] sm:$0xf0] }
 0x109   :  { %v6008_v46 = vor.u32 %v6706_v4, %v6005_v32  ;;  %3490 = vmatpush.bf16.msrb.mxu2 %v5752_v45  ;;  %3509 = vmatpush.bf16.msra.mxu0 %v4444_v47  ;;  %v4571_v4 = vld [vmem:[#allocation7 + $0x2c8] sm:$0xf]  ;;  %v5084_v44 = vor.u32 %v6479_v37, %v5083_v36 }
 0x10a   :  { %3478 = vmatmul.bf16.vlgmr.msrb.gmra.mxu1 %v7042_v14  ;;  %v6351_v32 = vld [vmem:[#allocation7 + $0x2e4] sm:$0xf0] }
 0x10b   :  { %3503 = vmatpush.bf16.msrb.mxu3 %v6008_v46  ;;  %3522 = vmatpush.bf16.msra.mxu1 %v4700_v48  ;;  %v4572_v39 = vor.u32 %v6351_v32, %v4571_v4  ;;  %v4283_v40 = vld [vmem:[#allocation7 + $0x88] sm:$0xf] }
 0x10c   :  { %3491 = vmatmul.bf16.vlgmr.msrb.gmra.mxu2 %v7044_v19  ;;  %v6279_v42 = vld [vmem:[#allocation7 + $0xa4] sm:$0xf0] }
 0x10d   :  { %3535 = vmatpush.bf16.msra.mxu2 %v4956_v51  ;;  %3510 = vmatpush.bf16.msra.mxu0 %v4412_v57  ;;  %v4539_v45 = vld [vmem:[#allocation7 + $0x288] sm:$0xf]  ;;  %v4284_v51 = vor.u32 %v6279_v42, %v4283_v40 }
 0x10e   :  { %3504 = vmatmul.bf16.vlgmr.msrb.gmra.mxu3 %v7046_v20  ;;  %v6343_v46 = vld [vmem:[#allocation7 + $0x2a4] sm:$0xf0] }
 0x10f   :  { %3548 = vmatpush.bf16.msra.mxu3 %v5212_v52  ;;  %3523 = vmatpush.bf16.msra.mxu1 %v4668_v58  ;;  %v4795_v47 = vld [vmem:[#allocation7 + $0x488] sm:$0xf]  ;;  %v4540_v52 = vor.u32 %v6343_v46, %v4539_v45 }
 0x110   :  { %v6407_v48 = vld [vmem:[#allocation7 + $0x4a4] sm:$0xf0] }
 0x111   :  { %3536 = vmatpush.bf16.msra.mxu2 %v4924_v61  ;;  %3511 = vmatpush.bf16.msra.mxu0 %v4380_v10  ;;  %v5051_v49 = vld [vmem:[#allocation7 + $0x688] sm:$0xf]  ;;  %v4796_v55 = vor.u32 %v6407_v48, %v4795_v47 }
 0x112   :  { %v6471_v50 = vld [vmem:[#allocation7 + $0x6a4] sm:$0xf0] }
 0x113   :  { %3549 = vmatpush.bf16.msra.mxu3 %v5180_v62  ;;  %3524 = vmatpush.bf16.msra.mxu1 %v4636_v12  ;;  %v4251_v53 = vld [vmem:[#allocation7 + $0x48] sm:$0xf]  ;;  %v5052_v11 = vor.u32 %v6471_v50, %v5051_v49 }
 0x114   :  { %v6271_v54 = vld [vmem:[#allocation7 + $0x64] sm:$0xf0] }
 0x115   :  { %3537 = vmatpush.bf16.msra.mxu2 %v4892_v18  ;;  %3512 = vmatpush.bf16.msra.mxu0 %v4348_v27  ;;  %v4507_v41 = vld [vmem:[#allocation7 + $0x248] sm:$0xf]  ;;  %v4252_v62 = vor.u32 %v6271_v54, %v4251_v53 }
 0x116   :  { %v6335_v56 = vld [vmem:[#allocation7 + $0x264] sm:$0xf0] }
 0x117   :  { %3550 = vmatpush.bf16.msra.mxu3 %v5148_v21  ;;  %3525 = vmatpush.bf16.msra.mxu1 %v4604_v28  ;;  %v4763_v57 = vld [vmem:[#allocation7 + $0x448] sm:$0xf]  ;;  %v4508_v63 = vor.u32 %v6335_v56, %v4507_v41 }
 0x118   :  { %v6399_v58 = vld [vmem:[#allocation7 + $0x464] sm:$0xf0] }
 0x119   :  { %3538 = vmatpush.bf16.msra.mxu2 %v4860_v31  ;;  %3513 = vmatpush.bf16.msra.mxu0 %v4316_v38  ;;  %v5019_v59 = vld [vmem:[#allocation7 + $0x648] sm:$0xf]  ;;  %v4764_v8 = vor.u32 %v6399_v58, %v4763_v57 }
 0x11a   :  { %v6463_v60 = vld [vmem:[#allocation7 + $0x664] sm:$0xf0] }
 0x11b   :  { %3551 = vmatpush.bf16.msra.mxu3 %v5116_v33  ;;  %3526 = vmatpush.bf16.msra.mxu1 %v4572_v39  ;;  %v4219_v61 = vld [vmem:[#allocation7 + $0x8] sm:$0xf]  ;;  %v5020_v9 = vor.u32 %v6463_v60, %v5019_v59 }
 0x11c   :  { %v6263_v5 = vld [vmem:[#allocation7 + $0x24] sm:$0xf0] }
 0x11d   :  { %3539 = vmatpush.bf16.msra.mxu2 %v4828_v43  ;;  %3514 = vmatpush.bf16.msra.mxu0 %v4284_v51  ;;  %v4475_v6 = vld [vmem:[#allocation7 + $0x208] sm:$0xf]  ;;  %v4220_v24 = vor.u32 %v6263_v5, %v4219_v61 }
 0x11e   :  { %v6327_v7 = vld [vmem:[#allocation7 + $0x224] sm:$0xf0] }
 0x11f   :  { %3552 = vmatpush.bf16.msra.mxu3 %v5084_v44  ;;  %3527 = vmatpush.bf16.msra.mxu1 %v4540_v52  ;;  %v4731_v10 = vld [vmem:[#allocation7 + $0x408] sm:$0xf]  ;;  %v4476_v25 = vor.u32 %v6327_v7, %v4475_v6 }
 0x120   :  { %v6391_v12 = vld [vmem:[#allocation7 + $0x424] sm:$0xf0] }
 0x121   :  { %3540 = vmatpush.bf16.msra.mxu2 %v4796_v55  ;;  %v4987_v15 = vld [vmem:[#allocation7 + $0x608] sm:$0xf]  ;;  %3515 = vmatpush.bf16.msra.mxu0 %v4252_v62  ;;  %v4732_v29 = vor.u32 %v6391_v12, %v4731_v10 }
 0x122   :  { %v6455_v17 = vld [vmem:[#allocation7 + $0x624] sm:$0xf0] }
 0x123   :  { %3553 = vmatpush.bf16.msra.mxu3 %v5052_v11  ;;  %v5467_v18 = vld [vmem:[#allocation7 + $0x9c8] sm:$0xf]  ;;  %3528 = vmatpush.bf16.msra.mxu1 %v4508_v63  ;;  %v4988_v30 = vor.u32 %v6455_v17, %v4987_v15 }
 0x124   :  { %v6575_v21 = vld [vmem:[#allocation7 + $0x9e4] sm:$0xf0] }
 0x125   :  { %v5723_v22 = vld [vmem:[#allocation7 + $0xbc8] sm:$0xf]  ;;  %3541 = vmatpush.bf16.msra.mxu2 %v4764_v8  ;;  %v5468_v31 = vor.u32 %v6575_v21, %v5467_v18  ;;  %3516 = vmatpush.bf16.msra.mxu0 %v4220_v24 }
 0x126   :  { %v6639_v23 = vld [vmem:[#allocation7 + $0xbe4] sm:$0xf0] }
 0x127   :  { %v5979_v16 = vld [vmem:[#allocation7 + $0xdc8] sm:$0xf]  ;;  %3554 = vmatpush.bf16.msra.mxu3 %v5020_v9  ;;  %v5724_v33 = vor.u32 %v6639_v23, %v5723_v22  ;;  %3529 = vmatpush.bf16.msra.mxu1 %v4476_v25 }
 0x128   :  { %v6703_v26 = vld [vmem:[#allocation7 + $0xde4] sm:$0xf0]  ;;  %3517 = vmatmul.bf16.vlgmr.msra.gmra.mxu0 %v7019_v0 }
 0x129   :  { %v6235_v27 = vld [vmem:[#allocation7 + $0xfc8] sm:$0xf]  ;;  %v5980_v34 = vor.u32 %v6703_v26, %v5979_v16  ;;  %3542 = vmatpush.bf16.msra.mxu2 %v4732_v29  ;;  %3561 = vmatpush.bf16.msrb.mxu0 %v5468_v31 }
 0x12a   :  { %v6767_v28 = vld [vmem:[#allocation7 + $0xfe4] sm:$0xf0]  ;;  %3530 = vmatmul.bf16.vlgmr.msra.gmra.mxu1 %v7021_v1 }
 0x12b   :  { %v5435_v4 = vld [vmem:[#allocation7 + $0x988] sm:$0xf]  ;;  %v6236_v35 = vor.u32 %v6767_v28, %v6235_v27  ;;  %3555 = vmatpush.bf16.msra.mxu3 %v4988_v30  ;;  %3574 = vmatpush.bf16.msrb.mxu1 %v5724_v33 }
 0x12c   :  { %v6567_v32 = vld [vmem:[#allocation7 + $0x9a4] sm:$0xf0]  ;;  %3543 = vmatmul.bf16.vlgmr.msra.gmra.mxu2 %v7023_v2 }
 0x12d   :  { %v5691_v36 = vld [vmem:[#allocation7 + $0xb88] sm:$0xf]  ;;  %v5436_v43 = vor.u32 %v6567_v32, %v5435_v4  ;;  %3587 = vmatpush.bf16.msrb.mxu2 %v5980_v34 }
 0x12e   :  { %v6631_v37 = vld [vmem:[#allocation7 + $0xba4] sm:$0xf0]  ;;  %3556 = vmatmul.bf16.vlgmr.msra.gmra.mxu3 %v7025_v3 }
 0x12f   :  { %v5947_v38 = vld [vmem:[#allocation7 + $0xd88] sm:$0xf]  ;;  %v5692_v44 = vor.u32 %v6631_v37, %v5691_v36  ;;  %3600 = vmatpush.bf16.msrb.mxu3 %v6236_v35  ;;  %3562 = vmatpush.bf16.msrb.mxu0 %v5436_v43 }
 0x130   :  { %v6695_v39 = vld [vmem:[#allocation7 + $0xda4] sm:$0xf0] }
 0x131   :  { %v6203_v40 = vld [vmem:[#allocation7 + $0xf88] sm:$0xf]  ;;  %v5948_v47 = vor.u32 %v6695_v39, %v5947_v38  ;;  %3575 = vmatpush.bf16.msrb.mxu1 %v5692_v44 }
 0x132   :  { %v6759_v42 = vld [vmem:[#allocation7 + $0xfa4] sm:$0xf0] }
 0x133   :  { %v5403_v45 = vld [vmem:[#allocation7 + $0x948] sm:$0xf]  ;;  %v6204_v48 = vor.u32 %v6759_v42, %v6203_v40  ;;  %3588 = vmatpush.bf16.msrb.mxu2 %v5948_v47 }
 0x134   :  { %v6559_v46 = vld [vmem:[#allocation7 + $0x964] sm:$0xf0] }
 0x135   :  { %v5659_v49 = vld [vmem:[#allocation7 + $0xb48] sm:$0xf]  ;;  %v5404_v55 = vor.u32 %v6559_v46, %v5403_v45  ;;  %3601 = vmatpush.bf16.msrb.mxu3 %v6204_v48 }
 0x136   :  { %v6623_v50 = vld [vmem:[#allocation7 + $0xb64] sm:$0xf0] }
 0x137   :  { %v5915_v51 = vld [vmem:[#allocation7 + $0xd48] sm:$0xf]  ;;  %v5660_v11 = vor.u32 %v6623_v50, %v5659_v49  ;;  %3563 = vmatpush.bf16.msrb.mxu0 %v5404_v55 }
 0x138   :  { %v6687_v52 = vld [vmem:[#allocation7 + $0xd64] sm:$0xf0] }
 0x139   :  { %v6171_v53 = vld [vmem:[#allocation7 + $0xf48] sm:$0xf]  ;;  %v5916_v57 = vor.u32 %v6687_v52, %v5915_v51  ;;  %3576 = vmatpush.bf16.msrb.mxu1 %v5660_v11 }
 0x13a   :  { %v6751_v54 = vld [vmem:[#allocation7 + $0xf64] sm:$0xf0] }
 0x13b   :  { %v5371_v41 = vld [vmem:[#allocation7 + $0x908] sm:$0xf]  ;;  %v6172_v58 = vor.u32 %v6751_v54, %v6171_v53  ;;  %3589 = vmatpush.bf16.msrb.mxu2 %v5916_v57  ;;  %v6315_v57 = vld [vmem:[#allocation7 + $0x1cc] sm:$0xf] }
 0x13c   :  { %v6551_v56 = vld [vmem:[#allocation7 + $0x924] sm:$0xf0] }
 0x13d   :  { %v5627_v59 = vld [vmem:[#allocation7 + $0xb08] sm:$0xf]  ;;  %v5372_v6 = vor.u32 %v6551_v56, %v5371_v41  ;;  %3602 = vmatpush.bf16.msrb.mxu3 %v6172_v58  ;;  %v4445_v58 = vld [vmem:[#allocation7 + $0x1e8] sm:$0xf0] }
 0x13e   :  { %v6615_v60 = vld [vmem:[#allocation7 + $0xb24] sm:$0xf0] }
 0x13f   :  { %v5883_v61 = vld [vmem:[#allocation7 + $0xd08] sm:$0xf]  ;;  %v5628_v7 = vor.u32 %v6615_v60, %v5627_v59  ;;  %3564 = vmatpush.bf16.msrb.mxu0 %v5372_v6  ;;  %v6379_v59 = vld [vmem:[#allocation7 + $0x3cc] sm:$0xf] }
 0x140   :  { %v6679_v62 = vld [vmem:[#allocation7 + $0xd24] sm:$0xf0]  ;;  %v4701_v60 = vld [vmem:[#allocation7 + $0x3e8] sm:$0xf0] }
 0x141   :  { %v6139_v63 = vld [vmem:[#allocation7 + $0xf08] sm:$0xf]  ;;  %v5884_v10 = vor.u32 %v6679_v62, %v5883_v61  ;;  %3577 = vmatpush.bf16.msrb.mxu1 %v5628_v7  ;;  %v6443_v61 = vld [vmem:[#allocation7 + $0x5cc] sm:$0xf] }
 0x142   :  { %v6743_v5 = vld [vmem:[#allocation7 + $0xf24] sm:$0xf0]  ;;  %v6507_v6 = vld [vmem:[#allocation7 + $0x7cc] sm:$0xf] }
 0x143   :  { %v5339_v8 = vld [vmem:[#allocation7 + $0x8c8] sm:$0xf]  ;;  %v6140_v12 = vor.u32 %v6743_v5, %v6139_v63  ;;  %3590 = vmatpush.bf16.msrb.mxu2 %v5884_v10  ;;  %v4957_v5 = vld [vmem:[#allocation7 + $0x5e8] sm:$0xf0]  ;;  %v4448_v10 = vor.u32 %v6315_v57, %v4445_v58 }
 0x144   :  { %v6543_v9 = vld [vmem:[#allocation7 + $0x8e4] sm:$0xf0]  ;;  %v5213_v7 = vld [vmem:[#allocation7 + $0x7e8] sm:$0xf0] }
 0x145   :  { %v5595_v15 = vld [vmem:[#allocation7 + $0xac8] sm:$0xf]  ;;  %v5340_v16 = vor.u32 %v6543_v9, %v5339_v8  ;;  %3603 = vmatpush.bf16.msrb.mxu3 %v6140_v12  ;;  %v4704_v12 = vor.u32 %v6379_v59, %v4701_v60  ;;  %v6283_v57 = vld [vmem:[#allocation7 + $0xcc] sm:$0xf] }
 0x146   :  { %v6607_v17 = vld [vmem:[#allocation7 + $0xae4] sm:$0xf0]  ;;  %v4317_v58 = vld [vmem:[#allocation7 + $0xe8] sm:$0xf0] }
 0x147   :  { %v5851_v18 = vld [vmem:[#allocation7 + $0xcc8] sm:$0xf]  ;;  %v5596_v24 = vor.u32 %v6607_v17, %v5595_v15  ;;  %3565 = vmatpush.bf16.msrb.mxu0 %v5340_v16  ;;  %v6307_v15 = vld [vmem:[#allocation7 + $0x18c] sm:$0xf] }
 0x148   :  { %v6671_v21 = vld [vmem:[#allocation7 + $0xce4] sm:$0xf0]  ;;  %v4413_v17 = vld [vmem:[#allocation7 + $0x1a8] sm:$0xf0] }
 0x149   :  { %v6107_v22 = vld [vmem:[#allocation7 + $0xec8] sm:$0xf]  ;;  %v5852_v27 = vor.u32 %v6671_v21, %v5851_v18  ;;  %3578 = vmatpush.bf16.msrb.mxu1 %v5596_v24  ;;  %v6371_v18 = vld [vmem:[#allocation7 + $0x38c] sm:$0xf]  ;;  %v4960_v21 = vor.u32 %v6443_v61, %v4957_v5  ;;  %v7064_v24 = vld [vmem:[#allocation8] sm:$0xff]  ;;  %v3336_v5 = vpop.f32.mrf.mxu2 }
 0x14a   :  { %v6735_v23 = vld [vmem:[#allocation7 + $0xee4] sm:$0xf0]  ;;  %v6435_v16 = vld [vmem:[#allocation7 + $0x58c] sm:$0xf] }
 0x14b   :  { %v5307_v25 = vld [vmem:[#allocation7 + $0x888] sm:$0xf]  ;;  %v6108_v28 = vor.u32 %v6735_v23, %v6107_v22  ;;  %3591 = vmatpush.bf16.msrb.mxu2 %v5852_v27  ;;  %v5216_v22 = vor.u32 %v6507_v6, %v5213_v7  ;;  %v4669_v23 = vld [vmem:[#allocation7 + $0x3a8] sm:$0xf0]  ;;  %v3349_v6 = vpop.f32.mrf.mxu3 }
 0x14c   :  { %v6535_v26 = vld [vmem:[#allocation7 + $0x8a4] sm:$0xf0]  ;;  %v5181_v27 = vld [vmem:[#allocation7 + $0x7a8] sm:$0xf0] }
 0x14d   :  { %v5563_v29 = vld [vmem:[#allocation7 + $0xa88] sm:$0xf]  ;;  %v5308_v34 = vor.u32 %v6535_v26, %v5307_v25  ;;  %3604 = vmatpush.bf16.msrb.mxu3 %v6108_v28  ;;  %v4925_v25 = vld [vmem:[#allocation7 + $0x5a8] sm:$0xf0]  ;;  %v4416_v28 = vor.u32 %v6307_v15, %v4413_v17  ;;  %v4320_v17 = vor.u32 %v6283_v57, %v4317_v58 }
 0x14e   :  { %v6599_v30 = vld [vmem:[#allocation7 + $0xaa4] sm:$0xf0]  ;;  %v6499_v26 = vld [vmem:[#allocation7 + $0x78c] sm:$0xf] }
 0x14f   :  { %v5819_v31 = vld [vmem:[#allocation7 + $0xc88] sm:$0xf]  ;;  %v5564_v35 = vor.u32 %v6599_v30, %v5563_v29  ;;  %3566 = vmatpush.bf16.msrb.mxu0 %v5308_v34  ;;  %v4672_v29 = vor.u32 %v6371_v18, %v4669_v23  ;;  %v6299_v30 = vld [vmem:[#allocation7 + $0x14c] sm:$0xf] }
 0x150   :  { %v6663_v33 = vld [vmem:[#allocation7 + $0xca4] sm:$0xf0]  ;;  %v6363_v34 = vld [vmem:[#allocation7 + $0x34c] sm:$0xf] }
 0x151   :  { %v6075_v4 = vld [vmem:[#allocation7 + $0xe88] sm:$0xf]  ;;  %v5820_v38 = vor.u32 %v6663_v33, %v5819_v31  ;;  %3579 = vmatpush.bf16.msrb.mxu1 %v5564_v35  ;;  %v4381_v31 = vld [vmem:[#allocation7 + $0x168] sm:$0xf0]  ;;  %v725_v33 = vperm.slane %v7064_v24, 0 }
 0x152   :  { %v6727_v32 = vld [vmem:[#allocation7 + $0xea4] sm:$0xf0]  ;;  %v4637_v35 = vld [vmem:[#allocation7 + $0x368] sm:$0xf0] }
 0x153   :  { %v5275_v36 = vld [vmem:[#allocation7 + $0x848] sm:$0xf]  ;;  %v6076_v39 = vor.u32 %v6727_v32, %v6075_v4  ;;  %3592 = vmatpush.bf16.msrb.mxu2 %v5820_v38  ;;  %v4928_v4 = vor.u32 %v6435_v16, %v4925_v25  ;;  %v5184_v32 = vor.u32 %v6499_v26, %v5181_v27  ;;  %v6491_v38 = vld [vmem:[#allocation7 + $0x74c] sm:$0xf] }
 0x154   :  { %v6527_v37 = vld [vmem:[#allocation7 + $0x864] sm:$0xf0]  ;;  %v6347_v61 = vld [vmem:[#allocation7 + $0x2cc] sm:$0xf] }
 0x155   :  { %v5531_v40 = vld [vmem:[#allocation7 + $0xa48] sm:$0xf]  ;;  %v5276_v48 = vor.u32 %v6527_v37, %v5275_v36  ;;  %3605 = vmatpush.bf16.msrb.mxu3 %v6076_v39  ;;  %v6427_v36 = vld [vmem:[#allocation7 + $0x54c] sm:$0xf] }
 0x156   :  { %v6591_v42 = vld [vmem:[#allocation7 + $0xa64] sm:$0xf0]  ;;  %v4893_v37 = vld [vmem:[#allocation7 + $0x568] sm:$0xf0] }
 0x157   :  { %v5787_v43 = vld [vmem:[#allocation7 + $0xc48] sm:$0xf]  ;;  %v5532_v49 = vor.u32 %v6591_v42, %v5531_v40  ;;  %3567 = vmatpush.bf16.msrb.mxu0 %v5276_v48  ;;  %v5149_v39 = vld [vmem:[#allocation7 + $0x768] sm:$0xf0]  ;;  %v3310_v40 = vpop.f32.mrf.mxu0  ;;  %v3323_v42 = vpop.f32.mrf.mxu1  ;;  %v4896_v48 = vor.u32 %v6427_v36, %v4893_v37 }
 0x158   :  { %v6655_v44 = vld [vmem:[#allocation7 + $0xc64] sm:$0xf0]  ;;  %v4829_v7 = vld [vmem:[#allocation7 + $0x4e8] sm:$0xf0] }
 0x159   :  { %v6043_v45 = vld [vmem:[#allocation7 + $0xe48] sm:$0xf]  ;;  %v5788_v53 = vor.u32 %v6655_v44, %v5787_v43  ;;  %3580 = vmatpush.bf16.msrb.mxu1 %v5532_v49  ;;  %v4384_v43 = vor.u32 %v6299_v30, %v4381_v31  ;;  %v4640_v44 = vor.u32 %v6363_v34, %v4637_v35  ;;  %v5152_v49 = vor.u32 %v6491_v38, %v5149_v39  ;;  %v6339_v26 = vld [vmem:[#allocation7 + $0x28c] sm:$0xf] }
 0x15a   :  { %v6719_v46 = vld [vmem:[#allocation7 + $0xe64] sm:$0xf0]  ;;  %v4541_v27 = vld [vmem:[#allocation7 + $0x2a8] sm:$0xf0] }
 0x15b   :  { %v5243_v47 = vld [vmem:[#allocation7 + $0x808] sm:$0xf]  ;;  %v6044_v54 = vor.u32 %v6719_v46, %v6043_v45  ;;  %3593 = vmatpush.bf16.msrb.mxu2 %v5788_v53  ;;  %v3311_v45 = vadd.f32 %v3310_v40, %v725_v33  ;;  %v6291_v46 = vld [vmem:[#allocation7 + $0x10c] sm:$0xf]  ;;  %v3338_v40 = vpop.f32.mrf.mxu2 }
 0x15c   :  { %v6519_v50 = vld [vmem:[#allocation7 + $0x824] sm:$0xf0]  ;;  %v6467_v30 = vld [vmem:[#allocation7 + $0x68c] sm:$0xf] }
 0x15d   :  { %v5499_v51 = vld [vmem:[#allocation7 + $0xa08] sm:$0xf]  ;;  %v5244_v62 = vor.u32 %v6519_v50, %v5243_v47  ;;  %3606 = vmatpush.bf16.msrb.mxu3 %v6044_v54  ;;  %v4349_v47 = vld [vmem:[#allocation7 + $0x128] sm:$0xf0]  ;;  %v3324_v53 = vadd.f32 %v3323_v42, %v3311_v45  ;;  %v3351_v42 = vpop.f32.mrf.mxu3 }
 0x15e   :  { %v6583_v52 = vld [vmem:[#allocation7 + $0xa24] sm:$0xf0]  ;;  %v6355_v50 = vld [vmem:[#allocation7 + $0x30c] sm:$0xf] }
 0x15f   :  { %v5755_v55 = vld [vmem:[#allocation7 + $0xc08] sm:$0xf]  ;;  %v5500_v63 = vor.u32 %v6583_v52, %v5499_v51  ;;  %3568 = vmatpush.bf16.msrb.mxu0 %v5244_v62  ;;  %v4605_v51 = vld [vmem:[#allocation7 + $0x328] sm:$0xf0]  ;;  %v3325_v15 = vpop.f32.mrf.mxu1 }
 0x160   :  { %v6647_v11 = vld [vmem:[#allocation7 + $0xc24] sm:$0xf0]  ;;  %v6419_v52 = vld [vmem:[#allocation7 + $0x50c] sm:$0xf] }
 0x161   :  { %v6011_v41 = vld [vmem:[#allocation7 + $0xe08] sm:$0xf]  ;;  %v5756_v8 = vor.u32 %v6647_v11, %v5755_v55  ;;  %3581 = vmatpush.bf16.msrb.mxu1 %v5500_v63  ;;  %v4861_v54 = vld [vmem:[#allocation7 + $0x528] sm:$0xf0] }
 0x162   :  { %v6711_v56 = vld [vmem:[#allocation7 + $0xe24] sm:$0xf0]  ;;  %3569 = vmatmul.bf16.vlgmr.msrb.gmra.mxu0 %v7040_v13  ;;  %v6483_v55 = vld [vmem:[#allocation7 + $0x70c] sm:$0xf]  ;;  %v4864_v59 = vor.u32 %v6419_v52, %v4861_v54 }
 0x163   :  { %v6012_v9 = vor.u32 %v6711_v56, %v6011_v41  ;;  %3594 = vmatpush.bf16.msrb.mxu2 %v5756_v8  ;;  %3613 = vmatpush.bf16.msra.mxu0 %v4448_v10  ;;  %v5117_v11 = vld [vmem:[#allocation7 + $0x728] sm:$0xf0]  ;;  %v4352_v41 = vor.u32 %v6291_v46, %v4349_v47  ;;  %v4608_v56 = vor.u32 %v6355_v50, %v4605_v51 }
 0x164   :  { %3582 = vmatmul.bf16.vlgmr.msrb.gmra.mxu1 %v7042_v14  ;;  %v5120_v60 = vor.u32 %v6483_v55, %v5117_v11  ;;  %v4573_v62 = vld [vmem:[#allocation7 + $0x2e8] sm:$0xf0]  ;;  %v3337_v10 = vadd.f32 %v3336_v5, %v3324_v53 }
 0x165   :  { %3607 = vmatpush.bf16.msrb.mxu3 %v6012_v9  ;;  %3626 = vmatpush.bf16.msra.mxu1 %v4704_v12  ;;  %v6411_v63 = vld [vmem:[#allocation7 + $0x4cc] sm:$0xf]  ;;  %v3312_v12 = vpop.f32.mrf.mxu0  ;;  %v4576_v18 = vor.u32 %v6347_v61, %v4573_v62 }
 0x166   :  { %3595 = vmatmul.bf16.vlgmr.msrb.gmra.mxu2 %v7044_v19  ;;  %v6475_v8 = vld [vmem:[#allocation7 + $0x6cc] sm:$0xf]  ;;  %v3350_v23 = vadd.f32 %v3349_v6, %v3337_v10  ;;  %v4832_v16 = vor.u32 %v6411_v63, %v4829_v7 }
 0x167   :  { %3639 = vmatpush.bf16.msra.mxu2 %v4960_v21  ;;  %3614 = vmatpush.bf16.msra.mxu0 %v4416_v28  ;;  %v5085_v9 = vld [vmem:[#allocation7 + $0x6e8] sm:$0xf0]  ;;  %v3375_v47 = vpop.f32.mrf.mxu1 }
 0x168   :  { %3608 = vmatmul.bf16.vlgmr.msrb.gmra.mxu3 %v7046_v20  ;;  %v6275_v21 = vld [vmem:[#allocation7 + $0x8c] sm:$0xf]  ;;  %v5088_v25 = vor.u32 %v6475_v8, %v5085_v9 }
 0x169   :  { %3652 = vmatpush.bf16.msra.mxu3 %v5216_v22  ;;  %3627 = vmatpush.bf16.msra.mxu1 %v4672_v29  ;;  %v4285_v22 = vld [vmem:[#allocation7 + $0xa8] sm:$0xf0] }
 0x16a   :  { %v6403_v28 = vld [vmem:[#allocation7 + $0x48c] sm:$0xf]  ;;  %v4288_v33 = vor.u32 %v6275_v21, %v4285_v22  ;;  %v3388_v21 = vpop.f32.mrf.mxu2  ;;  %v3401_v22 = vpop.f32.mrf.mxu3 }
 0x16b   :  { %3640 = vmatpush.bf16.msra.mxu2 %v4928_v4  ;;  %3615 = vmatpush.bf16.msra.mxu0 %v4384_v43  ;;  %v4797_v29 = vld [vmem:[#allocation7 + $0x4a8] sm:$0xf0]  ;;  %v4544_v4 = vor.u32 %v6339_v26, %v4541_v27 }
 0x16c   :  { %v5053_v31 = vld [vmem:[#allocation7 + $0x6a8] sm:$0xf0]  ;;  %v4800_v35 = vor.u32 %v6403_v28, %v4797_v29 }
 0x16d   :  { %3653 = vmatpush.bf16.msra.mxu3 %v5184_v32  ;;  %3628 = vmatpush.bf16.msra.mxu1 %v4640_v44  ;;  %v6267_v32 = vld [vmem:[#allocation7 + $0x4c] sm:$0xf]  ;;  %v5056_v36 = vor.u32 %v6467_v30, %v5053_v31  ;;  %v3362_v46 = vpop.f32.mrf.mxu0 }
 0x16e   :  { %v4253_v34 = vld [vmem:[#allocation7 + $0x68] sm:$0xf0]  ;;  %v3363_v51 = vadd.f32 %v3362_v46, %v3350_v23 }
 0x16f   :  { %3641 = vmatpush.bf16.msra.mxu2 %v4896_v48  ;;  %3616 = vmatpush.bf16.msra.mxu0 %v4352_v41  ;;  %v6331_v37 = vld [vmem:[#allocation7 + $0x24c] sm:$0xf]  ;;  %v3377_v29 = vpop.f32.mrf.mxu1 }
 0x170   :  { %v4509_v38 = vld [vmem:[#allocation7 + $0x268] sm:$0xf0]  ;;  %v3376_v58 = vadd.f32 %v3375_v47, %v3363_v51 }
 0x171   :  { %3654 = vmatpush.bf16.msra.mxu3 %v5152_v49  ;;  %3629 = vmatpush.bf16.msra.mxu1 %v4608_v56  ;;  %v6395_v39 = vld [vmem:[#allocation7 + $0x44c] sm:$0xf]  ;;  %v4256_v49 = vor.u32 %v6267_v32, %v4253_v34  ;;  %v4512_v50 = vor.u32 %v6331_v37, %v4509_v38 }
 0x172   :  { %v4765_v43 = vld [vmem:[#allocation7 + $0x468] sm:$0xf0]  ;;  %v3389_v27 = vadd.f32 %v3388_v21, %v3376_v58  ;;  %v3390_v51 = vpop.f32.mrf.mxu2 }
 0x173   :  { %3642 = vmatpush.bf16.msra.mxu2 %v4864_v59  ;;  %3617 = vmatpush.bf16.msra.mxu0 %v4320_v17  ;;  %v6459_v44 = vld [vmem:[#allocation7 + $0x64c] sm:$0xf]  ;;  %v4768_v55 = vor.u32 %v6395_v39, %v4765_v43 }
 0x174   :  { %v5021_v45 = vld [vmem:[#allocation7 + $0x668] sm:$0xf0] }
 0x175   :  { %3655 = vmatpush.bf16.msra.mxu3 %v5120_v60  ;;  %3630 = vmatpush.bf16.msra.mxu1 %v4576_v18  ;;  %v6259_v48 = vld [vmem:[#allocation7 + $0xc] sm:$0xf]  ;;  %v5024_v11 = vor.u32 %v6459_v44, %v5021_v45  ;;  %v3364_v28 = vpop.f32.mrf.mxu0 }
 0x176   :  { %v4221_v52 = vld [vmem:[#allocation7 + $0x28] sm:$0xf0] }
 0x177   :  { %3643 = vmatpush.bf16.msra.mxu2 %v4832_v16  ;;  %3618 = vmatpush.bf16.msra.mxu0 %v4288_v33  ;;  %v6323_v53 = vld [vmem:[#allocation7 + $0x20c] sm:$0xf]  ;;  %v4224_v6 = vor.u32 %v6259_v48, %v4221_v52  ;;  %v3403_v52 = vpop.f32.mrf.mxu3 }
 0x178   :  { %v4477_v54 = vld [vmem:[#allocation7 + $0x228] sm:$0xf0] }
 0x179   :  { %3656 = vmatpush.bf16.msra.mxu3 %v5088_v25  ;;  %3631 = vmatpush.bf16.msra.mxu1 %v4544_v4  ;;  %v6387_v41 = vld [vmem:[#allocation7 + $0x40c] sm:$0xf]  ;;  %v4480_v7 = vor.u32 %v6323_v53, %v4477_v54  ;;  %v726_v53 = vperm.slane %v7064_v24, 1 }
 0x17a   :  { %v4733_v56 = vld [vmem:[#allocation7 + $0x428] sm:$0xf0] }
 0x17b   :  { %3644 = vmatpush.bf16.msra.mxu2 %v4800_v35  ;;  %v6451_v57 = vld [vmem:[#allocation7 + $0x60c] sm:$0xf]  ;;  %3619 = vmatpush.bf16.msra.mxu0 %v4256_v49  ;;  %v4736_v12 = vor.u32 %v6387_v41, %v4733_v56  ;;  %v7071_v35 = vadd.f32 %v3401_v22, %v3389_v27 }
 0x17c   :  { %v4989_v59 = vld [vmem:[#allocation7 + $0x628] sm:$0xf0] }
 0x17d   :  { %3657 = vmatpush.bf16.msra.mxu3 %v5056_v36  ;;  %v6571_v60 = vld [vmem:[#allocation7 + $0x9cc] sm:$0xf]  ;;  %3632 = vmatpush.bf16.msra.mxu1 %v4512_v50  ;;  %v4992_v15 = vor.u32 %v6451_v57, %v4989_v59 }
 0x17e   :  { %v5469_v61 = vld [vmem:[#allocation7 + $0x9e8] sm:$0xf0] }
 0x17f   :  { %v6635_v62 = vld [vmem:[#allocation7 + $0xbcc] sm:$0xf]  ;;  %3645 = vmatpush.bf16.msra.mxu2 %v4768_v55  ;;  %v5472_v17 = vor.u32 %v6571_v60, %v5469_v61  ;;  %3620 = vmatpush.bf16.msra.mxu0 %v4224_v6 }
 0x180   :  { %v5725_v63 = vld [vmem:[#allocation7 + $0xbe8] sm:$0xf0] }
 0x181   :  { %v6699_v5 = vld [vmem:[#allocation7 + $0xdcc] sm:$0xf]  ;;  %3658 = vmatpush.bf16.msra.mxu3 %v5024_v11  ;;  %v5728_v18 = vor.u32 %v6635_v62, %v5725_v63  ;;  %3633 = vmatpush.bf16.msra.mxu1 %v4480_v7  ;;  %v3414_v62 = vpop.f32.mrf.mxu0  ;;  %v3427_v63 = vpop.f32.mrf.mxu1 }
 0x182   :  { %v5981_v8 = vld [vmem:[#allocation7 + $0xde8] sm:$0xf0]  ;;  %3621 = vmatmul.bf16.vlgmr.msra.gmra.mxu0 %v7019_v0 }
 0x183   :  { %v6763_v9 = vld [vmem:[#allocation7 + $0xfcc] sm:$0xf]  ;;  %v5984_v25 = vor.u32 %v6699_v5, %v5981_v8  ;;  %3646 = vmatpush.bf16.msra.mxu2 %v4736_v12  ;;  %3665 = vmatpush.bf16.msrb.mxu0 %v5472_v17  ;;  %v3415_v5 = vadd.f32 %v3414_v62, %v726_v53 }
 0x184   :  { %v6237_v10 = vld [vmem:[#allocation7 + $0xfe8] sm:$0xf0]  ;;  %3634 = vmatmul.bf16.vlgmr.msra.gmra.mxu1 %v7021_v1 }
 0x185   :  { %v6563_v23 = vld [vmem:[#allocation7 + $0x98c] sm:$0xf]  ;;  %v6240_v26 = vor.u32 %v6763_v9, %v6237_v10  ;;  %3659 = vmatpush.bf16.msra.mxu3 %v4992_v15  ;;  %3678 = vmatpush.bf16.msrb.mxu1 %v5728_v18  ;;  %v3428_v21 = vadd.f32 %v3427_v63, %v3415_v5 }
 0x186   :  { %v5437_v16 = vld [vmem:[#allocation7 + $0x9a8] sm:$0xf0]  ;;  %3647 = vmatmul.bf16.vlgmr.msra.gmra.mxu2 %v7023_v2 }
 0x187   :  { %v6627_v30 = vld [vmem:[#allocation7 + $0xb8c] sm:$0xf]  ;;  %v5440_v36 = vor.u32 %v6563_v23, %v5437_v16  ;;  %3691 = vmatpush.bf16.msrb.mxu2 %v5984_v25 }
 0x188   :  { %v5693_v31 = vld [vmem:[#allocation7 + $0xba8] sm:$0xf0]  ;;  %3660 = vmatmul.bf16.vlgmr.msra.gmra.mxu3 %v7025_v3 }
 0x189   :  { %v6691_v33 = vld [vmem:[#allocation7 + $0xd8c] sm:$0xf]  ;;  %v5696_v37 = vor.u32 %v6627_v30, %v5693_v31  ;;  %3704 = vmatpush.bf16.msrb.mxu3 %v6240_v26  ;;  %3666 = vmatpush.bf16.msrb.mxu0 %v5440_v36 }
 0x18a   :  { %v5949_v4 = vld [vmem:[#allocation7 + $0xda8] sm:$0xf0] }
 0x18b   :  { %v6755_v32 = vld [vmem:[#allocation7 + $0xf8c] sm:$0xf]  ;;  %v5952_v40 = vor.u32 %v6691_v33, %v5949_v4  ;;  %3679 = vmatpush.bf16.msrb.mxu1 %v5696_v37 }
 0x18c   :  { %v6205_v34 = vld [vmem:[#allocation7 + $0xfa8] sm:$0xf0] }
 0x18d   :  { %v6555_v38 = vld [vmem:[#allocation7 + $0x94c] sm:$0xf]  ;;  %v6208_v42 = vor.u32 %v6755_v32, %v6205_v34  ;;  %3692 = vmatpush.bf16.msrb.mxu2 %v5952_v40  ;;  %v3440_v32 = vpop.f32.mrf.mxu2  ;;  %v3453_v34 = vpop.f32.mrf.mxu3 }
 0x18e   :  { %v5405_v39 = vld [vmem:[#allocation7 + $0x968] sm:$0xf0]  ;;  %v3416_v40 = vpop.f32.mrf.mxu0 }
 0x18f   :  { %v6619_v43 = vld [vmem:[#allocation7 + $0xb4c] sm:$0xf]  ;;  %v5408_v49 = vor.u32 %v6555_v38, %v5405_v39  ;;  %3705 = vmatpush.bf16.msrb.mxu3 %v6208_v42  ;;  %v3441_v39 = vadd.f32 %v3440_v32, %v3428_v21  ;;  %v3429_v42 = vpop.f32.mrf.mxu1  ;;  %v6376_v32 = vld [vmem:[#allocation7 + $0x3ac] sm:$0xf0] }
 0x190   :  { %v5661_v44 = vld [vmem:[#allocation7 + $0xb68] sm:$0xf0]  ;;  %v4387_v42 = vld [vmem:[#allocation7 + $0x150] sm:$0xf] }
 0x191   :  { %v6683_v45 = vld [vmem:[#allocation7 + $0xd4c] sm:$0xf]  ;;  %v5664_v50 = vor.u32 %v6619_v43, %v5661_v44  ;;  %3667 = vmatpush.bf16.msrb.mxu0 %v5408_v49 }
 0x192   :  { %v5917_v46 = vld [vmem:[#allocation7 + $0xd68] sm:$0xf0] }
 0x193   :  { %v6747_v47 = vld [vmem:[#allocation7 + $0xf4c] sm:$0xf]  ;;  %v5920_v11 = vor.u32 %v6683_v45, %v5917_v46  ;;  %3680 = vmatpush.bf16.msrb.mxu1 %v5664_v50 }
 0x194   :  { %v6173_v48 = vld [vmem:[#allocation7 + $0xf68] sm:$0xf0] }
 0x195   :  { %v6547_v54 = vld [vmem:[#allocation7 + $0x90c] sm:$0xf]  ;;  %v6176_v41 = vor.u32 %v6747_v47, %v6173_v48  ;;  %3693 = vmatpush.bf16.msrb.mxu2 %v5920_v11  ;;  %v7078_v47 = vadd.f32 %v3453_v34, %v3441_v39  ;;  %v4931_v34 = vld [vmem:[#allocation7 + $0x590] sm:$0xf] }
 0x196   :  { %v5373_v55 = vld [vmem:[#allocation7 + $0x928] sm:$0xf0] }
 0x197   :  { %v6611_v56 = vld [vmem:[#allocation7 + $0xb0c] sm:$0xf]  ;;  %v5376_v6 = vor.u32 %v6547_v54, %v5373_v55  ;;  %3706 = vmatpush.bf16.msrb.mxu3 %v6176_v41 }
 0x198   :  { %v5629_v57 = vld [vmem:[#allocation7 + $0xb28] sm:$0xf0] }
 0x199   :  { %v6675_v58 = vld [vmem:[#allocation7 + $0xd0c] sm:$0xf]  ;;  %v5632_v7 = vor.u32 %v6611_v56, %v5629_v57  ;;  %3668 = vmatpush.bf16.msrb.mxu0 %v5376_v6  ;;  %v3442_v6 = vpop.f32.mrf.mxu2 }
 0x19a   :  { %v5885_v59 = vld [vmem:[#allocation7 + $0xd28] sm:$0xf0] }
 0x19b   :  { %v6739_v60 = vld [vmem:[#allocation7 + $0xf0c] sm:$0xf]  ;;  %v5888_v10 = vor.u32 %v6675_v58, %v5885_v59  ;;  %3681 = vmatpush.bf16.msrb.mxu1 %v5632_v7  ;;  %v3455_v7 = vpop.f32.mrf.mxu3 }
 0x19c   :  { %v6141_v61 = vld [vmem:[#allocation7 + $0xf28] sm:$0xf0] }
 0x19d   :  { %v6539_v8 = vld [vmem:[#allocation7 + $0x8cc] sm:$0xf]  ;;  %v6144_v12 = vor.u32 %v6739_v60, %v6141_v61  ;;  %3694 = vmatpush.bf16.msrb.mxu2 %v5888_v10  ;;  %v6320_v10 = vld [vmem:[#allocation7 + $0x1ec] sm:$0xf0] }
 0x19e   :  { %v5341_v9 = vld [vmem:[#allocation7 + $0x8e8] sm:$0xf0] }
 0x19f   :  { %v6603_v15 = vld [vmem:[#allocation7 + $0xacc] sm:$0xf]  ;;  %v5344_v25 = vor.u32 %v6539_v8, %v5341_v9  ;;  %3707 = vmatpush.bf16.msrb.mxu3 %v6144_v12  ;;  %v4451_v9 = vld [vmem:[#allocation7 + $0x1d0] sm:$0xf] }
 0x1a0   :  { %v5597_v17 = vld [vmem:[#allocation7 + $0xae8] sm:$0xf0]  ;;  %v4707_v12 = vld [vmem:[#allocation7 + $0x3d0] sm:$0xf] }
 0x1a1   :  { %v6667_v18 = vld [vmem:[#allocation7 + $0xccc] sm:$0xf]  ;;  %v5600_v26 = vor.u32 %v6603_v15, %v5597_v17  ;;  %3669 = vmatpush.bf16.msrb.mxu0 %v5344_v25  ;;  %v6384_v15 = vld [vmem:[#allocation7 + $0x3ec] sm:$0xf0] }
 0x1a2   :  { %v5853_v22 = vld [vmem:[#allocation7 + $0xce8] sm:$0xf0]  ;;  %v4963_v17 = vld [vmem:[#allocation7 + $0x5d0] sm:$0xf] }
 0x1a3   :  { %v6731_v23 = vld [vmem:[#allocation7 + $0xecc] sm:$0xf]  ;;  %v5856_v29 = vor.u32 %v6667_v18, %v5853_v22  ;;  %3682 = vmatpush.bf16.msrb.mxu1 %v5600_v26  ;;  %v6448_v22 = vld [vmem:[#allocation7 + $0x5ec] sm:$0xf0] }
 0x1a4   :  { %v6109_v16 = vld [vmem:[#allocation7 + $0xee8] sm:$0xf0] }
 0x1a5   :  { %v6531_v27 = vld [vmem:[#allocation7 + $0x88c] sm:$0xf]  ;;  %v6112_v30 = vor.u32 %v6731_v23, %v6109_v16  ;;  %3695 = vmatpush.bf16.msrb.mxu2 %v5856_v29  ;;  %v5219_v23 = vld [vmem:[#allocation7 + $0x7d0] sm:$0xf] }
 0x1a6   :  { %v5309_v28 = vld [vmem:[#allocation7 + $0x8a8] sm:$0xf0]  ;;  %v6512_v16 = vld [vmem:[#allocation7 + $0x7ec] sm:$0xf0] }
 0x1a7   :  { %v6595_v31 = vld [vmem:[#allocation7 + $0xa8c] sm:$0xf]  ;;  %v5312_v43 = vor.u32 %v6531_v27, %v5309_v28  ;;  %3708 = vmatpush.bf16.msrb.mxu3 %v6112_v30  ;;  %v4452_v27 = vor.u32 %v6320_v10, %v4451_v9  ;;  %v4708_v28 = vor.u32 %v6384_v15, %v4707_v12  ;;  %v4419_v29 = vld [vmem:[#allocation7 + $0x190] sm:$0xf] }
 0x1a8   :  { %v5565_v33 = vld [vmem:[#allocation7 + $0xaa8] sm:$0xf0]  ;;  %v6312_v30 = vld [vmem:[#allocation7 + $0x1ac] sm:$0xf0] }
 0x1a9   :  { %v6659_v4 = vld [vmem:[#allocation7 + $0xc8c] sm:$0xf]  ;;  %v5568_v44 = vor.u32 %v6595_v31, %v5565_v33  ;;  %3670 = vmatpush.bf16.msrb.mxu0 %v5312_v43  ;;  %v4964_v31 = vor.u32 %v6448_v22, %v4963_v17  ;;  %v5220_v33 = vor.u32 %v6512_v16, %v5219_v23  ;;  %v4420_v39 = vor.u32 %v6312_v30, %v4419_v29  ;;  %v6304_v43 = vld [vmem:[#allocation7 + $0x16c] sm:$0xf0] }
 0x1aa   :  { %v5821_v36 = vld [vmem:[#allocation7 + $0xca8] sm:$0xf0]  ;;  %v4323_v9 = vld [vmem:[#allocation7 + $0xd0] sm:$0xf] }
 0x1ab   :  { %v6723_v37 = vld [vmem:[#allocation7 + $0xe8c] sm:$0xf]  ;;  %v5824_v48 = vor.u32 %v6659_v4, %v5821_v36  ;;  %3683 = vmatpush.bf16.msrb.mxu1 %v5568_v44  ;;  %v4675_v4 = vld [vmem:[#allocation7 + $0x390] sm:$0xf] }
 0x1ac   :  { %v6077_v38 = vld [vmem:[#allocation7 + $0xea8] sm:$0xf0]  ;;  %v6440_v36 = vld [vmem:[#allocation7 + $0x5ac] sm:$0xf0]  ;;  %v4676_v40 = vor.u32 %v6376_v32, %v4675_v4 }
 0x1ad   :  { %v6523_v45 = vld [vmem:[#allocation7 + $0x84c] sm:$0xf]  ;;  %v6080_v49 = vor.u32 %v6723_v37, %v6077_v38  ;;  %3696 = vmatpush.bf16.msrb.mxu2 %v5824_v48  ;;  %v5187_v37 = vld [vmem:[#allocation7 + $0x790] sm:$0xf]  ;;  %v4932_v44 = vor.u32 %v6440_v36, %v4931_v34  ;;  %v3492_v34 = vpop.f32.mrf.mxu2  ;;  %v3505_v36 = vpop.f32.mrf.mxu3 }
 0x1ae   :  { %v5277_v46 = vld [vmem:[#allocation7 + $0x868] sm:$0xf0]  ;;  %v6504_v38 = vld [vmem:[#allocation7 + $0x7ac] sm:$0xf0] }
 0x1af   :  { %v6587_v50 = vld [vmem:[#allocation7 + $0xa4c] sm:$0xf]  ;;  %v5280_v41 = vor.u32 %v6523_v45, %v5277_v46  ;;  %3709 = vmatpush.bf16.msrb.mxu3 %v6080_v49  ;;  %v5188_v45 = vor.u32 %v6504_v38, %v5187_v37  ;;  %v4643_v46 = vld [vmem:[#allocation7 + $0x350] sm:$0xf] }
 0x1b0   :  { %v5533_v51 = vld [vmem:[#allocation7 + $0xa68] sm:$0xf0]  ;;  %v6368_v48 = vld [vmem:[#allocation7 + $0x36c] sm:$0xf0] }
 0x1b1   :  { %v6651_v52 = vld [vmem:[#allocation7 + $0xc4c] sm:$0xf]  ;;  %v5536_v56 = vor.u32 %v6587_v50, %v5533_v51  ;;  %3671 = vmatpush.bf16.msrb.mxu0 %v5280_v41  ;;  %v4899_v49 = vld [vmem:[#allocation7 + $0x550] sm:$0xf] }
 0x1b2   :  { %v5789_v53 = vld [vmem:[#allocation7 + $0xc68] sm:$0xf0]  ;;  %v6432_v50 = vld [vmem:[#allocation7 + $0x56c] sm:$0xf0] }
 0x1b3   :  { %v6715_v54 = vld [vmem:[#allocation7 + $0xe4c] sm:$0xf]  ;;  %v5792_v60 = vor.u32 %v6651_v52, %v5789_v53  ;;  %3684 = vmatpush.bf16.msrb.mxu1 %v5536_v56  ;;  %v5155_v51 = vld [vmem:[#allocation7 + $0x750] sm:$0xf]  ;;  %v4388_v53 = vor.u32 %v6304_v43, %v4387_v42  ;;  %v4900_v41 = vor.u32 %v6432_v50, %v4899_v49 }
 0x1b4   :  { %v6045_v55 = vld [vmem:[#allocation7 + $0xe68] sm:$0xf0]  ;;  %v6496_v52 = vld [vmem:[#allocation7 + $0x76c] sm:$0xf0] }
 0x1b5   :  { %v6515_v11 = vld [vmem:[#allocation7 + $0x80c] sm:$0xf]  ;;  %v6048_v61 = vor.u32 %v6715_v54, %v6045_v55  ;;  %3697 = vmatpush.bf16.msrb.mxu2 %v5792_v60  ;;  %v4644_v54 = vor.u32 %v6368_v48, %v4643_v46  ;;  %v4355_v55 = vld [vmem:[#allocation7 + $0x110] sm:$0xf]  ;;  %v5156_v56 = vor.u32 %v6496_v52, %v5155_v51 }
 0x1b6   :  { %v5245_v57 = vld [vmem:[#allocation7 + $0x828] sm:$0xf0]  ;;  %v6424_v60 = vld [vmem:[#allocation7 + $0x52c] sm:$0xf0] }
 0x1b7   :  { %v6579_v58 = vld [vmem:[#allocation7 + $0xa0c] sm:$0xf]  ;;  %v5248_v18 = vor.u32 %v6515_v11, %v5245_v57  ;;  %3710 = vmatpush.bf16.msrb.mxu3 %v6048_v61  ;;  %v6296_v11 = vld [vmem:[#allocation7 + $0x12c] sm:$0xf0] }
 0x1b8   :  { %v5501_v59 = vld [vmem:[#allocation7 + $0xa28] sm:$0xf0]  ;;  %v4611_v57 = vld [vmem:[#allocation7 + $0x310] sm:$0xf]  ;;  %v4356_v7 = vor.u32 %v6296_v11, %v4355_v55 }
 0x1b9   :  { %v6643_v62 = vld [vmem:[#allocation7 + $0xc0c] sm:$0xf]  ;;  %v5504_v21 = vor.u32 %v6579_v58, %v5501_v59  ;;  %3672 = vmatpush.bf16.msrb.mxu0 %v5248_v18  ;;  %v6360_v58 = vld [vmem:[#allocation7 + $0x32c] sm:$0xf0] }
 0x1ba   :  { %v5757_v63 = vld [vmem:[#allocation7 + $0xc28] sm:$0xf0]  ;;  %v4867_v59 = vld [vmem:[#allocation7 + $0x510] sm:$0xf] }
 0x1bb   :  { %v6707_v5 = vld [vmem:[#allocation7 + $0xe0c] sm:$0xf]  ;;  %v5760_v25 = vor.u32 %v6643_v62, %v5757_v63  ;;  %3685 = vmatpush.bf16.msrb.mxu1 %v5504_v21  ;;  %v5123_v61 = vld [vmem:[#allocation7 + $0x710] sm:$0xf]  ;;  %v3466_v63 = vpop.f32.mrf.mxu0  ;;  %v4868_v12 = vor.u32 %v6424_v60, %v4867_v59 }
 0x1bc   :  { %v6013_v8 = vld [vmem:[#allocation7 + $0xe28] sm:$0xf0]  ;;  %3673 = vmatmul.bf16.vlgmr.msrb.gmra.mxu0 %v7040_v13  ;;  %v6488_v62 = vld [vmem:[#allocation7 + $0x72c] sm:$0xf0]  ;;  %v3467_v6 = vadd.f32 %v3466_v63, %v7078_v47 }
 0x1bd   :  { %v6016_v26 = vor.u32 %v6707_v5, %v6013_v8  ;;  %3698 = vmatpush.bf16.msrb.mxu2 %v5760_v25  ;;  %3717 = vmatpush.bf16.msra.mxu0 %v4452_v27  ;;  %v3479_v5 = vpop.f32.mrf.mxu1  ;;  %v4612_v8 = vor.u32 %v6360_v58, %v4611_v57  ;;  %v6288_v10 = vld [vmem:[#allocation7 + $0xec] sm:$0xf0]  ;;  %v5124_v15 = vor.u32 %v6488_v62, %v5123_v61 }
 0x1be   :  { %3686 = vmatmul.bf16.vlgmr.msrb.gmra.mxu1 %v7042_v14  ;;  %v4579_v17 = vld [vmem:[#allocation7 + $0x2d0] sm:$0xf]  ;;  %v3480_v22 = vadd.f32 %v3479_v5, %v3467_v6  ;;  %v4324_v47 = vor.u32 %v6288_v10, %v4323_v9 }
 0x1bf   :  { %3711 = vmatpush.bf16.msrb.mxu3 %v6016_v26  ;;  %3730 = vmatpush.bf16.msra.mxu1 %v4708_v28  ;;  %v6352_v18 = vld [vmem:[#allocation7 + $0x2ec] sm:$0xf0]  ;;  %v7085_v26 = vld [vmem:[#allocation10] sm:$0xff] }
 0x1c0   :  { %3699 = vmatmul.bf16.vlgmr.msrb.gmra.mxu2 %v7044_v19  ;;  %v4835_v21 = vld [vmem:[#allocation7 + $0x4d0] sm:$0xf]  ;;  %v4580_v27 = vor.u32 %v6352_v18, %v4579_v17  ;;  %v3493_v42 = vadd.f32 %v3492_v34, %v3480_v22  ;;  %v4144_v46 = vperm.slane %v7085_v26, 1  ;;  %v3494_v17 = vpop.f32.mrf.mxu2  ;;  %v3507_v18 = vpop.f32.mrf.mxu3 }
 0x1c1   :  { %3743 = vmatpush.bf16.msra.mxu2 %v4964_v31  ;;  %3718 = vmatpush.bf16.msra.mxu0 %v4420_v39  ;;  %v6416_v23 = vld [vmem:[#allocation7 + $0x4ec] sm:$0xf0] }
 0x1c2   :  { %3712 = vmatmul.bf16.vlgmr.msrb.gmra.mxu3 %v7046_v20  ;;  %v5091_v16 = vld [vmem:[#allocation7 + $0x6d0] sm:$0xf]  ;;  %v4836_v30 = vor.u32 %v6416_v23, %v4835_v21  ;;  %v3506_v52 = vadd.f32 %v3505_v36, %v3493_v42 }
 0x1c3   :  { %3756 = vmatpush.bf16.msra.mxu3 %v5220_v33  ;;  %3731 = vmatpush.bf16.msra.mxu1 %v4676_v40  ;;  %v6480_v25 = vld [vmem:[#allocation7 + $0x6ec] sm:$0xf0]  ;;  %v4143_v40 = vperm.slane %v7085_v26, 0  ;;  %v3468_v43 = vpop.f32.mrf.mxu0 }
 0x1c4   :  { %v4291_v28 = vld [vmem:[#allocation7 + $0x90] sm:$0xf]  ;;  %v5092_v31 = vor.u32 %v6480_v25, %v5091_v16 }
 0x1c5   :  { %3744 = vmatpush.bf16.msra.mxu2 %v4932_v44  ;;  %3719 = vmatpush.bf16.msra.mxu0 %v4388_v53  ;;  %v6280_v29 = vld [vmem:[#allocation7 + $0xac] sm:$0xf0]  ;;  %v3481_v44 = vpop.f32.mrf.mxu1 }
 0x1c6   :  { %v4547_v33 = vld [vmem:[#allocation7 + $0x290] sm:$0xf]  ;;  %v4292_v48 = vor.u32 %v6280_v29, %v4291_v28 }
 0x1c7   :  { %3757 = vmatpush.bf16.msra.mxu3 %v5188_v45  ;;  %3732 = vmatpush.bf16.msra.mxu1 %v4644_v54  ;;  %v6344_v4 = vld [vmem:[#allocation7 + $0x2ac] sm:$0xf0]  ;;  %v4133_v45 = vmax.f32 %v7071_v35, 0.0  ;;  %v4134_v35 = vmax.f32 %v3506_v52, 0.0 }
 0x1c8   :  { %v4803_v32 = vld [vmem:[#allocation7 + $0x490] sm:$0xf]  ;;  %v4548_v49 = vor.u32 %v6344_v4, %v4547_v33 }
 0x1c9   :  { %3745 = vmatpush.bf16.msra.mxu2 %v4900_v41  ;;  %3720 = vmatpush.bf16.msra.mxu0 %v4356_v7  ;;  %v6408_v37 = vld [vmem:[#allocation7 + $0x4ac] sm:$0xf0]  ;;  %v4159_v60 = vmul.f32 %v4143_v40, %v4133_v45  ;;  %v4160_v7 = vmul.f32 %v4144_v46, %v4134_v35 }
 0x1ca   :  { %v5059_v38 = vld [vmem:[#allocation7 + $0x690] sm:$0xf]  ;;  %v4804_v53 = vor.u32 %v6408_v37, %v4803_v32 }
 0x1cb   :  { %3758 = vmatpush.bf16.msra.mxu3 %v5156_v56  ;;  %3733 = vmatpush.bf16.msra.mxu1 %v4612_v8  ;;  %v6472_v39 = vld [vmem:[#allocation7 + $0x6ac] sm:$0xf0]  ;;  %v7090_v16 = vadd.f32 %v4160_v7, %v4159_v60  ;;  %v727_v60 = vperm.slane %v7064_v24, 2 }
 0x1cc   :  { %v4259_v50 = vld [vmem:[#allocation7 + $0x50] sm:$0xf]  ;;  %v5060_v54 = vor.u32 %v6472_v39, %v5059_v38 }
 0x1cd   :  { %3746 = vmatpush.bf16.msra.mxu2 %v4868_v12  ;;  %3721 = vmatpush.bf16.msra.mxu0 %v4324_v47  ;;  %v6272_v51 = vld [vmem:[#allocation7 + $0x6c] sm:$0xf0]  ;;  %v3531_v17 = vpop.f32.mrf.mxu1 }
 0x1ce   :  { %v4515_v55 = vld [vmem:[#allocation7 + $0x250] sm:$0xf]  ;;  %v4260_v61 = vor.u32 %v6272_v51, %v4259_v50 }
 0x1cf   :  { %3759 = vmatpush.bf16.msra.mxu3 %v5124_v15  ;;  %3734 = vmatpush.bf16.msra.mxu1 %v4580_v27  ;;  %v6336_v11 = vld [vmem:[#allocation7 + $0x26c] sm:$0xf0] }
 0x1d0   :  { %v4771_v41 = vld [vmem:[#allocation7 + $0x450] sm:$0xf]  ;;  %v4516_v62 = vor.u32 %v6336_v11, %v4515_v55 }
 0x1d1   :  { %3747 = vmatpush.bf16.msra.mxu2 %v4836_v30  ;;  %v6400_v56 = vld [vmem:[#allocation7 + $0x46c] sm:$0xf0]  ;;  %3722 = vmatpush.bf16.msra.mxu0 %v4292_v48 }
 0x1d2   :  { %v5027_v57 = vld [vmem:[#allocation7 + $0x650] sm:$0xf]  ;;  %v4772_v8 = vor.u32 %v6400_v56, %v4771_v41 }
 0x1d3   :  { %3760 = vmatpush.bf16.msra.mxu3 %v5092_v31  ;;  %v6464_v58 = vld [vmem:[#allocation7 + $0x66c] sm:$0xf0]  ;;  %3735 = vmatpush.bf16.msra.mxu1 %v4548_v49 }
 0x1d4   :  { %v4227_v59 = vld [vmem:[#allocation7 + $0x10] sm:$0xf]  ;;  %v5028_v9 = vor.u32 %v6464_v58, %v5027_v57 }
 0x1d5   :  { %v6264_v63 = vld [vmem:[#allocation7 + $0x2c] sm:$0xf0]  ;;  %3748 = vmatpush.bf16.msra.mxu2 %v4804_v53  ;;  %3723 = vmatpush.bf16.msra.mxu0 %v4260_v61 }
 0x1d6   :  { %v4483_v5 = vld [vmem:[#allocation7 + $0x210] sm:$0xf]  ;;  %v4228_v28 = vor.u32 %v6264_v63, %v4227_v59 }
 0x1d7   :  { %v6328_v6 = vld [vmem:[#allocation7 + $0x22c] sm:$0xf0]  ;;  %3761 = vmatpush.bf16.msra.mxu3 %v5060_v54  ;;  %3736 = vmatpush.bf16.msra.mxu1 %v4516_v62 }
 0x1d8   :  { %v4739_v10 = vld [vmem:[#allocation7 + $0x410] sm:$0xf]  ;;  %v4484_v29 = vor.u32 %v6328_v6, %v4483_v5 }
 0x1d9   :  { %v6392_v12 = vld [vmem:[#allocation7 + $0x42c] sm:$0xf0]  ;;  %3749 = vmatpush.bf16.msra.mxu2 %v4772_v8  ;;  %3724 = vmatpush.bf16.msra.mxu0 %v4228_v28 }
 0x1da   :  { %v4995_v15 = vld [vmem:[#allocation7 + $0x610] sm:$0xf]  ;;  %v4740_v4 = vor.u32 %v6392_v12, %v4739_v10 }
 0x1db   :  { %v6456_v21 = vld [vmem:[#allocation7 + $0x62c] sm:$0xf0]  ;;  %3762 = vmatpush.bf16.msra.mxu3 %v5028_v9  ;;  %3737 = vmatpush.bf16.msra.mxu1 %v4484_v29 }
 0x1dc   :  { %v5475_v22 = vld [vmem:[#allocation7 + $0x9d0] sm:$0xf]  ;;  %v4996_v32 = vor.u32 %v6456_v21, %v4995_v15  ;;  %3725 = vmatmul.bf16.vlgmr.msra.gmra.mxu0 %v7019_v0  ;;  %v3518_v15 = vpop.f32.mrf.mxu0 }
 0x1dd   :  { %v6576_v23 = vld [vmem:[#allocation7 + $0x9ec] sm:$0xf0]  ;;  %3750 = vmatpush.bf16.msra.mxu2 %v4740_v4  ;;  %v3519_v18 = vadd.f32 %v3518_v15, %v727_v60 }
 0x1de   :  { %v5731_v25 = vld [vmem:[#allocation7 + $0xbd0] sm:$0xf]  ;;  %v5476_v34 = vor.u32 %v6576_v23, %v5475_v22  ;;  %3738 = vmatmul.bf16.vlgmr.msra.gmra.mxu1 %v7021_v1 }
 0x1df   :  { %v6640_v47 = vld [vmem:[#allocation7 + $0xbec] sm:$0xf0]  ;;  %3763 = vmatpush.bf16.msra.mxu3 %v4996_v32 }
 0x1e0   :  { %v5987_v27 = vld [vmem:[#allocation7 + $0xdd0] sm:$0xf]  ;;  %v5732_v36 = vor.u32 %v6640_v47, %v5731_v25  ;;  %3769 = vmatpush.bf16.msrb.mxu0 %v5476_v34  ;;  %3751 = vmatmul.bf16.vlgmr.msra.gmra.mxu2 %v7023_v2 }
 0x1e1   :  { %v6704_v30 = vld [vmem:[#allocation7 + $0xdec] sm:$0xf0] }
 0x1e2   :  { %v6243_v31 = vld [vmem:[#allocation7 + $0xfd0] sm:$0xf]  ;;  %v5988_v39 = vor.u32 %v6704_v30, %v5987_v27  ;;  %3782 = vmatpush.bf16.msrb.mxu1 %v5732_v36  ;;  %3764 = vmatmul.bf16.vlgmr.msra.gmra.mxu3 %v7025_v3  ;;  %v3532_v30 = vadd.f32 %v3531_v17, %v3519_v18 }
 0x1e3   :  { %v6768_v33 = vld [vmem:[#allocation7 + $0xfec] sm:$0xf0] }
 0x1e4   :  { %v5443_v37 = vld [vmem:[#allocation7 + $0x990] sm:$0xf]  ;;  %v6244_v40 = vor.u32 %v6768_v33, %v6243_v31  ;;  %3795 = vmatpush.bf16.msrb.mxu2 %v5988_v39 }
 0x1e5   :  { %v6568_v38 = vld [vmem:[#allocation7 + $0x9ac] sm:$0xf0] }
 0x1e6   :  { %v5699_v42 = vld [vmem:[#allocation7 + $0xb90] sm:$0xf]  ;;  %v5444_v49 = vor.u32 %v6568_v38, %v5443_v37  ;;  %3808 = vmatpush.bf16.msrb.mxu3 %v6244_v40 }
 0x1e7   :  { %v6632_v43 = vld [vmem:[#allocation7 + $0xbac] sm:$0xf0] }
 0x1e8   :  { %v5955_v44 = vld [vmem:[#allocation7 + $0xd90] sm:$0xf]  ;;  %v5700_v50 = vor.u32 %v6632_v43, %v5699_v42  ;;  %3770 = vmatpush.bf16.msrb.mxu0 %v5444_v49 }
 0x1e9   :  { %v6696_v45 = vld [vmem:[#allocation7 + $0xdac] sm:$0xf0] }
 0x1ea   :  { %v6211_v46 = vld [vmem:[#allocation7 + $0xf90] sm:$0xf]  ;;  %v5956_v53 = vor.u32 %v6696_v45, %v5955_v44  ;;  %3783 = vmatpush.bf16.msrb.mxu1 %v5700_v50  ;;  %v3544_v44 = vpop.f32.mrf.mxu2  ;;  %v3557_v45 = vpop.f32.mrf.mxu3 }
 0x1eb   :  { %v6760_v48 = vld [vmem:[#allocation7 + $0xfac] sm:$0xf0]  ;;  %v3545_v50 = vadd.f32 %v3544_v44, %v3532_v30  ;;  %v4677_v44 = vld [vmem:[#allocation7 + $0x3b0] sm:$0xf0] }
 0x1ec   :  { %v5411_v51 = vld [vmem:[#allocation7 + $0x950] sm:$0xf]  ;;  %v6212_v54 = vor.u32 %v6760_v48, %v6211_v46  ;;  %3796 = vmatpush.bf16.msrb.mxu2 %v5956_v53 }
 0x1ed   :  { %v6560_v52 = vld [vmem:[#allocation7 + $0x96c] sm:$0xf0] }
 0x1ee   :  { %v5667_v55 = vld [vmem:[#allocation7 + $0xb50] sm:$0xf]  ;;  %v5412_v35 = vor.u32 %v6560_v52, %v5411_v51  ;;  %3809 = vmatpush.bf16.msrb.mxu3 %v6212_v54  ;;  %v3520_v51 = vpop.f32.mrf.mxu0  ;;  %v3533_v52 = vpop.f32.mrf.mxu1 }
 0x1ef   :  { %v6624_v11 = vld [vmem:[#allocation7 + $0xb6c] sm:$0xf0]  ;;  %v6300_v52 = vld [vmem:[#allocation7 + $0x154] sm:$0xf] }
 0x1f0   :  { %v5923_v41 = vld [vmem:[#allocation7 + $0xd50] sm:$0xf]  ;;  %v5668_v59 = vor.u32 %v6624_v11, %v5667_v55  ;;  %3771 = vmatpush.bf16.msrb.mxu0 %v5412_v35 }
 0x1f1   :  { %v6688_v56 = vld [vmem:[#allocation7 + $0xd6c] sm:$0xf0] }
 0x1f2   :  { %v6179_v57 = vld [vmem:[#allocation7 + $0xf50] sm:$0xf]  ;;  %v5924_v63 = vor.u32 %v6688_v56, %v5923_v41  ;;  %3784 = vmatpush.bf16.msrb.mxu1 %v5668_v59  ;;  %v7097_v41 = vadd.f32 %v3557_v45, %v3545_v50  ;;  %v6436_v45 = vld [vmem:[#allocation7 + $0x594] sm:$0xf] }
 0x1f3   :  { %v6752_v58 = vld [vmem:[#allocation7 + $0xf6c] sm:$0xf0] }
 0x1f4   :  { %v5379_v61 = vld [vmem:[#allocation7 + $0x910] sm:$0xf]  ;;  %v6180_v5 = vor.u32 %v6752_v58, %v6179_v57  ;;  %3797 = vmatpush.bf16.msrb.mxu2 %v5924_v63 }
 0x1f5   :  { %v6552_v62 = vld [vmem:[#allocation7 + $0x92c] sm:$0xf0] }
 0x1f6   :  { %v5635_v6 = vld [vmem:[#allocation7 + $0xb10] sm:$0xf]  ;;  %v5380_v21 = vor.u32 %v6552_v62, %v5379_v61  ;;  %3810 = vmatpush.bf16.msrb.mxu3 %v6180_v5 }
 0x1f7   :  { %v6616_v7 = vld [vmem:[#allocation7 + $0xb2c] sm:$0xf0] }
 0x1f8   :  { %v5891_v8 = vld [vmem:[#allocation7 + $0xd10] sm:$0xf]  ;;  %v5636_v22 = vor.u32 %v6616_v7, %v5635_v6  ;;  %3772 = vmatpush.bf16.msrb.mxu0 %v5380_v21  ;;  %v3546_v21 = vpop.f32.mrf.mxu2 }
 0x1f9   :  { %v6680_v9 = vld [vmem:[#allocation7 + $0xd2c] sm:$0xf0] }
 0x1fa   :  { %v6147_v10 = vld [vmem:[#allocation7 + $0xf10] sm:$0xf]  ;;  %v5892_v25 = vor.u32 %v6680_v9, %v5891_v8  ;;  %3785 = vmatpush.bf16.msrb.mxu1 %v5636_v22  ;;  %v3559_v22 = vpop.f32.mrf.mxu3 }
 0x1fb   :  { %v6744_v12 = vld [vmem:[#allocation7 + $0xf2c] sm:$0xf0] }
 0x1fc   :  { %v5347_v24 = vld [vmem:[#allocation7 + $0x8d0] sm:$0xf]  ;;  %v6148_v47 = vor.u32 %v6744_v12, %v6147_v10  ;;  %3798 = vmatpush.bf16.msrb.mxu2 %v5892_v25  ;;  %v4453_v25 = vld [vmem:[#allocation7 + $0x1f0] sm:$0xf0] }
 0x1fd   :  { %v6544_v23 = vld [vmem:[#allocation7 + $0x8ec] sm:$0xf0] }
 0x1fe   :  { %v5603_v27 = vld [vmem:[#allocation7 + $0xad0] sm:$0xf]  ;;  %v5348_v32 = vor.u32 %v6544_v23, %v5347_v24  ;;  %3811 = vmatpush.bf16.msrb.mxu3 %v6148_v47  ;;  %v6316_v23 = vld [vmem:[#allocation7 + $0x1d4] sm:$0xf] }
 0x1ff   :  { %v6608_v28 = vld [vmem:[#allocation7 + $0xaec] sm:$0xf0]  ;;  %v6380_v47 = vld [vmem:[#allocation7 + $0x3d4] sm:$0xf] }
 0x200   :  { %v5859_v29 = vld [vmem:[#allocation7 + $0xcd0] sm:$0xf]  ;;  %v5604_v34 = vor.u32 %v6608_v28, %v5603_v27  ;;  %3773 = vmatpush.bf16.msrb.mxu0 %v5348_v32  ;;  %v4709_v27 = vld [vmem:[#allocation7 + $0x3f0] sm:$0xf0] }
 0x201   :  { %v6672_v31 = vld [vmem:[#allocation7 + $0xcec] sm:$0xf0]  ;;  %v6444_v28 = vld [vmem:[#allocation7 + $0x5d4] sm:$0xf] }
 0x202   :  { %v6115_v33 = vld [vmem:[#allocation7 + $0xed0] sm:$0xf]  ;;  %v5860_v38 = vor.u32 %v6672_v31, %v5859_v29  ;;  %3786 = vmatpush.bf16.msrb.mxu1 %v5604_v34  ;;  %v4965_v31 = vld [vmem:[#allocation7 + $0x5f0] sm:$0xf0] }
 0x203   :  { %v6736_v4 = vld [vmem:[#allocation7 + $0xeec] sm:$0xf0] }
 0x204   :  { %v5315_v36 = vld [vmem:[#allocation7 + $0x890] sm:$0xf]  ;;  %v6116_v39 = vor.u32 %v6736_v4, %v6115_v33  ;;  %3799 = vmatpush.bf16.msrb.mxu2 %v5860_v38  ;;  %v6508_v33 = vld [vmem:[#allocation7 + $0x7d4] sm:$0xf] }
 0x205   :  { %v6536_v37 = vld [vmem:[#allocation7 + $0x8ac] sm:$0xf0]  ;;  %v5221_v4 = vld [vmem:[#allocation7 + $0x7f0] sm:$0xf0] }
 0x206   :  { %v5571_v40 = vld [vmem:[#allocation7 + $0xa90] sm:$0xf]  ;;  %v5316_v53 = vor.u32 %v6536_v37, %v5315_v36  ;;  %3812 = vmatpush.bf16.msrb.mxu3 %v6116_v39  ;;  %v4456_v36 = vor.u32 %v6316_v23, %v4453_v25  ;;  %v4712_v37 = vor.u32 %v6380_v47, %v4709_v27  ;;  %v6308_v38 = vld [vmem:[#allocation7 + $0x194] sm:$0xf] }
 0x207   :  { %v6600_v42 = vld [vmem:[#allocation7 + $0xaac] sm:$0xf0]  ;;  %v4421_v39 = vld [vmem:[#allocation7 + $0x1b0] sm:$0xf0] }
 0x208   :  { %v5827_v43 = vld [vmem:[#allocation7 + $0xc90] sm:$0xf]  ;;  %v5572_v54 = vor.u32 %v6600_v42, %v5571_v40  ;;  %3774 = vmatpush.bf16.msrb.mxu0 %v5316_v53  ;;  %v4968_v40 = vor.u32 %v6444_v28, %v4965_v31  ;;  %v5224_v42 = vor.u32 %v6508_v33, %v5221_v4  ;;  %v4424_v50 = vor.u32 %v6308_v38, %v4421_v39  ;;  %v4389_v53 = vld [vmem:[#allocation7 + $0x170] sm:$0xf0] }
 0x209   :  { %v6664_v46 = vld [vmem:[#allocation7 + $0xcac] sm:$0xf0]  ;;  %v6284_v23 = vld [vmem:[#allocation7 + $0xd4] sm:$0xf] }
 0x20a   :  { %v6083_v48 = vld [vmem:[#allocation7 + $0xe90] sm:$0xf]  ;;  %v5828_v56 = vor.u32 %v6664_v46, %v5827_v43  ;;  %3787 = vmatpush.bf16.msrb.mxu1 %v5572_v54  ;;  %v6372_v43 = vld [vmem:[#allocation7 + $0x394] sm:$0xf] }
 0x20b   :  { %v6728_v49 = vld [vmem:[#allocation7 + $0xeac] sm:$0xf0]  ;;  %v4933_v46 = vld [vmem:[#allocation7 + $0x5b0] sm:$0xf0]  ;;  %v4680_v51 = vor.u32 %v6372_v43, %v4677_v44  ;;  %v3596_v44 = vpop.f32.mrf.mxu2 }
 0x20c   :  { %v5283_v55 = vld [vmem:[#allocation7 + $0x850] sm:$0xf]  ;;  %v6084_v57 = vor.u32 %v6728_v49, %v6083_v48  ;;  %3800 = vmatpush.bf16.msrb.mxu2 %v5828_v56  ;;  %v6500_v48 = vld [vmem:[#allocation7 + $0x794] sm:$0xf]  ;;  %v4936_v54 = vor.u32 %v6436_v45, %v4933_v46  ;;  %v3609_v45 = vpop.f32.mrf.mxu3 }
 0x20d   :  { %v6528_v11 = vld [vmem:[#allocation7 + $0x86c] sm:$0xf0]  ;;  %v5189_v49 = vld [vmem:[#allocation7 + $0x7b0] sm:$0xf0] }
 0x20e   :  { %v5539_v58 = vld [vmem:[#allocation7 + $0xa50] sm:$0xf]  ;;  %v5284_v5 = vor.u32 %v6528_v11, %v5283_v55  ;;  %3813 = vmatpush.bf16.msrb.mxu3 %v6084_v57  ;;  %v5192_v55 = vor.u32 %v6500_v48, %v5189_v49  ;;  %v6364_v11 = vld [vmem:[#allocation7 + $0x354] sm:$0xf] }
 0x20f   :  { %v6592_v35 = vld [vmem:[#allocation7 + $0xa6c] sm:$0xf0]  ;;  %v4645_v56 = vld [vmem:[#allocation7 + $0x370] sm:$0xf0] }
 0x210   :  { %v5795_v59 = vld [vmem:[#allocation7 + $0xc50] sm:$0xf]  ;;  %v5540_v6 = vor.u32 %v6592_v35, %v5539_v58  ;;  %3775 = vmatpush.bf16.msrb.mxu0 %v5284_v5  ;;  %v6428_v57 = vld [vmem:[#allocation7 + $0x554] sm:$0xf] }
 0x211   :  { %v6656_v60 = vld [vmem:[#allocation7 + $0xc6c] sm:$0xf0]  ;;  %v4901_v58 = vld [vmem:[#allocation7 + $0x570] sm:$0xf0] }
 0x212   :  { %v6051_v61 = vld [vmem:[#allocation7 + $0xe50] sm:$0xf]  ;;  %v5796_v10 = vor.u32 %v6656_v60, %v5795_v59  ;;  %3788 = vmatpush.bf16.msrb.mxu1 %v5540_v6  ;;  %v6492_v35 = vld [vmem:[#allocation7 + $0x754] sm:$0xf]  ;;  %v4392_v60 = vor.u32 %v6300_v52, %v4389_v53  ;;  %v4904_v5 = vor.u32 %v6428_v57, %v4901_v58  ;;  %v4145_v53 = vperm.slane %v7085_v26, 2 }
 0x213   :  { %v6720_v62 = vld [vmem:[#allocation7 + $0xe6c] sm:$0xf0]  ;;  %v5157_v59 = vld [vmem:[#allocation7 + $0x770] sm:$0xf0] }
 0x214   :  { %v5251_v63 = vld [vmem:[#allocation7 + $0x810] sm:$0xf]  ;;  %v6052_v12 = vor.u32 %v6720_v62, %v6051_v61  ;;  %3801 = vmatpush.bf16.msrb.mxu2 %v5796_v10  ;;  %v4648_v61 = vor.u32 %v6364_v11, %v4645_v56  ;;  %v6292_v62 = vld [vmem:[#allocation7 + $0x114] sm:$0xf]  ;;  %v5160_v6 = vor.u32 %v6492_v35, %v5157_v59 }
 0x215   :  { %v6520_v7 = vld [vmem:[#allocation7 + $0x82c] sm:$0xf0]  ;;  %v4869_v10 = vld [vmem:[#allocation7 + $0x530] sm:$0xf0] }
 0x216   :  { %v5507_v8 = vld [vmem:[#allocation7 + $0xa10] sm:$0xf]  ;;  %v5252_v29 = vor.u32 %v6520_v7, %v5251_v63  ;;  %3814 = vmatpush.bf16.msrb.mxu3 %v6052_v12  ;;  %v4357_v63 = vld [vmem:[#allocation7 + $0x130] sm:$0xf0] }
 0x217   :  { %v6584_v9 = vld [vmem:[#allocation7 + $0xa2c] sm:$0xf0]  ;;  %v6356_v7 = vld [vmem:[#allocation7 + $0x314] sm:$0xf]  ;;  %v4360_v22 = vor.u32 %v6292_v62, %v4357_v63 }
 0x218   :  { %v5763_v15 = vld [vmem:[#allocation7 + $0xc10] sm:$0xf]  ;;  %v5508_v30 = vor.u32 %v6584_v9, %v5507_v8  ;;  %3776 = vmatpush.bf16.msrb.mxu0 %v5252_v29  ;;  %v4613_v8 = vld [vmem:[#allocation7 + $0x330] sm:$0xf0] }
 0x219   :  { %v6648_v17 = vld [vmem:[#allocation7 + $0xc2c] sm:$0xf0]  ;;  %v6420_v9 = vld [vmem:[#allocation7 + $0x514] sm:$0xf] }
 0x21a   :  { %v6019_v18 = vld [vmem:[#allocation7 + $0xe10] sm:$0xf]  ;;  %v5764_v32 = vor.u32 %v6648_v17, %v5763_v15  ;;  %3789 = vmatpush.bf16.msrb.mxu1 %v5508_v30  ;;  %v6484_v12 = vld [vmem:[#allocation7 + $0x714] sm:$0xf]  ;;  %v3570_v17 = vpop.f32.mrf.mxu0  ;;  %v4872_v47 = vor.u32 %v6420_v9, %v4869_v10 }
 0x21b   :  { %v6712_v24 = vld [vmem:[#allocation7 + $0xe2c] sm:$0xf0]  ;;  %3777 = vmatmul.bf16.vlgmr.msrb.gmra.mxu0 %v7040_v13  ;;  %v5125_v15 = vld [vmem:[#allocation7 + $0x730] sm:$0xf0]  ;;  %v3571_v21 = vadd.f32 %v3570_v17, %v7097_v41 }
 0x21c   :  { %v6020_v34 = vor.u32 %v6712_v24, %v6019_v18  ;;  %3802 = vmatpush.bf16.msrb.mxu2 %v5764_v32  ;;  %3821 = vmatpush.bf16.msra.mxu0 %v4456_v36  ;;  %v3583_v18 = vpop.f32.mrf.mxu1  ;;  %v4616_v24 = vor.u32 %v6356_v7, %v4613_v8  ;;  %v4325_v25 = vld [vmem:[#allocation7 + $0xf0] sm:$0xf0]  ;;  %v5128_v27 = vor.u32 %v6484_v12, %v5125_v15 }
 0x21d   :  { %3790 = vmatmul.bf16.vlgmr.msrb.gmra.mxu1 %v7042_v14  ;;  %v6348_v28 = vld [vmem:[#allocation7 + $0x2d4] sm:$0xf]  ;;  %v3584_v31 = vadd.f32 %v3583_v18, %v3571_v21 }
 0x21e   :  { %3815 = vmatpush.bf16.msrb.mxu3 %v6020_v34  ;;  %3834 = vmatpush.bf16.msra.mxu1 %v4712_v37  ;;  %v4581_v29 = vld [vmem:[#allocation7 + $0x2f0] sm:$0xf0]  ;;  %v4328_v34 = vor.u32 %v6284_v23, %v4325_v25  ;;  %v3598_v23 = vpop.f32.mrf.mxu2  ;;  %v3611_v25 = vpop.f32.mrf.mxu3 }
 0x21f   :  { %3803 = vmatmul.bf16.vlgmr.msrb.gmra.mxu2 %v7044_v19  ;;  %v6412_v30 = vld [vmem:[#allocation7 + $0x4d4] sm:$0xf]  ;;  %v4584_v36 = vor.u32 %v6348_v28, %v4581_v29 }
 0x220   :  { %3847 = vmatpush.bf16.msra.mxu2 %v4968_v40  ;;  %3822 = vmatpush.bf16.msra.mxu0 %v4424_v50  ;;  %v4837_v33 = vld [vmem:[#allocation7 + $0x4f0] sm:$0xf0]  ;;  %v3597_v50 = vadd.f32 %v3596_v44, %v3584_v31 }
 0x221   :  { %3816 = vmatmul.bf16.vlgmr.msrb.gmra.mxu3 %v7046_v20  ;;  %v6476_v4 = vld [vmem:[#allocation7 + $0x6d4] sm:$0xf]  ;;  %v4840_v38 = vor.u32 %v6412_v30, %v4837_v33 }
 0x222   :  { %3860 = vmatpush.bf16.msra.mxu3 %v5224_v42  ;;  %3835 = vmatpush.bf16.msra.mxu1 %v4680_v51  ;;  %v5093_v32 = vld [vmem:[#allocation7 + $0x6f0] sm:$0xf0]  ;;  %v3572_v51 = vpop.f32.mrf.mxu0  ;;  %v3610_v57 = vadd.f32 %v3609_v45, %v3597_v50 }
 0x223   :  { %v6276_v41 = vld [vmem:[#allocation7 + $0x94] sm:$0xf]  ;;  %v5096_v39 = vor.u32 %v6476_v4, %v5093_v32 }
 0x224   :  { %3848 = vmatpush.bf16.msra.mxu2 %v4936_v54  ;;  %3823 = vmatpush.bf16.msra.mxu0 %v4392_v60  ;;  %v4293_v37 = vld [vmem:[#allocation7 + $0xb0] sm:$0xf0]  ;;  %v3585_v52 = vpop.f32.mrf.mxu1 }
 0x225   :  { %v6340_v40 = vld [vmem:[#allocation7 + $0x294] sm:$0xf]  ;;  %v4296_v54 = vor.u32 %v6276_v41, %v4293_v37 }
 0x226   :  { %3861 = vmatpush.bf16.msra.mxu3 %v5192_v55  ;;  %3836 = vmatpush.bf16.msra.mxu1 %v4648_v61  ;;  %v4549_v42 = vld [vmem:[#allocation7 + $0x2b0] sm:$0xf0] }
 0x227   :  { %v6404_v43 = vld [vmem:[#allocation7 + $0x494] sm:$0xf]  ;;  %v4552_v55 = vor.u32 %v6340_v40, %v4549_v42 }
 0x228   :  { %3849 = vmatpush.bf16.msra.mxu2 %v4904_v5  ;;  %3824 = vmatpush.bf16.msra.mxu0 %v4360_v22  ;;  %v4805_v46 = vld [vmem:[#allocation7 + $0x4b0] sm:$0xf0] }
 0x229   :  { %v6468_v48 = vld [vmem:[#allocation7 + $0x694] sm:$0xf]  ;;  %v4808_v58 = vor.u32 %v6404_v43, %v4805_v46 }
 0x22a   :  { %3862 = vmatpush.bf16.msra.mxu3 %v5160_v6  ;;  %3837 = vmatpush.bf16.msra.mxu1 %v4616_v24  ;;  %v5061_v49 = vld [vmem:[#allocation7 + $0x6b0] sm:$0xf0]  ;;  %v4135_v6 = vmax.f32 %v3610_v57, 0.0 }
 0x22b   :  { %v6268_v11 = vld [vmem:[#allocation7 + $0x54] sm:$0xf]  ;;  %v5064_v35 = vor.u32 %v6468_v48, %v5061_v49 }
 0x22c   :  { %3850 = vmatpush.bf16.msra.mxu2 %v4872_v47  ;;  %3825 = vmatpush.bf16.msra.mxu0 %v4328_v34  ;;  %v4261_v56 = vld [vmem:[#allocation7 + $0x70] sm:$0xf0]  ;;  %v4161_v15 = vmul.f32 %v4145_v53, %v4135_v6 }
 0x22d   :  { %v6332_v59 = vld [vmem:[#allocation7 + $0x254] sm:$0xf]  ;;  %v4264_v26 = vor.u32 %v6268_v11, %v4261_v56 }
 0x22e   :  { %3863 = vmatpush.bf16.msra.mxu3 %v5128_v27  ;;  %3838 = vmatpush.bf16.msra.mxu1 %v4584_v36  ;;  %v4517_v60 = vld [vmem:[#allocation7 + $0x270] sm:$0xf0]  ;;  %v7106_v29 = vadd.f32 %v7090_v16, %v4161_v15 }
 0x22f   :  { %v6396_v61 = vld [vmem:[#allocation7 + $0x454] sm:$0xf]  ;;  %v4520_v8 = vor.u32 %v6332_v59, %v4517_v60 }
 0x230   :  { %3851 = vmatpush.bf16.msra.mxu2 %v4840_v38  ;;  %v4773_v62 = vld [vmem:[#allocation7 + $0x470] sm:$0xf0]  ;;  %3826 = vmatpush.bf16.msra.mxu0 %v4296_v54 }
 0x231   :  { %v6460_v63 = vld [vmem:[#allocation7 + $0x654] sm:$0xf]  ;;  %v4776_v17 = vor.u32 %v6396_v61, %v4773_v62 }
 0x232   :  { %3864 = vmatpush.bf16.msra.mxu3 %v5096_v39  ;;  %v5029_v5 = vld [vmem:[#allocation7 + $0x670] sm:$0xf0]  ;;  %3839 = vmatpush.bf16.msra.mxu1 %v4552_v55 }
 0x233   :  { %v6260_v7 = vld [vmem:[#allocation7 + $0x14] sm:$0xf]  ;;  %v5032_v18 = vor.u32 %v6460_v63, %v5029_v5  ;;  %v7112_v5 = vld [vmem:[#allocation8] sm:$0xff] }
 0x234   :  { %v4229_v9 = vld [vmem:[#allocation7 + $0x30] sm:$0xf0]  ;;  %3852 = vmatpush.bf16.msra.mxu2 %v4808_v58  ;;  %3827 = vmatpush.bf16.msra.mxu0 %v4264_v26  ;;  %v728_v6 = vperm.slane %v7112_v5, 3 }
 0x235   :  { %v6324_v10 = vld [vmem:[#allocation7 + $0x214] sm:$0xf]  ;;  %v4232_v4 = vor.u32 %v6260_v7, %v4229_v9 }
 0x236   :  { %v4485_v12 = vld [vmem:[#allocation7 + $0x230] sm:$0xf0]  ;;  %3865 = vmatpush.bf16.msra.mxu3 %v5064_v35  ;;  %3840 = vmatpush.bf16.msra.mxu1 %v4520_v8 }
 0x237   :  { %v6388_v21 = vld [vmem:[#allocation7 + $0x414] sm:$0xf]  ;;  %v4488_v32 = vor.u32 %v6324_v10, %v4485_v12 }
 0x238   :  { %v4741_v22 = vld [vmem:[#allocation7 + $0x430] sm:$0xf0]  ;;  %3853 = vmatpush.bf16.msra.mxu2 %v4776_v17  ;;  %3828 = vmatpush.bf16.msra.mxu0 %v4232_v4 }
 0x239   :  { %v6452_v24 = vld [vmem:[#allocation7 + $0x614] sm:$0xf]  ;;  %v4744_v37 = vor.u32 %v6388_v21, %v4741_v22  ;;  %v3622_v22 = vpop.f32.mrf.mxu0 }
 0x23a   :  { %v4997_v47 = vld [vmem:[#allocation7 + $0x630] sm:$0xf0]  ;;  %3866 = vmatpush.bf16.msra.mxu3 %v5032_v18  ;;  %3841 = vmatpush.bf16.msra.mxu1 %v4488_v32  ;;  %v3623_v23 = vadd.f32 %v3622_v22, %v728_v6 }
 0x23b   :  { %v6572_v27 = vld [vmem:[#allocation7 + $0x9d4] sm:$0xf]  ;;  %v5000_v38 = vor.u32 %v6452_v24, %v4997_v47  ;;  %3829 = vmatmul.bf16.vlgmr.msra.gmra.mxu0 %v7019_v0  ;;  %v3635_v24 = vpop.f32.mrf.mxu1 }
 0x23c   :  { %v5477_v28 = vld [vmem:[#allocation7 + $0x9f0] sm:$0xf0]  ;;  %3854 = vmatpush.bf16.msra.mxu2 %v4744_v37 }
 0x23d   :  { %v6636_v30 = vld [vmem:[#allocation7 + $0xbd4] sm:$0xf]  ;;  %v5480_v39 = vor.u32 %v6572_v27, %v5477_v28  ;;  %3842 = vmatmul.bf16.vlgmr.msra.gmra.mxu1 %v7021_v1 }
 0x23e   :  { %v5733_v31 = vld [vmem:[#allocation7 + $0xbf0] sm:$0xf0]  ;;  %3867 = vmatpush.bf16.msra.mxu3 %v5000_v38 }
 0x23f   :  { %v6700_v33 = vld [vmem:[#allocation7 + $0xdd4] sm:$0xf]  ;;  %v5736_v40 = vor.u32 %v6636_v30, %v5733_v31  ;;  %3873 = vmatpush.bf16.msrb.mxu0 %v5480_v39  ;;  %3855 = vmatmul.bf16.vlgmr.msra.gmra.mxu2 %v7023_v2 }
 0x240   :  { %v5989_v34 = vld [vmem:[#allocation7 + $0xdf0] sm:$0xf0] }
 0x241   :  { %v6764_v36 = vld [vmem:[#allocation7 + $0xfd4] sm:$0xf]  ;;  %v5992_v16 = vor.u32 %v6700_v33, %v5989_v34  ;;  %3886 = vmatpush.bf16.msrb.mxu1 %v5736_v40  ;;  %3868 = vmatmul.bf16.vlgmr.msra.gmra.mxu3 %v7025_v3  ;;  %v3636_v34 = vadd.f32 %v3635_v24, %v3623_v23 }
 0x242   :  { %v6245_v41 = vld [vmem:[#allocation7 + $0xff0] sm:$0xf0] }
 0x243   :  { %v6564_v42 = vld [vmem:[#allocation7 + $0x994] sm:$0xf]  ;;  %v6248_v44 = vor.u32 %v6764_v36, %v6245_v41  ;;  %3899 = vmatpush.bf16.msrb.mxu2 %v5992_v16 }
 0x244   :  { %v5445_v43 = vld [vmem:[#allocation7 + $0x9b0] sm:$0xf0] }
 0x245   :  { %v6628_v45 = vld [vmem:[#allocation7 + $0xb94] sm:$0xf]  ;;  %v5448_v52 = vor.u32 %v6564_v42, %v5445_v43  ;;  %3912 = vmatpush.bf16.msrb.mxu3 %v6248_v44 }
 0x246   :  { %v5701_v46 = vld [vmem:[#allocation7 + $0xbb0] sm:$0xf0] }
 0x247   :  { %v6692_v48 = vld [vmem:[#allocation7 + $0xd94] sm:$0xf]  ;;  %v5704_v53 = vor.u32 %v6628_v45, %v5701_v46  ;;  %3874 = vmatpush.bf16.msrb.mxu0 %v5448_v52 }
 0x248   :  { %v5957_v49 = vld [vmem:[#allocation7 + $0xdb0] sm:$0xf0] }
 0x249   :  { %v6756_v50 = vld [vmem:[#allocation7 + $0xf94] sm:$0xf]  ;;  %v5960_v11 = vor.u32 %v6692_v48, %v5957_v49  ;;  %3887 = vmatpush.bf16.msrb.mxu1 %v5704_v53  ;;  %v3648_v48 = vpop.f32.mrf.mxu2  ;;  %v3661_v49 = vpop.f32.mrf.mxu3 }
 0x24a   :  { %v6213_v51 = vld [vmem:[#allocation7 + $0xfb0] sm:$0xf0]  ;;  %v3649_v53 = vadd.f32 %v3648_v48, %v3636_v34  ;;  %v6377_v48 = vld [vmem:[#allocation7 + $0x3b4] sm:$0xf0] }
 0x24b   :  { %v6556_v54 = vld [vmem:[#allocation7 + $0x954] sm:$0xf]  ;;  %v6216_v56 = vor.u32 %v6756_v50, %v6213_v51  ;;  %3900 = vmatpush.bf16.msrb.mxu2 %v5960_v11 }
 0x24c   :  { %v5413_v55 = vld [vmem:[#allocation7 + $0x970] sm:$0xf0] }
 0x24d   :  { %v6620_v57 = vld [vmem:[#allocation7 + $0xb54] sm:$0xf]  ;;  %v5416_v62 = vor.u32 %v6556_v54, %v5413_v55  ;;  %3913 = vmatpush.bf16.msrb.mxu3 %v6216_v56  ;;  %v3624_v54 = vpop.f32.mrf.mxu0  ;;  %v3637_v55 = vpop.f32.mrf.mxu1 }
 0x24e   :  { %v5669_v58 = vld [vmem:[#allocation7 + $0xb70] sm:$0xf0]  ;;  %v4395_v55 = vld [vmem:[#allocation7 + $0x158] sm:$0xf] }
 0x24f   :  { %v6684_v35 = vld [vmem:[#allocation7 + $0xd54] sm:$0xf]  ;;  %v5672_v63 = vor.u32 %v6620_v57, %v5669_v58  ;;  %3875 = vmatpush.bf16.msrb.mxu0 %v5416_v62 }
 0x250   :  { %v5925_v59 = vld [vmem:[#allocation7 + $0xd70] sm:$0xf0] }
 0x251   :  { %v6748_v60 = vld [vmem:[#allocation7 + $0xf54] sm:$0xf]  ;;  %v5928_v8 = vor.u32 %v6684_v35, %v5925_v59  ;;  %3888 = vmatpush.bf16.msrb.mxu1 %v5672_v63  ;;  %v7115_v35 = vadd.f32 %v3661_v49, %v3649_v53  ;;  %v4939_v49 = vld [vmem:[#allocation7 + $0x598] sm:$0xf] }
 0x252   :  { %v6181_v61 = vld [vmem:[#allocation7 + $0xf70] sm:$0xf0] }
 0x253   :  { %v6548_v7 = vld [vmem:[#allocation7 + $0x914] sm:$0xf]  ;;  %v6184_v9 = vor.u32 %v6748_v60, %v6181_v61  ;;  %3901 = vmatpush.bf16.msrb.mxu2 %v5928_v8 }
 0x254   :  { %v5381_v26 = vld [vmem:[#allocation7 + $0x930] sm:$0xf0] }
 0x255   :  { %v6612_v10 = vld [vmem:[#allocation7 + $0xb14] sm:$0xf]  ;;  %v5384_v25 = vor.u32 %v6548_v7, %v5381_v26  ;;  %3914 = vmatpush.bf16.msrb.mxu3 %v6184_v9 }
 0x256   :  { %v5637_v12 = vld [vmem:[#allocation7 + $0xb30] sm:$0xf0] }
 0x257   :  { %v6676_v15 = vld [vmem:[#allocation7 + $0xd14] sm:$0xf]  ;;  %v5640_v47 = vor.u32 %v6612_v10, %v5637_v12  ;;  %3876 = vmatpush.bf16.msrb.mxu0 %v5384_v25  ;;  %v3650_v25 = vpop.f32.mrf.mxu2 }
 0x258   :  { %v5893_v17 = vld [vmem:[#allocation7 + $0xd30] sm:$0xf0] }
 0x259   :  { %v6740_v18 = vld [vmem:[#allocation7 + $0xf14] sm:$0xf]  ;;  %v5896_v30 = vor.u32 %v6676_v15, %v5893_v17  ;;  %3889 = vmatpush.bf16.msrb.mxu1 %v5640_v47  ;;  %v3663_v47 = vpop.f32.mrf.mxu3 }
 0x25a   :  { %v6149_v21 = vld [vmem:[#allocation7 + $0xf30] sm:$0xf0] }
 0x25b   :  { %v6540_v27 = vld [vmem:[#allocation7 + $0x8d4] sm:$0xf]  ;;  %v6152_v31 = vor.u32 %v6740_v18, %v6149_v21  ;;  %3902 = vmatpush.bf16.msrb.mxu2 %v5896_v30  ;;  %v6321_v30 = vld [vmem:[#allocation7 + $0x1f4] sm:$0xf0] }
 0x25c   :  { %v5349_v28 = vld [vmem:[#allocation7 + $0x8f0] sm:$0xf0] }
 0x25d   :  { %v6604_v33 = vld [vmem:[#allocation7 + $0xad4] sm:$0xf]  ;;  %v5352_v38 = vor.u32 %v6540_v27, %v5349_v28  ;;  %3915 = vmatpush.bf16.msrb.mxu3 %v6152_v31  ;;  %v4459_v28 = vld [vmem:[#allocation7 + $0x1d8] sm:$0xf] }
 0x25e   :  { %v5605_v4 = vld [vmem:[#allocation7 + $0xaf0] sm:$0xf0]  ;;  %v4715_v31 = vld [vmem:[#allocation7 + $0x3d8] sm:$0xf] }
 0x25f   :  { %v6668_v32 = vld [vmem:[#allocation7 + $0xcd4] sm:$0xf]  ;;  %v5608_v39 = vor.u32 %v6604_v33, %v5605_v4  ;;  %3877 = vmatpush.bf16.msrb.mxu0 %v5352_v38  ;;  %v6385_v33 = vld [vmem:[#allocation7 + $0x3f4] sm:$0xf0] }
 0x260   :  { %v5861_v36 = vld [vmem:[#allocation7 + $0xcf0] sm:$0xf0]  ;;  %v4971_v4 = vld [vmem:[#allocation7 + $0x5d8] sm:$0xf] }
 0x261   :  { %v6732_v41 = vld [vmem:[#allocation7 + $0xed4] sm:$0xf]  ;;  %v5864_v43 = vor.u32 %v6668_v32, %v5861_v36  ;;  %3890 = vmatpush.bf16.msrb.mxu1 %v5608_v39  ;;  %v6449_v36 = vld [vmem:[#allocation7 + $0x5f4] sm:$0xf0] }
 0x262   :  { %v6117_v37 = vld [vmem:[#allocation7 + $0xef0] sm:$0xf0] }
 0x263   :  { %v6532_v40 = vld [vmem:[#allocation7 + $0x894] sm:$0xf]  ;;  %v6120_v16 = vor.u32 %v6732_v41, %v6117_v37  ;;  %3903 = vmatpush.bf16.msrb.mxu2 %v5864_v43  ;;  %v5227_v41 = vld [vmem:[#allocation7 + $0x7d8] sm:$0xf] }
 0x264   :  { %v5317_v42 = vld [vmem:[#allocation7 + $0x8b0] sm:$0xf0]  ;;  %v6513_v37 = vld [vmem:[#allocation7 + $0x7f4] sm:$0xf0] }
 0x265   :  { %v6596_v44 = vld [vmem:[#allocation7 + $0xa94] sm:$0xf]  ;;  %v5320_v11 = vor.u32 %v6532_v40, %v5317_v42  ;;  %3916 = vmatpush.bf16.msrb.mxu3 %v6120_v16  ;;  %v4460_v40 = vor.u32 %v6321_v30, %v4459_v28  ;;  %v4716_v42 = vor.u32 %v6385_v33, %v4715_v31  ;;  %v4427_v43 = vld [vmem:[#allocation7 + $0x198] sm:$0xf] }
 0x266   :  { %v5573_v45 = vld [vmem:[#allocation7 + $0xab0] sm:$0xf0]  ;;  %v6313_v16 = vld [vmem:[#allocation7 + $0x1b4] sm:$0xf0] }
 0x267   :  { %v6660_v46 = vld [vmem:[#allocation7 + $0xc94] sm:$0xf]  ;;  %v5576_v56 = vor.u32 %v6596_v44, %v5573_v45  ;;  %3878 = vmatpush.bf16.msrb.mxu0 %v5320_v11  ;;  %v4972_v44 = vor.u32 %v6449_v36, %v4971_v4  ;;  %v5228_v45 = vor.u32 %v6513_v37, %v5227_v41  ;;  %v4428_v53 = vor.u32 %v6313_v16, %v4427_v43  ;;  %v6305_v11 = vld [vmem:[#allocation7 + $0x174] sm:$0xf0] }
 0x268   :  { %v5829_v50 = vld [vmem:[#allocation7 + $0xcb0] sm:$0xf0]  ;;  %v4331_v28 = vld [vmem:[#allocation7 + $0xd8] sm:$0xf] }
 0x269   :  { %v6724_v51 = vld [vmem:[#allocation7 + $0xe94] sm:$0xf]  ;;  %v5832_v59 = vor.u32 %v6660_v46, %v5829_v50  ;;  %3891 = vmatpush.bf16.msrb.mxu1 %v5576_v56  ;;  %v4683_v46 = vld [vmem:[#allocation7 + $0x398] sm:$0xf] }
 0x26a   :  { %v6085_v52 = vld [vmem:[#allocation7 + $0xeb0] sm:$0xf0]  ;;  %v6441_v50 = vld [vmem:[#allocation7 + $0x5b4] sm:$0xf0]  ;;  %v4684_v54 = vor.u32 %v6377_v48, %v4683_v46  ;;  %v3700_v48 = vpop.f32.mrf.mxu2 }
 0x26b   :  { %v6524_v57 = vld [vmem:[#allocation7 + $0x854] sm:$0xf]  ;;  %v6088_v60 = vor.u32 %v6724_v51, %v6085_v52  ;;  %3904 = vmatpush.bf16.msrb.mxu2 %v5832_v59  ;;  %v5195_v51 = vld [vmem:[#allocation7 + $0x798] sm:$0xf]  ;;  %v4940_v56 = vor.u32 %v6441_v50, %v4939_v49  ;;  %v3713_v49 = vpop.f32.mrf.mxu3 }
 0x26c   :  { %v5285_v58 = vld [vmem:[#allocation7 + $0x870] sm:$0xf0]  ;;  %v6505_v52 = vld [vmem:[#allocation7 + $0x7b4] sm:$0xf0] }
 0x26d   :  { %v6588_v61 = vld [vmem:[#allocation7 + $0xa54] sm:$0xf]  ;;  %v5288_v9 = vor.u32 %v6524_v57, %v5285_v58  ;;  %3917 = vmatpush.bf16.msrb.mxu3 %v6088_v60  ;;  %v5196_v57 = vor.u32 %v6505_v52, %v5195_v51  ;;  %v4651_v58 = vld [vmem:[#allocation7 + $0x358] sm:$0xf] }
 0x26e   :  { %v5541_v62 = vld [vmem:[#allocation7 + $0xa70] sm:$0xf0]  ;;  %v6369_v59 = vld [vmem:[#allocation7 + $0x374] sm:$0xf0] }
 0x26f   :  { %v6652_v63 = vld [vmem:[#allocation7 + $0xc54] sm:$0xf]  ;;  %v5544_v10 = vor.u32 %v6588_v61, %v5541_v62  ;;  %3879 = vmatpush.bf16.msrb.mxu0 %v5288_v9  ;;  %v4907_v60 = vld [vmem:[#allocation7 + $0x558] sm:$0xf] }
 0x270   :  { %v5797_v6 = vld [vmem:[#allocation7 + $0xc70] sm:$0xf0]  ;;  %v6433_v61 = vld [vmem:[#allocation7 + $0x574] sm:$0xf0] }
 0x271   :  { %v6716_v7 = vld [vmem:[#allocation7 + $0xe54] sm:$0xf]  ;;  %v5800_v18 = vor.u32 %v6652_v63, %v5797_v6  ;;  %3892 = vmatpush.bf16.msrb.mxu1 %v5544_v10  ;;  %v5163_v62 = vld [vmem:[#allocation7 + $0x758] sm:$0xf]  ;;  %v4396_v6 = vor.u32 %v6305_v11, %v4395_v55  ;;  %v4908_v9 = vor.u32 %v6433_v61, %v4907_v60  ;;  %v7122_v11 = vld [vmem:[#allocation10] sm:$0xff] }
 0x272   :  { %v6053_v26 = vld [vmem:[#allocation7 + $0xe70] sm:$0xf0]  ;;  %v6497_v63 = vld [vmem:[#allocation7 + $0x774] sm:$0xf0] }
 0x273   :  { %v6516_v8 = vld [vmem:[#allocation7 + $0x814] sm:$0xf]  ;;  %v6056_v21 = vor.u32 %v6716_v7, %v6053_v26  ;;  %3905 = vmatpush.bf16.msrb.mxu2 %v5800_v18  ;;  %v4652_v7 = vor.u32 %v6369_v59, %v4651_v58  ;;  %v4363_v26 = vld [vmem:[#allocation7 + $0x118] sm:$0xf]  ;;  %v5164_v10 = vor.u32 %v6497_v63, %v5163_v62 }
 0x274   :  { %v5253_v12 = vld [vmem:[#allocation7 + $0x830] sm:$0xf0]  ;;  %v6425_v18 = vld [vmem:[#allocation7 + $0x534] sm:$0xf0] }
 0x275   :  { %v6580_v15 = vld [vmem:[#allocation7 + $0xa14] sm:$0xf]  ;;  %v5256_v32 = vor.u32 %v6516_v8, %v5253_v12  ;;  %3918 = vmatpush.bf16.msrb.mxu3 %v6056_v21  ;;  %v6297_v8 = vld [vmem:[#allocation7 + $0x134] sm:$0xf0] }
 0x276   :  { %v5509_v17 = vld [vmem:[#allocation7 + $0xa30] sm:$0xf0]  ;;  %v4619_v12 = vld [vmem:[#allocation7 + $0x318] sm:$0xf]  ;;  %v4364_v47 = vor.u32 %v6297_v8, %v4363_v26 }
 0x277   :  { %v6644_v22 = vld [vmem:[#allocation7 + $0xc14] sm:$0xf]  ;;  %v5512_v34 = vor.u32 %v6580_v15, %v5509_v17  ;;  %3880 = vmatpush.bf16.msrb.mxu0 %v5256_v32  ;;  %v6361_v15 = vld [vmem:[#allocation7 + $0x334] sm:$0xf0] }
 0x278   :  { %v5765_v24 = vld [vmem:[#allocation7 + $0xc30] sm:$0xf0]  ;;  %v4875_v17 = vld [vmem:[#allocation7 + $0x518] sm:$0xf] }
 0x279   :  { %v6708_v23 = vld [vmem:[#allocation7 + $0xe14] sm:$0xf]  ;;  %v5768_v38 = vor.u32 %v6644_v22, %v5765_v24  ;;  %3893 = vmatpush.bf16.msrb.mxu1 %v5512_v34  ;;  %v5131_v21 = vld [vmem:[#allocation7 + $0x718] sm:$0xf]  ;;  %v3674_v24 = vpop.f32.mrf.mxu0  ;;  %v4876_v31 = vor.u32 %v6425_v18, %v4875_v17 }
 0x27a   :  { %v6021_v27 = vld [vmem:[#allocation7 + $0xe30] sm:$0xf0]  ;;  %3881 = vmatmul.bf16.vlgmr.msrb.gmra.mxu0 %v7040_v13  ;;  %v6489_v22 = vld [vmem:[#allocation7 + $0x734] sm:$0xf0]  ;;  %v3675_v25 = vadd.f32 %v3674_v24, %v7115_v35 }
 0x27b   :  { %v6024_v39 = vor.u32 %v6708_v23, %v6021_v27  ;;  %3906 = vmatpush.bf16.msrb.mxu2 %v5768_v38  ;;  %3925 = vmatpush.bf16.msra.mxu0 %v4460_v40  ;;  %v3687_v23 = vpop.f32.mrf.mxu1  ;;  %v4620_v27 = vor.u32 %v6361_v15, %v4619_v12  ;;  %v6289_v30 = vld [vmem:[#allocation7 + $0xf4] sm:$0xf0]  ;;  %v5132_v33 = vor.u32 %v6489_v22, %v5131_v21 }
 0x27c   :  { %3894 = vmatmul.bf16.vlgmr.msrb.gmra.mxu1 %v7042_v14  ;;  %v4587_v4 = vld [vmem:[#allocation7 + $0x2d8] sm:$0xf]  ;;  %v3688_v36 = vadd.f32 %v3687_v23, %v3675_v25 }
 0x27d   :  { %3919 = vmatpush.bf16.msrb.mxu3 %v6024_v39  ;;  %3938 = vmatpush.bf16.msra.mxu1 %v4716_v42  ;;  %v6353_v32 = vld [vmem:[#allocation7 + $0x2f4] sm:$0xf0]  ;;  %v4332_v39 = vor.u32 %v6289_v30, %v4331_v28 }
 0x27e   :  { %3907 = vmatmul.bf16.vlgmr.msrb.gmra.mxu2 %v7044_v19  ;;  %v4843_v34 = vld [vmem:[#allocation7 + $0x4d8] sm:$0xf]  ;;  %v4588_v40 = vor.u32 %v6353_v32, %v4587_v4 }
 0x27f   :  { %3951 = vmatpush.bf16.msra.mxu2 %v4972_v44  ;;  %3926 = vmatpush.bf16.msra.mxu0 %v4428_v53  ;;  %v6417_v41 = vld [vmem:[#allocation7 + $0x4f4] sm:$0xf0]  ;;  %v3701_v53 = vadd.f32 %v3700_v48, %v3688_v36 }
 0x280   :  { %3920 = vmatmul.bf16.vlgmr.msrb.gmra.mxu3 %v7046_v20  ;;  %v5099_v37 = vld [vmem:[#allocation7 + $0x6d8] sm:$0xf]  ;;  %v4844_v43 = vor.u32 %v6417_v41, %v4843_v34 }
 0x281   :  { %3964 = vmatpush.bf16.msra.mxu3 %v5228_v45  ;;  %3939 = vmatpush.bf16.msra.mxu1 %v4684_v54  ;;  %v6481_v38 = vld [vmem:[#allocation7 + $0x6f4] sm:$0xf0]  ;;  %v3676_v54 = vpop.f32.mrf.mxu0  ;;  %v3714_v61 = vadd.f32 %v3713_v49, %v3701_v53 }
 0x282   :  { %v4299_v35 = vld [vmem:[#allocation7 + $0x98] sm:$0xf]  ;;  %v5100_v16 = vor.u32 %v6481_v38, %v5099_v37 }
 0x283   :  { %3952 = vmatpush.bf16.msra.mxu2 %v4940_v56  ;;  %3927 = vmatpush.bf16.msra.mxu0 %v4396_v6  ;;  %v6281_v42 = vld [vmem:[#allocation7 + $0xb4] sm:$0xf0]  ;;  %v3689_v55 = vpop.f32.mrf.mxu1  ;;  %v4146_v56 = vperm.slane %v7122_v11, 3  ;;  %v4136_v12 = vmax.f32 %v3714_v61, 0.0 }
 0x284   :  { %v4555_v44 = vld [vmem:[#allocation7 + $0x298] sm:$0xf] }
 0x285   :  { %3965 = vmatpush.bf16.msra.mxu3 %v5196_v57  ;;  %3940 = vmatpush.bf16.msra.mxu1 %v4652_v7  ;;  %v6345_v45 = vld [vmem:[#allocation7 + $0x2b4] sm:$0xf0]  ;;  %v4300_v57 = vor.u32 %v6281_v42, %v4299_v35  ;;  %v4162_v23 = vmul.f32 %v4146_v56, %v4136_v12 }
 0x286   :  { %v4811_v46 = vld [vmem:[#allocation7 + $0x498] sm:$0xf]  ;;  %v4556_v58 = vor.u32 %v6345_v45, %v4555_v44 }
 0x287   :  { %3953 = vmatpush.bf16.msra.mxu2 %v4908_v9  ;;  %3928 = vmatpush.bf16.msra.mxu0 %v4364_v47  ;;  %v6409_v50 = vld [vmem:[#allocation7 + $0x4b4] sm:$0xf0]  ;;  %v7126_v36 = vadd.f32 %v7106_v29, %v4162_v23 }
 0x288   :  { %v5067_v51 = vld [vmem:[#allocation7 + $0x698] sm:$0xf]  ;;  %v4812_v62 = vor.u32 %v6409_v50, %v4811_v46 }
 0x289   :  { %3966 = vmatpush.bf16.msra.mxu3 %v5164_v10  ;;  %3941 = vmatpush.bf16.msra.mxu1 %v4620_v27  ;;  %v6473_v52 = vld [vmem:[#allocation7 + $0x6b4] sm:$0xf0] }
 0x28a   :  { %v4267_v59 = vld [vmem:[#allocation7 + $0x58] sm:$0xf]  ;;  %v5068_v63 = vor.u32 %v6473_v52, %v5067_v51 }
 0x28b   :  { %3954 = vmatpush.bf16.msra.mxu2 %v4876_v31  ;;  %3929 = vmatpush.bf16.msra.mxu0 %v4332_v39  ;;  %v6273_v60 = vld [vmem:[#allocation7 + $0x74] sm:$0xf0]  ;;  %v3702_v31 = vpop.f32.mrf.mxu2 }
 0x28c   :  { %v4523_v6 = vld [vmem:[#allocation7 + $0x258] sm:$0xf]  ;;  %v4268_v17 = vor.u32 %v6273_v60, %v4267_v59  ;;  %v3739_v31 = vpop.f32.mrf.mxu1 }
 0x28d   :  { %3967 = vmatpush.bf16.msra.mxu3 %v5132_v33  ;;  %3942 = vmatpush.bf16.msra.mxu1 %v4588_v40  ;;  %v6337_v7 = vld [vmem:[#allocation7 + $0x274] sm:$0xf0]  ;;  %v3715_v33 = vpop.f32.mrf.mxu3 }
 0x28e   :  { %v4779_v26 = vld [vmem:[#allocation7 + $0x458] sm:$0xf]  ;;  %v4524_v18 = vor.u32 %v6337_v7, %v4523_v6 }
 0x28f   :  { %3955 = vmatpush.bf16.msra.mxu2 %v4844_v43  ;;  %v6401_v8 = vld [vmem:[#allocation7 + $0x474] sm:$0xf0]  ;;  %3930 = vmatpush.bf16.msra.mxu0 %v4300_v57 }
 0x290   :  { %v5035_v9 = vld [vmem:[#allocation7 + $0x658] sm:$0xf]  ;;  %v4780_v25 = vor.u32 %v6401_v8, %v4779_v26 }
 0x291   :  { %3968 = vmatpush.bf16.msra.mxu3 %v5100_v16  ;;  %v6465_v10 = vld [vmem:[#allocation7 + $0x674] sm:$0xf0]  ;;  %3943 = vmatpush.bf16.msra.mxu1 %v4556_v58 }
 0x292   :  { %v4235_v15 = vld [vmem:[#allocation7 + $0x18] sm:$0xf]  ;;  %v5036_v47 = vor.u32 %v6465_v10, %v5035_v9 }
 0x293   :  { %v6265_v21 = vld [vmem:[#allocation7 + $0x34] sm:$0xf0]  ;;  %3956 = vmatpush.bf16.msra.mxu2 %v4812_v62  ;;  %3931 = vmatpush.bf16.msra.mxu0 %v4268_v17 }
 0x294   :  { %v4491_v22 = vld [vmem:[#allocation7 + $0x218] sm:$0xf]  ;;  %v4236_v39 = vor.u32 %v6265_v21, %v4235_v15  ;;  %v729_v15 = vperm.slane %v7112_v5, 4 }
 0x295   :  { %v6329_v24 = vld [vmem:[#allocation7 + $0x234] sm:$0xf0]  ;;  %3969 = vmatpush.bf16.msra.mxu3 %v5068_v63  ;;  %3944 = vmatpush.bf16.msra.mxu1 %v4524_v18 }
 0x296   :  { %v4747_v27 = vld [vmem:[#allocation7 + $0x418] sm:$0xf]  ;;  %v4492_v40 = vor.u32 %v6329_v24, %v4491_v22 }
 0x297   :  { %v6393_v28 = vld [vmem:[#allocation7 + $0x434] sm:$0xf0]  ;;  %3957 = vmatpush.bf16.msra.mxu2 %v4780_v25  ;;  %3932 = vmatpush.bf16.msra.mxu0 %v4236_v39 }
 0x298   :  { %v5003_v30 = vld [vmem:[#allocation7 + $0x618] sm:$0xf]  ;;  %v4748_v16 = vor.u32 %v6393_v28, %v4747_v27 }
 0x299   :  { %v6457_v4 = vld [vmem:[#allocation7 + $0x634] sm:$0xf0]  ;;  %3970 = vmatpush.bf16.msra.mxu3 %v5036_v47  ;;  %3945 = vmatpush.bf16.msra.mxu1 %v4492_v40 }
 0x29a   :  { %v5483_v32 = vld [vmem:[#allocation7 + $0x9d8] sm:$0xf]  ;;  %v5004_v44 = vor.u32 %v6457_v4, %v5003_v30  ;;  %3933 = vmatmul.bf16.vlgmr.msra.gmra.mxu0 %v7019_v0  ;;  %v3726_v30 = vpop.f32.mrf.mxu0 }
 0x29b   :  { %v6577_v34 = vld [vmem:[#allocation7 + $0x9f4] sm:$0xf0]  ;;  %3958 = vmatpush.bf16.msra.mxu2 %v4748_v16  ;;  %v3727_v33 = vadd.f32 %v3726_v30, %v729_v15 }
 0x29c   :  { %v5739_v41 = vld [vmem:[#allocation7 + $0xbd8] sm:$0xf]  ;;  %v5484_v45 = vor.u32 %v6577_v34, %v5483_v32  ;;  %3946 = vmatmul.bf16.vlgmr.msra.gmra.mxu1 %v7021_v1 }
 0x29d   :  { %v6641_v37 = vld [vmem:[#allocation7 + $0xbf4] sm:$0xf0]  ;;  %3971 = vmatpush.bf16.msra.mxu3 %v5004_v44 }
 0x29e   :  { %v5995_v38 = vld [vmem:[#allocation7 + $0xdd8] sm:$0xf]  ;;  %v5740_v46 = vor.u32 %v6641_v37, %v5739_v41  ;;  %3977 = vmatpush.bf16.msrb.mxu0 %v5484_v45  ;;  %3959 = vmatmul.bf16.vlgmr.msra.gmra.mxu2 %v7023_v2 }
 0x29f   :  { %v6705_v35 = vld [vmem:[#allocation7 + $0xdf4] sm:$0xf0] }
 0x2a0   :  { %v6251_v42 = vld [vmem:[#allocation7 + $0xfd8] sm:$0xf]  ;;  %v5996_v29 = vor.u32 %v6705_v35, %v5995_v38  ;;  %3990 = vmatpush.bf16.msrb.mxu1 %v5740_v46  ;;  %3972 = vmatmul.bf16.vlgmr.msra.gmra.mxu3 %v7025_v3  ;;  %v3740_v35 = vadd.f32 %v3739_v31, %v3727_v33 }
 0x2a1   :  { %v6769_v43 = vld [vmem:[#allocation7 + $0xff4] sm:$0xf0] }
 0x2a2   :  { %v5451_v48 = vld [vmem:[#allocation7 + $0x998] sm:$0xf]  ;;  %v6252_v50 = vor.u32 %v6769_v43, %v6251_v42  ;;  %4003 = vmatpush.bf16.msrb.mxu2 %v5996_v29 }
 0x2a3   :  { %v6569_v49 = vld [vmem:[#allocation7 + $0x9b4] sm:$0xf0] }
 0x2a4   :  { %v5707_v51 = vld [vmem:[#allocation7 + $0xb98] sm:$0xf]  ;;  %v5452_v57 = vor.u32 %v6569_v49, %v5451_v48  ;;  %4016 = vmatpush.bf16.msrb.mxu3 %v6252_v50 }
 0x2a5   :  { %v6633_v52 = vld [vmem:[#allocation7 + $0xbb4] sm:$0xf0] }
 0x2a6   :  { %v5963_v53 = vld [vmem:[#allocation7 + $0xd98] sm:$0xf]  ;;  %v5708_v58 = vor.u32 %v6633_v52, %v5707_v51  ;;  %3978 = vmatpush.bf16.msrb.mxu0 %v5452_v57 }
 0x2a7   :  { %v6697_v54 = vld [vmem:[#allocation7 + $0xdb4] sm:$0xf0] }
 0x2a8   :  { %v6219_v55 = vld [vmem:[#allocation7 + $0xf98] sm:$0xf]  ;;  %v5964_v61 = vor.u32 %v6697_v54, %v5963_v53  ;;  %3991 = vmatpush.bf16.msrb.mxu1 %v5708_v58  ;;  %v3752_v53 = vpop.f32.mrf.mxu2  ;;  %v3765_v54 = vpop.f32.mrf.mxu3 }
 0x2a9   :  { %v6761_v56 = vld [vmem:[#allocation7 + $0xfb4] sm:$0xf0]  ;;  %v3753_v58 = vadd.f32 %v3752_v53, %v3740_v35  ;;  %v4685_v53 = vld [vmem:[#allocation7 + $0x3b8] sm:$0xf0] }
 0x2aa   :  { %v5419_v59 = vld [vmem:[#allocation7 + $0x958] sm:$0xf]  ;;  %v6220_v62 = vor.u32 %v6761_v56, %v6219_v55  ;;  %4004 = vmatpush.bf16.msrb.mxu2 %v5964_v61 }
 0x2ab   :  { %v6561_v60 = vld [vmem:[#allocation7 + $0x974] sm:$0xf0] }
 0x2ac   :  { %v5675_v63 = vld [vmem:[#allocation7 + $0xb58] sm:$0xf]  ;;  %v5420_v10 = vor.u32 %v6561_v60, %v5419_v59  ;;  %4017 = vmatpush.bf16.msrb.mxu3 %v6220_v62  ;;  %v3728_v59 = vpop.f32.mrf.mxu0  ;;  %v3741_v60 = vpop.f32.mrf.mxu1 }
 0x2ad   :  { %v6625_v6 = vld [vmem:[#allocation7 + $0xb74] sm:$0xf0]  ;;  %v6301_v60 = vld [vmem:[#allocation7 + $0x15c] sm:$0xf] }
 0x2ae   :  { %v5931_v7 = vld [vmem:[#allocation7 + $0xd58] sm:$0xf]  ;;  %v5676_v12 = vor.u32 %v6625_v6, %v5675_v63  ;;  %3979 = vmatpush.bf16.msrb.mxu0 %v5420_v10 }
 0x2af   :  { %v6689_v26 = vld [vmem:[#allocation7 + $0xd74] sm:$0xf0] }
 0x2b0   :  { %v6187_v8 = vld [vmem:[#allocation7 + $0xf58] sm:$0xf]  ;;  %v5932_v21 = vor.u32 %v6689_v26, %v5931_v7  ;;  %3992 = vmatpush.bf16.msrb.mxu1 %v5676_v12  ;;  %v7133_v7 = vadd.f32 %v3765_v54, %v3753_v58  ;;  %v6437_v54 = vld [vmem:[#allocation7 + $0x59c] sm:$0xf] }
 0x2b1   :  { %v6753_v9 = vld [vmem:[#allocation7 + $0xf74] sm:$0xf0] }
 0x2b2   :  { %v5387_v17 = vld [vmem:[#allocation7 + $0x918] sm:$0xf]  ;;  %v6188_v22 = vor.u32 %v6753_v9, %v6187_v8  ;;  %4005 = vmatpush.bf16.msrb.mxu2 %v5932_v21 }
 0x2b3   :  { %v6553_v18 = vld [vmem:[#allocation7 + $0x934] sm:$0xf0] }
 0x2b4   :  { %v5643_v24 = vld [vmem:[#allocation7 + $0xb18] sm:$0xf]  ;;  %v5388_v4 = vor.u32 %v6553_v18, %v5387_v17  ;;  %4018 = vmatpush.bf16.msrb.mxu3 %v6188_v22 }
 0x2b5   :  { %v6617_v23 = vld [vmem:[#allocation7 + $0xb34] sm:$0xf0] }
 0x2b6   :  { %v5899_v25 = vld [vmem:[#allocation7 + $0xd18] sm:$0xf]  ;;  %v5644_v32 = vor.u32 %v6617_v23, %v5643_v24  ;;  %3980 = vmatpush.bf16.msrb.mxu0 %v5388_v4  ;;  %v3754_v4 = vpop.f32.mrf.mxu2 }
 0x2b7   :  { %v6681_v47 = vld [vmem:[#allocation7 + $0xd34] sm:$0xf0] }
 0x2b8   :  { %v6155_v27 = vld [vmem:[#allocation7 + $0xf18] sm:$0xf]  ;;  %v5900_v41 = vor.u32 %v6681_v47, %v5899_v25  ;;  %3993 = vmatpush.bf16.msrb.mxu1 %v5644_v32  ;;  %v3767_v32 = vpop.f32.mrf.mxu3 }
 0x2b9   :  { %v6745_v28 = vld [vmem:[#allocation7 + $0xf34] sm:$0xf0] }
 0x2ba   :  { %v5355_v5 = vld [vmem:[#allocation7 + $0x8d8] sm:$0xf]  ;;  %v6156_v37 = vor.u32 %v6745_v28, %v6155_v27  ;;  %4006 = vmatpush.bf16.msrb.mxu2 %v5900_v41  ;;  %v4461_v41 = vld [vmem:[#allocation7 + $0x1f8] sm:$0xf0] }
 0x2bb   :  { %v6545_v34 = vld [vmem:[#allocation7 + $0x8f4] sm:$0xf0] }
 0x2bc   :  { %v5611_v38 = vld [vmem:[#allocation7 + $0xad8] sm:$0xf]  ;;  %v5356_v44 = vor.u32 %v6545_v34, %v5355_v5  ;;  %4019 = vmatpush.bf16.msrb.mxu3 %v6156_v37  ;;  %v6317_v34 = vld [vmem:[#allocation7 + $0x1dc] sm:$0xf] }
 0x2bd   :  { %v6609_v39 = vld [vmem:[#allocation7 + $0xaf4] sm:$0xf0]  ;;  %v6381_v37 = vld [vmem:[#allocation7 + $0x3dc] sm:$0xf] }
 0x2be   :  { %v5867_v40 = vld [vmem:[#allocation7 + $0xcd8] sm:$0xf]  ;;  %v5612_v45 = vor.u32 %v6609_v39, %v5611_v38  ;;  %3981 = vmatpush.bf16.msrb.mxu0 %v5356_v44  ;;  %v4717_v38 = vld [vmem:[#allocation7 + $0x3f8] sm:$0xf0] }
 0x2bf   :  { %v6673_v42 = vld [vmem:[#allocation7 + $0xcf4] sm:$0xf0]  ;;  %v6445_v39 = vld [vmem:[#allocation7 + $0x5dc] sm:$0xf] }
 0x2c0   :  { %v6123_v43 = vld [vmem:[#allocation7 + $0xed8] sm:$0xf]  ;;  %v5868_v49 = vor.u32 %v6673_v42, %v5867_v40  ;;  %3994 = vmatpush.bf16.msrb.mxu1 %v5612_v45  ;;  %v4973_v42 = vld [vmem:[#allocation7 + $0x5f8] sm:$0xf0] }
 0x2c1   :  { %v6737_v16 = vld [vmem:[#allocation7 + $0xef4] sm:$0xf0] }
 0x2c2   :  { %v5323_v46 = vld [vmem:[#allocation7 + $0x898] sm:$0xf]  ;;  %v6124_v29 = vor.u32 %v6737_v16, %v6123_v43  ;;  %4007 = vmatpush.bf16.msrb.mxu2 %v5868_v49  ;;  %v6509_v43 = vld [vmem:[#allocation7 + $0x7dc] sm:$0xf] }
 0x2c3   :  { %v6537_v48 = vld [vmem:[#allocation7 + $0x8b4] sm:$0xf0]  ;;  %v5229_v16 = vld [vmem:[#allocation7 + $0x7f8] sm:$0xf0] }
 0x2c4   :  { %v5579_v50 = vld [vmem:[#allocation7 + $0xa98] sm:$0xf]  ;;  %v5324_v61 = vor.u32 %v6537_v48, %v5323_v46  ;;  %4020 = vmatpush.bf16.msrb.mxu3 %v6124_v29  ;;  %v4464_v46 = vor.u32 %v6317_v34, %v4461_v41  ;;  %v4720_v48 = vor.u32 %v6381_v37, %v4717_v38  ;;  %v6309_v49 = vld [vmem:[#allocation7 + $0x19c] sm:$0xf] }
 0x2c5   :  { %v6601_v51 = vld [vmem:[#allocation7 + $0xab4] sm:$0xf0]  ;;  %v4429_v29 = vld [vmem:[#allocation7 + $0x1b8] sm:$0xf0] }
 0x2c6   :  { %v5835_v52 = vld [vmem:[#allocation7 + $0xc98] sm:$0xf]  ;;  %v5580_v62 = vor.u32 %v6601_v51, %v5579_v50  ;;  %3982 = vmatpush.bf16.msrb.mxu0 %v5324_v61  ;;  %v4976_v50 = vor.u32 %v6445_v39, %v4973_v42  ;;  %v5232_v51 = vor.u32 %v6509_v43, %v5229_v16  ;;  %v4432_v58 = vor.u32 %v6309_v49, %v4429_v29  ;;  %v4397_v61 = vld [vmem:[#allocation7 + $0x178] sm:$0xf0] }
 0x2c7   :  { %v6665_v55 = vld [vmem:[#allocation7 + $0xcb4] sm:$0xf0]  ;;  %v6285_v34 = vld [vmem:[#allocation7 + $0xdc] sm:$0xf] }
 0x2c8   :  { %v6091_v56 = vld [vmem:[#allocation7 + $0xe98] sm:$0xf]  ;;  %v5836_v26 = vor.u32 %v6665_v55, %v5835_v52  ;;  %3995 = vmatpush.bf16.msrb.mxu1 %v5580_v62  ;;  %v6373_v52 = vld [vmem:[#allocation7 + $0x39c] sm:$0xf] }
 0x2c9   :  { %v6729_v57 = vld [vmem:[#allocation7 + $0xeb4] sm:$0xf0]  ;;  %v4941_v55 = vld [vmem:[#allocation7 + $0x5b8] sm:$0xf0]  ;;  %v4688_v59 = vor.u32 %v6373_v52, %v4685_v53  ;;  %v3804_v53 = vpop.f32.mrf.mxu2 }
 0x2ca   :  { %v5291_v63 = vld [vmem:[#allocation7 + $0x858] sm:$0xf]  ;;  %v6092_v8 = vor.u32 %v6729_v57, %v6091_v56  ;;  %4008 = vmatpush.bf16.msrb.mxu2 %v5836_v26  ;;  %v6501_v56 = vld [vmem:[#allocation7 + $0x79c] sm:$0xf]  ;;  %v4944_v62 = vor.u32 %v6437_v54, %v4941_v55  ;;  %v3817_v54 = vpop.f32.mrf.mxu3 }
 0x2cb   :  { %v6529_v6 = vld [vmem:[#allocation7 + $0x874] sm:$0xf0]  ;;  %v5197_v57 = vld [vmem:[#allocation7 + $0x7b8] sm:$0xf0] }
 0x2cc   :  { %v5547_v9 = vld [vmem:[#allocation7 + $0xa58] sm:$0xf]  ;;  %v5292_v22 = vor.u32 %v6529_v6, %v5291_v63  ;;  %4021 = vmatpush.bf16.msrb.mxu3 %v6092_v8  ;;  %v5200_v63 = vor.u32 %v6501_v56, %v5197_v57  ;;  %v6365_v6 = vld [vmem:[#allocation7 + $0x35c] sm:$0xf] }
 0x2cd   :  { %v6593_v10 = vld [vmem:[#allocation7 + $0xa74] sm:$0xf0]  ;;  %v4653_v26 = vld [vmem:[#allocation7 + $0x378] sm:$0xf0] }
 0x2ce   :  { %v5803_v12 = vld [vmem:[#allocation7 + $0xc58] sm:$0xf]  ;;  %v5548_v24 = vor.u32 %v6593_v10, %v5547_v9  ;;  %3983 = vmatpush.bf16.msrb.mxu0 %v5292_v22  ;;  %v6429_v8 = vld [vmem:[#allocation7 + $0x55c] sm:$0xf] }
 0x2cf   :  { %v6657_v15 = vld [vmem:[#allocation7 + $0xc74] sm:$0xf0]  ;;  %v4909_v9 = vld [vmem:[#allocation7 + $0x578] sm:$0xf0] }
 0x2d0   :  { %v6059_v17 = vld [vmem:[#allocation7 + $0xe58] sm:$0xf]  ;;  %v5804_v27 = vor.u32 %v6657_v15, %v5803_v12  ;;  %3996 = vmatpush.bf16.msrb.mxu1 %v5548_v24  ;;  %v6493_v10 = vld [vmem:[#allocation7 + $0x75c] sm:$0xf]  ;;  %v4400_v15 = vor.u32 %v6301_v60, %v4397_v61  ;;  %v4912_v22 = vor.u32 %v6429_v8, %v4909_v9  ;;  %v4147_v61 = vperm.slane %v7122_v11, 4 }
 0x2d1   :  { %v6721_v18 = vld [vmem:[#allocation7 + $0xe74] sm:$0xf0]  ;;  %v5165_v12 = vld [vmem:[#allocation7 + $0x778] sm:$0xf0] }
 0x2d2   :  { %v5259_v21 = vld [vmem:[#allocation7 + $0x818] sm:$0xf]  ;;  %v6060_v28 = vor.u32 %v6721_v18, %v6059_v17  ;;  %4009 = vmatpush.bf16.msrb.mxu2 %v5804_v27  ;;  %v4656_v17 = vor.u32 %v6365_v6, %v4653_v26  ;;  %v6293_v18 = vld [vmem:[#allocation7 + $0x11c] sm:$0xf]  ;;  %v5168_v24 = vor.u32 %v6493_v10, %v5165_v12 }
 0x2d3   :  { %v6521_v23 = vld [vmem:[#allocation7 + $0x834] sm:$0xf0]  ;;  %v4877_v27 = vld [vmem:[#allocation7 + $0x538] sm:$0xf0] }
 0x2d4   :  { %v5515_v25 = vld [vmem:[#allocation7 + $0xa18] sm:$0xf]  ;;  %v5260_v40 = vor.u32 %v6521_v23, %v5259_v21  ;;  %4022 = vmatpush.bf16.msrb.mxu3 %v6060_v28  ;;  %v4365_v21 = vld [vmem:[#allocation7 + $0x138] sm:$0xf0] }
 0x2d5   :  { %v6585_v47 = vld [vmem:[#allocation7 + $0xa34] sm:$0xf0]  ;;  %v6357_v23 = vld [vmem:[#allocation7 + $0x31c] sm:$0xf]  ;;  %v4368_v32 = vor.u32 %v6293_v18, %v4365_v21 }
 0x2d6   :  { %v5771_v30 = vld [vmem:[#allocation7 + $0xc18] sm:$0xf]  ;;  %v5516_v35 = vor.u32 %v6585_v47, %v5515_v25  ;;  %3984 = vmatpush.bf16.msrb.mxu0 %v5260_v40  ;;  %v4621_v25 = vld [vmem:[#allocation7 + $0x338] sm:$0xf0] }
 0x2d7   :  { %v6649_v31 = vld [vmem:[#allocation7 + $0xc34] sm:$0xf0]  ;;  %v6421_v47 = vld [vmem:[#allocation7 + $0x51c] sm:$0xf] }
 0x2d8   :  { %v6027_v33 = vld [vmem:[#allocation7 + $0xe18] sm:$0xf]  ;;  %v5772_v44 = vor.u32 %v6649_v31, %v5771_v30  ;;  %3997 = vmatpush.bf16.msrb.mxu1 %v5516_v35  ;;  %v6485_v28 = vld [vmem:[#allocation7 + $0x71c] sm:$0xf]  ;;  %v3778_v31 = vpop.f32.mrf.mxu0  ;;  %v4880_v37 = vor.u32 %v6421_v47, %v4877_v27 }
 0x2d9   :  { %v6713_v5 = vld [vmem:[#allocation7 + $0xe34] sm:$0xf0]  ;;  %3985 = vmatmul.bf16.vlgmr.msrb.gmra.mxu0 %v7040_v13  ;;  %v5133_v30 = vld [vmem:[#allocation7 + $0x738] sm:$0xf0]  ;;  %v3779_v4 = vadd.f32 %v3778_v31, %v7133_v7 }
 0x2da   :  { %v6028_v45 = vor.u32 %v6713_v5, %v6027_v33  ;;  %4010 = vmatpush.bf16.msrb.mxu2 %v5772_v44  ;;  %4029 = vmatpush.bf16.msra.mxu0 %v4464_v46  ;;  %v3791_v33 = vpop.f32.mrf.mxu1  ;;  %v4624_v5 = vor.u32 %v6357_v23, %v4621_v25  ;;  %v4333_v41 = vld [vmem:[#allocation7 + $0xf8] sm:$0xf0]  ;;  %v5136_v38 = vor.u32 %v6485_v28, %v5133_v30 }
 0x2db   :  { %3998 = vmatmul.bf16.vlgmr.msrb.gmra.mxu1 %v7042_v14  ;;  %v6349_v39 = vld [vmem:[#allocation7 + $0x2dc] sm:$0xf]  ;;  %v3792_v42 = vadd.f32 %v3791_v33, %v3779_v4 }
 0x2dc   :  { %4023 = vmatpush.bf16.msrb.mxu3 %v6028_v45  ;;  %4042 = vmatpush.bf16.msra.mxu1 %v4720_v48  ;;  %v4589_v40 = vld [vmem:[#allocation7 + $0x2f8] sm:$0xf0]  ;;  %v4336_v45 = vor.u32 %v6285_v34, %v4333_v41  ;;  %v3806_v41 = vpop.f32.mrf.mxu2 }
 0x2dd   :  { %4011 = vmatmul.bf16.vlgmr.msrb.gmra.mxu2 %v7044_v19  ;;  %v6413_v35 = vld [vmem:[#allocation7 + $0x4dc] sm:$0xf]  ;;  %v4592_v46 = vor.u32 %v6349_v39, %v4589_v40 }
 0x2de   :  { %4055 = vmatpush.bf16.msra.mxu2 %v4976_v50  ;;  %4030 = vmatpush.bf16.msra.mxu0 %v4432_v58  ;;  %v4845_v43 = vld [vmem:[#allocation7 + $0x4f8] sm:$0xf0]  ;;  %v3805_v58 = vadd.f32 %v3804_v53, %v3792_v42 }
 0x2df   :  { %4024 = vmatmul.bf16.vlgmr.msrb.gmra.mxu3 %v7046_v20  ;;  %v6477_v16 = vld [vmem:[#allocation7 + $0x6dc] sm:$0xf]  ;;  %v4848_v49 = vor.u32 %v6413_v35, %v4845_v43 }
 0x2e0   :  { %4068 = vmatpush.bf16.msra.mxu3 %v5232_v51  ;;  %4043 = vmatpush.bf16.msra.mxu1 %v4688_v59  ;;  %v5101_v44 = vld [vmem:[#allocation7 + $0x6f8] sm:$0xf0]  ;;  %v3780_v59 = vpop.f32.mrf.mxu0  ;;  %v3818_v8 = vadd.f32 %v3817_v54, %v3805_v58 }
 0x2e1   :  { %v6277_v7 = vld [vmem:[#allocation7 + $0x9c] sm:$0xf]  ;;  %v5104_v29 = vor.u32 %v6477_v16, %v5101_v44 }
 0x2e2   :  { %4056 = vmatpush.bf16.msra.mxu2 %v4944_v62  ;;  %4031 = vmatpush.bf16.msra.mxu0 %v4400_v15  ;;  %v4301_v48 = vld [vmem:[#allocation7 + $0xb8] sm:$0xf0]  ;;  %v3793_v60 = vpop.f32.mrf.mxu1 }
 0x2e3   :  { %v6341_v50 = vld [vmem:[#allocation7 + $0x29c] sm:$0xf]  ;;  %v4304_v62 = vor.u32 %v6277_v7, %v4301_v48 }
 0x2e4   :  { %4069 = vmatpush.bf16.msra.mxu3 %v5200_v63  ;;  %4044 = vmatpush.bf16.msra.mxu1 %v4656_v17  ;;  %v4557_v51 = vld [vmem:[#allocation7 + $0x2b8] sm:$0xf0] }
 0x2e5   :  { %v6405_v52 = vld [vmem:[#allocation7 + $0x49c] sm:$0xf]  ;;  %v4560_v63 = vor.u32 %v6341_v50, %v4557_v51 }
 0x2e6   :  { %4057 = vmatpush.bf16.msra.mxu2 %v4912_v22  ;;  %4032 = vmatpush.bf16.msra.mxu0 %v4368_v32  ;;  %v4813_v55 = vld [vmem:[#allocation7 + $0x4b8] sm:$0xf0] }
 0x2e7   :  { %v6469_v56 = vld [vmem:[#allocation7 + $0x69c] sm:$0xf]  ;;  %v4816_v9 = vor.u32 %v6405_v52, %v4813_v55 }
 0x2e8   :  { %4070 = vmatpush.bf16.msra.mxu3 %v5168_v24  ;;  %4045 = vmatpush.bf16.msra.mxu1 %v4624_v5  ;;  %v5069_v57 = vld [vmem:[#allocation7 + $0x6b8] sm:$0xf0]  ;;  %v4137_v24 = vmax.f32 %v3818_v8, 0.0 }
 0x2e9   :  { %v6269_v6 = vld [vmem:[#allocation7 + $0x5c] sm:$0xf]  ;;  %v5072_v10 = vor.u32 %v6469_v56, %v5069_v57 }
 0x2ea   :  { %4058 = vmatpush.bf16.msra.mxu2 %v4880_v37  ;;  %4033 = vmatpush.bf16.msra.mxu0 %v4336_v45  ;;  %v4269_v26 = vld [vmem:[#allocation7 + $0x78] sm:$0xf0]  ;;  %v4163_v31 = vmul.f32 %v4147_v61, %v4137_v24  ;;  %v3819_v37 = vpop.f32.mrf.mxu3  ;;  %v7148_v24 = vld [vmem:[#allocation8] sm:$0xff] }
 0x2eb   :  { %v6333_v12 = vld [vmem:[#allocation7 + $0x25c] sm:$0xf]  ;;  %v4272_v25 = vor.u32 %v6269_v6, %v4269_v26 }
 0x2ec   :  { %4071 = vmatpush.bf16.msra.mxu3 %v5136_v38  ;;  %4046 = vmatpush.bf16.msra.mxu1 %v4592_v46  ;;  %v4525_v15 = vld [vmem:[#allocation7 + $0x278] sm:$0xf0]  ;;  %v7142_v35 = vadd.f32 %v7126_v36, %v4163_v31 }
 0x2ed   :  { %v6397_v17 = vld [vmem:[#allocation7 + $0x45c] sm:$0xf]  ;;  %v4528_v47 = vor.u32 %v6333_v12, %v4525_v15 }
 0x2ee   :  { %4059 = vmatpush.bf16.msra.mxu2 %v4848_v49  ;;  %v4781_v18 = vld [vmem:[#allocation7 + $0x478] sm:$0xf0]  ;;  %4034 = vmatpush.bf16.msra.mxu0 %v4304_v62 }
 0x2ef   :  { %v6461_v21 = vld [vmem:[#allocation7 + $0x65c] sm:$0xf]  ;;  %v4784_v33 = vor.u32 %v6397_v17, %v4781_v18 }
 0x2f0   :  { %4072 = vmatpush.bf16.msra.mxu3 %v5104_v29  ;;  %v5037_v22 = vld [vmem:[#allocation7 + $0x678] sm:$0xf0]  ;;  %4047 = vmatpush.bf16.msra.mxu1 %v4560_v63 }
 0x2f1   :  { %v6261_v23 = vld [vmem:[#allocation7 + $0x1c] sm:$0xf]  ;;  %v5040_v4 = vor.u32 %v6461_v21, %v5037_v22 }
 0x2f2   :  { %v4237_v27 = vld [vmem:[#allocation7 + $0x38] sm:$0xf0]  ;;  %4060 = vmatpush.bf16.msra.mxu2 %v4816_v9  ;;  %4035 = vmatpush.bf16.msra.mxu0 %v4272_v25 }
 0x2f3   :  { %v6325_v28 = vld [vmem:[#allocation7 + $0x21c] sm:$0xf]  ;;  %v4240_v44 = vor.u32 %v6261_v23, %v4237_v27  ;;  %v730_v23 = vperm.slane %v7148_v24, 5 }
 0x2f4   :  { %v4493_v30 = vld [vmem:[#allocation7 + $0x238] sm:$0xf0]  ;;  %4073 = vmatpush.bf16.msra.mxu3 %v5072_v10  ;;  %4048 = vmatpush.bf16.msra.mxu1 %v4528_v47 }
 0x2f5   :  { %v6389_v32 = vld [vmem:[#allocation7 + $0x41c] sm:$0xf]  ;;  %v4496_v45 = vor.u32 %v6325_v28, %v4493_v30 }
 0x2f6   :  { %v4749_v5 = vld [vmem:[#allocation7 + $0x438] sm:$0xf0]  ;;  %4061 = vmatpush.bf16.msra.mxu2 %v4784_v33  ;;  %4036 = vmatpush.bf16.msra.mxu0 %v4240_v44  ;;  %v3830_v33 = vpop.f32.mrf.mxu0 }
 0x2f7   :  { %v6453_v34 = vld [vmem:[#allocation7 + $0x61c] sm:$0xf]  ;;  %v4752_v49 = vor.u32 %v6389_v32, %v4749_v5  ;;  %v3831_v32 = vadd.f32 %v3830_v33, %v730_v23 }
 0x2f8   :  { %v5005_v38 = vld [vmem:[#allocation7 + $0x638] sm:$0xf0]  ;;  %4074 = vmatpush.bf16.msra.mxu3 %v5040_v4  ;;  %4049 = vmatpush.bf16.msra.mxu1 %v4496_v45  ;;  %v3843_v4 = vpop.f32.mrf.mxu1 }
 0x2f9   :  { %v6573_v39 = vld [vmem:[#allocation7 + $0x9dc] sm:$0xf]  ;;  %v5008_v29 = vor.u32 %v6453_v34, %v5005_v38  ;;  %4037 = vmatmul.bf16.vlgmr.msra.gmra.mxu0 %v7019_v0 }
 0x2fa   :  { %v5485_v40 = vld [vmem:[#allocation7 + $0x9f8] sm:$0xf0]  ;;  %4062 = vmatpush.bf16.msra.mxu2 %v4752_v49 }
 0x2fb   :  { %v6637_v42 = vld [vmem:[#allocation7 + $0xbdc] sm:$0xf]  ;;  %v5488_v50 = vor.u32 %v6573_v39, %v5485_v40  ;;  %4050 = vmatmul.bf16.vlgmr.msra.gmra.mxu1 %v7021_v1 }
 0x2fc   :  { %v5741_v43 = vld [vmem:[#allocation7 + $0xbf8] sm:$0xf0]  ;;  %4075 = vmatpush.bf16.msra.mxu3 %v5008_v29 }
 0x2fd   :  { %v6701_v16 = vld [vmem:[#allocation7 + $0xddc] sm:$0xf]  ;;  %v5744_v51 = vor.u32 %v6637_v42, %v5741_v43  ;;  %4081 = vmatpush.bf16.msrb.mxu0 %v5488_v50  ;;  %4063 = vmatmul.bf16.vlgmr.msra.gmra.mxu2 %v7023_v2 }
 0x2fe   :  { %v5997_v46 = vld [vmem:[#allocation7 + $0xdf8] sm:$0xf0] }
 0x2ff   :  { %v6765_v7 = vld [vmem:[#allocation7 + $0xfdc] sm:$0xf]  ;;  %v6000_v36 = vor.u32 %v6701_v16, %v5997_v46  ;;  %4094 = vmatpush.bf16.msrb.mxu1 %v5744_v51  ;;  %4076 = vmatmul.bf16.vlgmr.msra.gmra.mxu3 %v7025_v3  ;;  %v3844_v16 = vadd.f32 %v3843_v4, %v3831_v32 }
 0x300   :  { %v6253_v48 = vld [vmem:[#allocation7 + $0xff8] sm:$0xf0] }
 0x301   :  { %v6565_v52 = vld [vmem:[#allocation7 + $0x99c] sm:$0xf]  ;;  %v6256_v54 = vor.u32 %v6765_v7, %v6253_v48  ;;  %4107 = vmatpush.bf16.msrb.mxu2 %v6000_v36 }
 0x302   :  { %v5453_v53 = vld [vmem:[#allocation7 + $0x9b8] sm:$0xf0] }
 0x303   :  { %v6629_v55 = vld [vmem:[#allocation7 + $0xb9c] sm:$0xf]  ;;  %v5456_v61 = vor.u32 %v6565_v52, %v5453_v53  ;;  %4120 = vmatpush.bf16.msrb.mxu3 %v6256_v54  ;;  %v3856_v54 = vpop.f32.mrf.mxu2 }
 0x304   :  { %v5709_v56 = vld [vmem:[#allocation7 + $0xbb8] sm:$0xf0] }
 0x305   :  { %v6693_v57 = vld [vmem:[#allocation7 + $0xd9c] sm:$0xf]  ;;  %v5712_v62 = vor.u32 %v6629_v55, %v5709_v56  ;;  %4082 = vmatpush.bf16.msrb.mxu0 %v5456_v61  ;;  %v3869_v55 = vpop.f32.mrf.mxu3  ;;  %v3845_v61 = vpop.f32.mrf.mxu1 }
 0x306   :  { %v5965_v58 = vld [vmem:[#allocation7 + $0xdb8] sm:$0xf0] }
 0x307   :  { %v6757_v59 = vld [vmem:[#allocation7 + $0xf9c] sm:$0xf]  ;;  %v5968_v26 = vor.u32 %v6693_v57, %v5965_v58  ;;  %4095 = vmatpush.bf16.msrb.mxu1 %v5712_v62 }
 0x308   :  { %v6221_v60 = vld [vmem:[#allocation7 + $0xfb8] sm:$0xf0] }
 0x309   :  { %v6557_v63 = vld [vmem:[#allocation7 + $0x95c] sm:$0xf]  ;;  %v6224_v8 = vor.u32 %v6757_v59, %v6221_v60  ;;  %4108 = vmatpush.bf16.msrb.mxu2 %v5968_v26  ;;  %v3857_v59 = vadd.f32 %v3856_v54, %v3844_v16  ;;  %v3832_v60 = vpop.f32.mrf.mxu0 }
 0x30a   :  { %v5421_v6 = vld [vmem:[#allocation7 + $0x978] sm:$0xf0] }
 0x30b   :  { %v6621_v9 = vld [vmem:[#allocation7 + $0xb5c] sm:$0xf]  ;;  %v5424_v21 = vor.u32 %v6557_v63, %v5421_v6  ;;  %4121 = vmatpush.bf16.msrb.mxu3 %v6224_v8  ;;  %v3870_v8 = vadd.f32 %v3869_v55, %v3857_v59 }
 0x30c   :  { %v5677_v10 = vld [vmem:[#allocation7 + $0xb78] sm:$0xf0] }
 0x30d   :  { %v6685_v12 = vld [vmem:[#allocation7 + $0xd5c] sm:$0xf]  ;;  %v5680_v22 = vor.u32 %v6621_v9, %v5677_v10  ;;  %4083 = vmatpush.bf16.msrb.mxu0 %v5424_v21 }
 0x30e   :  { %v5933_v15 = vld [vmem:[#allocation7 + $0xd78] sm:$0xf0] }
 0x30f   :  { %v6749_v17 = vld [vmem:[#allocation7 + $0xf5c] sm:$0xf]  ;;  %v5936_v0 = vor.u32 %v6685_v12, %v5933_v15  ;;  %4096 = vmatpush.bf16.msrb.mxu1 %v5680_v22 }
 0x310   :  { %v6189_v18 = vld [vmem:[#allocation7 + $0xf78] sm:$0xf0] }
 0x311   :  { %v6549_v25 = vld [vmem:[#allocation7 + $0x91c] sm:$0xf]  ;;  %v6192_v1 = vor.u32 %v6749_v17, %v6189_v18  ;;  %4109 = vmatpush.bf16.msrb.mxu2 %v5936_v0 }
 0x312   :  { %v5389_v47 = vld [vmem:[#allocation7 + $0x938] sm:$0xf0] }
 0x313   :  { %v6613_v27 = vld [vmem:[#allocation7 + $0xb1c] sm:$0xf]  ;;  %v5392_v5 = vor.u32 %v6549_v25, %v5389_v47  ;;  %4122 = vmatpush.bf16.msrb.mxu3 %v6192_v1 }
 0x314   :  { %v5645_v28 = vld [vmem:[#allocation7 + $0xb38] sm:$0xf0] }
 0x315   :  { %v6677_v30 = vld [vmem:[#allocation7 + $0xd1c] sm:$0xf]  ;;  %v5648_v34 = vor.u32 %v6613_v27, %v5645_v28  ;;  %4084 = vmatpush.bf16.msrb.mxu0 %v5392_v5 }
 0x316   :  { %v5901_v2 = vld [vmem:[#allocation7 + $0xd38] sm:$0xf0] }
 0x317   :  { %v6741_v31 = vld [vmem:[#allocation7 + $0xf1c] sm:$0xf]  ;;  %v5904_v38 = vor.u32 %v6677_v30, %v5901_v2  ;;  %4097 = vmatpush.bf16.msrb.mxu1 %v5648_v34 }
 0x318   :  { %v6157_v3 = vld [vmem:[#allocation7 + $0xf38] sm:$0xf0] }
 0x319   :  { %v6541_v41 = vld [vmem:[#allocation7 + $0x8dc] sm:$0xf]  ;;  %v6160_v39 = vor.u32 %v6741_v31, %v6157_v3  ;;  %4110 = vmatpush.bf16.msrb.mxu2 %v5904_v38  ;;  %v3858_v31 = vpop.f32.mrf.mxu2  ;;  %v3871_v3 = vpop.f32.mrf.mxu3 }
 0x31a   :  { %v5357_v37 = vld [vmem:[#allocation7 + $0x8f8] sm:$0xf0]  ;;  %v3882_v38 = vpop.f32.mrf.mxu0 }
 0x31b   :  { %v6605_v40 = vld [vmem:[#allocation7 + $0xadc] sm:$0xf]  ;;  %v5360_v7 = vor.u32 %v6541_v41, %v5357_v37  ;;  %4123 = vmatpush.bf16.msrb.mxu3 %v6160_v39  ;;  %v3895_v39 = vpop.f32.mrf.mxu1 }
 0x31c   :  { %v5613_v42 = vld [vmem:[#allocation7 + $0xaf8] sm:$0xf0] }
 0x31d   :  { %v6669_v43 = vld [vmem:[#allocation7 + $0xcdc] sm:$0xf]  ;;  %v5616_v48 = vor.u32 %v6605_v40, %v5613_v42  ;;  %4085 = vmatpush.bf16.msrb.mxu0 %v5360_v7  ;;  %v3883_v40 = vadd.f32 %v3882_v38, %v3870_v8 }
 0x31e   :  { %v5869_v44 = vld [vmem:[#allocation7 + $0xcf8] sm:$0xf0] }
 0x31f   :  { %v6733_v45 = vld [vmem:[#allocation7 + $0xedc] sm:$0xf]  ;;  %v5872_v50 = vor.u32 %v6669_v43, %v5869_v44  ;;  %4098 = vmatpush.bf16.msrb.mxu1 %v5616_v48  ;;  %v3896_v42 = vadd.f32 %v3895_v39, %v3883_v40  ;;  %v4148_v48 = vperm.slane %v7122_v11, 5 }
 0x320   :  { %v6125_v46 = vld [vmem:[#allocation7 + $0xef8] sm:$0xf0] }
 0x321   :  { %v6533_v49 = vld [vmem:[#allocation7 + $0x89c] sm:$0xf]  ;;  %v6128_v51 = vor.u32 %v6733_v45, %v6125_v46  ;;  %4111 = vmatpush.bf16.msrb.mxu2 %v5872_v50  ;;  %v3908_v43 = vpop.f32.mrf.mxu2  ;;  %v3921_v16 = vpop.f32.mrf.mxu3 }
 0x322   :  { %v5325_v29 = vld [vmem:[#allocation7 + $0x8b8] sm:$0xf0]  ;;  %v3909_v44 = vadd.f32 %v3908_v43, %v3896_v42  ;;  %v3884_v45 = vpop.f32.mrf.mxu0 }
 0x323   :  { %v6597_v52 = vld [vmem:[#allocation7 + $0xa9c] sm:$0xf]  ;;  %v5328_v62 = vor.u32 %v6533_v49, %v5325_v29  ;;  %4124 = vmatpush.bf16.msrb.mxu3 %v6128_v51  ;;  %v3897_v46 = vpop.f32.mrf.mxu1 }
 0x324   :  { %v5581_v53 = vld [vmem:[#allocation7 + $0xab8] sm:$0xf0]  ;;  %v3922_v7 = vadd.f32 %v3921_v16, %v3909_v44 }
 0x325   :  { %v6661_v36 = vld [vmem:[#allocation7 + $0xc9c] sm:$0xf]  ;;  %v5584_v63 = vor.u32 %v6597_v52, %v5581_v53  ;;  %4086 = vmatpush.bf16.msrb.mxu0 %v5328_v62 }
 0x326   :  { %v5837_v56 = vld [vmem:[#allocation7 + $0xcb8] sm:$0xf0]  ;;  %v4138_v49 = vmax.f32 %v3922_v7, 0.0 }
 0x327   :  { %v6725_v57 = vld [vmem:[#allocation7 + $0xe9c] sm:$0xf]  ;;  %v5840_v9 = vor.u32 %v6661_v36, %v5837_v56  ;;  %4099 = vmatpush.bf16.msrb.mxu1 %v5584_v63 }
 0x328   :  { %v6093_v58 = vld [vmem:[#allocation7 + $0xeb8] sm:$0xf0] }
 0x329   :  { %v6525_v6 = vld [vmem:[#allocation7 + $0x85c] sm:$0xf]  ;;  %v6096_v10 = vor.u32 %v6725_v57, %v6093_v58  ;;  %4112 = vmatpush.bf16.msrb.mxu2 %v5840_v9  ;;  %v3910_v29 = vpop.f32.mrf.mxu2 }
 0x32a   :  { %v5293_v26 = vld [vmem:[#allocation7 + $0x878] sm:$0xf0]  ;;  %v3934_v50 = vpop.f32.mrf.mxu0 }
 0x32b   :  { %v6589_v12 = vld [vmem:[#allocation7 + $0xa5c] sm:$0xf]  ;;  %v5296_v23 = vor.u32 %v6525_v6, %v5293_v26  ;;  %4125 = vmatpush.bf16.msrb.mxu3 %v6096_v10  ;;  %v3947_v51 = vpop.f32.mrf.mxu1 }
 0x32c   :  { %v5549_v15 = vld [vmem:[#allocation7 + $0xa78] sm:$0xf0] }
 0x32d   :  { %v6653_v17 = vld [vmem:[#allocation7 + $0xc5c] sm:$0xf]  ;;  %v5552_v25 = vor.u32 %v6589_v12, %v5549_v15  ;;  %4087 = vmatpush.bf16.msrb.mxu0 %v5296_v23  ;;  %v6789_v12 = vld [vmem:[#allocation10] sm:$0xff] }
 0x32e   :  { %v5805_v18 = vld [vmem:[#allocation7 + $0xc78] sm:$0xf0]  ;;  %v4149_v15 = vperm.slane %v6789_v12, 6  ;;  %v4150_v44 = vperm.slane %v6789_v12, 7 }
 0x32f   :  { %v6717_v21 = vld [vmem:[#allocation7 + $0xe5c] sm:$0xf]  ;;  %v5808_v1 = vor.u32 %v6653_v17, %v5805_v18  ;;  %4100 = vmatpush.bf16.msrb.mxu1 %v5552_v25 }
 0x330   :  { %v6061_v22 = vld [vmem:[#allocation7 + $0xe78] sm:$0xf0] }
 0x331   :  { %v6517_v47 = vld [vmem:[#allocation7 + $0x81c] sm:$0xf]  ;;  %v6064_v27 = vor.u32 %v6717_v21, %v6061_v22  ;;  %4113 = vmatpush.bf16.msrb.mxu2 %v5808_v1  ;;  %v3960_v36 = vpop.f32.mrf.mxu2 }
 0x332   :  { %v5261_v0 = vld [vmem:[#allocation7 + $0x838] sm:$0xf0]  ;;  %v3936_v56 = vpop.f32.mrf.mxu0 }
 0x333   :  { %v6581_v28 = vld [vmem:[#allocation7 + $0xa1c] sm:$0xf]  ;;  %v5264_v5 = vor.u32 %v6517_v47, %v5261_v0  ;;  %4126 = vmatpush.bf16.msrb.mxu3 %v6064_v27  ;;  %v3949_v57 = vpop.f32.mrf.mxu1 }
 0x334   :  { %v5517_v30 = vld [vmem:[#allocation7 + $0xa38] sm:$0xf0] }
 0x335   :  { %v6645_v2 = vld [vmem:[#allocation7 + $0xc1c] sm:$0xf]  ;;  %v5520_v34 = vor.u32 %v6581_v28, %v5517_v30  ;;  %4088 = vmatpush.bf16.msrb.mxu0 %v5264_v5  ;;  %v732_v30 = vperm.slane %v7148_v24, 7 }
 0x336   :  { %v5773_v33 = vld [vmem:[#allocation7 + $0xc38] sm:$0xf0] }
 0x337   :  { %v6709_v4 = vld [vmem:[#allocation7 + $0xe1c] sm:$0xf]  ;;  %v5776_v41 = vor.u32 %v6645_v2, %v5773_v33  ;;  %4101 = vmatpush.bf16.msrb.mxu1 %v5520_v34 }
 0x338   :  { %v6029_v32 = vld [vmem:[#allocation7 + $0xe38] sm:$0xf0]  ;;  %4089 = vmatmul.bf16.vlgmr.msrb.gmra.mxu0 %v7040_v13  ;;  %v4164_v13 = vmul.f32 %v4148_v48, %v4138_v49  ;;  %v6781_v49 = vld [vmem:[#allocation2] ss:$0 sm:$0xff] }
 0x339   :  { %v6032_v37 = vor.u32 %v6709_v4, %v6029_v32  ;;  %4114 = vmatpush.bf16.msrb.mxu2 %v5776_v41  ;;  %v3962_v59 = vpop.f32.mrf.mxu2 }
 0x33a   :  { %4102 = vmatmul.bf16.vlgmr.msrb.gmra.mxu1 %v7042_v14  ;;  %v3923_v14 = vpop.f32.mrf.mxu3 }
 0x33b   :  { %4127 = vmatpush.bf16.msrb.mxu3 %v6032_v37 }
 0x33c   :  { %4115 = vmatmul.bf16.vlgmr.msrb.gmra.mxu2 %v7044_v19  ;;  %v4171_v19 = vadd.f32 %v7142_v35, %v4164_v13 }
 0x33e   :  { %4128 = vmatmul.bf16.vlgmr.msrb.gmra.mxu3 %v7046_v20  ;;  %v731_v20 = vperm.slane %v7148_v24, 6 }
 0x340   :  { %v3935_v52 = vadd.f32 %v3934_v50, %v731_v20 }
 0x342   :  { %v3948_v53 = vadd.f32 %v3947_v51, %v3935_v52  ;;  %v3973_v54 = vpop.f32.mrf.mxu3 }
 0x344   :  { %v3961_v55 = vadd.f32 %v3960_v36, %v3948_v53 }
 0x346   :  { %v3974_v58 = vadd.f32 %v3973_v54, %v3961_v55 }
 0x34a   :  { %v3975_v11 = vpop.f32.mrf.mxu3 }
 0x356   :  { %v3986_v60 = vpop.f32.mrf.mxu0 }
 0x357   :  { %v3987_v62 = vadd.f32 %v3986_v60, %v3974_v58 }
 0x358   :  { %v3999_v61 = vpop.f32.mrf.mxu1 }
 0x359   :  { %v4000_v63 = vadd.f32 %v3999_v61, %v3987_v62 }
 0x35e   :  { %v3988_v8 = vpop.f32.mrf.mxu0 }
 0x360   :  { %v4012_v6 = vpop.f32.mrf.mxu2  ;;  %v4001_v9 = vpop.f32.mrf.mxu1 }
 0x361   :  { %v4013_v26 = vadd.f32 %v4012_v6, %v4000_v63 }
 0x362   :  { %v4025_v35 = vpop.f32.mrf.mxu3 }
 0x363   :  { %v4026_v10 = vadd.f32 %v4025_v35, %v4013_v26 }
 0x365   :  { %v4139_v17 = vmax.f32 %v4026_v10, 0.0 }
 0x367   :  { %v4165_v18 = vmul.f32 %v4149_v15, %v4139_v17 }
 0x368   :  { %v4014_v21 = vpop.f32.mrf.mxu2 }
 0x369   :  { %v4172_v23 = vadd.f32 %v4171_v19, %v4165_v18 }
 0x36a   :  { %v4027_v22 = vpop.f32.mrf.mxu3 }
 0x376   :  { %v4038_v25 = vpop.f32.mrf.mxu0 }
 0x377   :  { %v4039_v3 = vadd.f32 %v4038_v25, %v732_v30 }
 0x378   :  { %v4051_v47 = vpop.f32.mrf.mxu1 }
 0x379   :  { %v4052_v33 = vadd.f32 %v4051_v47, %v4039_v3 }
 0x37e   :  { %v4040_v27 = vpop.f32.mrf.mxu0 }
 0x380   :  { %v4064_v0 = vpop.f32.mrf.mxu2  ;;  %v4053_v28 = vpop.f32.mrf.mxu1 }
 0x381   :  { %v4065_v4 = vadd.f32 %v4064_v0, %v4052_v33 }
 0x382   :  { %v4077_v1 = vpop.f32.mrf.mxu3 }
 0x383   :  { %v4078_v32 = vadd.f32 %v4077_v1, %v4065_v4 }
 0x388   :  { %v4066_v2 = vpop.f32.mrf.mxu2 }
 0x38a   :  { %v4079_v31 = vpop.f32.mrf.mxu3 }
 0x3b5   :  { %v4090_v5 = vpop.f32.mrf.mxu0 }
 0x3b6   :  { %v4091_v41 = vadd.f32 %v4090_v5, %v4078_v32 }
 0x3b7   :  { %v4103_v34 = vpop.f32.mrf.mxu1 }
 0x3b8   :  { %v4104_v37 = vadd.f32 %v4103_v34, %v4091_v41 }
 0x3bd   :  { %v4092_v42 = vpop.f32.mrf.mxu0 }
 0x3bf   :  { %v4116_v38 = vpop.f32.mrf.mxu2  ;;  %v4105_v43 = vpop.f32.mrf.mxu1 }
 0x3c0   :  { %v4117_v40 = vadd.f32 %v4116_v38, %v4104_v37 }
 0x3c1   :  { %v4129_v39 = vpop.f32.mrf.mxu3 }
 0x3c2   :  { %v4130_v16 = vadd.f32 %v4129_v39, %v4117_v40 }
 0x3c4   :  { %v4140_v45 = vmax.f32 %v4130_v16, 0.0 }
 0x3c6   :  { %v4166_v46 = vmul.f32 %v4150_v44, %v4140_v45 }
 0x3c7   :  { %v4118_v24 = vpop.f32.mrf.mxu2 }
 0x3c8   :  { %v4173_v48 = vadd.f32 %v4172_v23, %v4166_v46 }
 0x3c9   :  { %v4131_v7 = vpop.f32.mrf.mxu3 }
 0x3ca   :  { %4174 = vadd.xlane.f32.xlu1 %v4173_v48 }
 0x43d   :  { %v4175_v13 = vpop.xlane.xlu1 %4174 }
 0x43e   :  { %v4180_v29 = vadd.f32 %v6781_v49, %v4175_v13 }
 0x440   :  { %v6257_v14 = vmul.f32 -1.442695, %v4180_v29 }
 0x442   :  { %6782 = vpow2.f32 %v6257_v14 }
 0x448   :  { %v6783_v19 = vpop.eup %6782 }
 0x449   :  { %v4184_v20 = vadd.f32 1.0, %v6783_v19 }
 0x44b   :  { %6784 = vrcp.f32 %v4184_v20  ;;  %v4196_v53 = vand.u32 2147483648, %v4184_v20  ;;  %v4194_v54 = vand.u32 2147483647, %v4184_v20  ;;  %vm4190_vm1 = vweird.f32 %v4184_v20 }
 0x44d   :  { %v4197_v56 = vor.u32 1.1754944e-38, %v4196_v53  ;;  %vm4195_vm4 = vcmp.eq.f32.partialorder %v4194_v54, 8.507059e+37 }
 0x451   :  { %v6785_v50 = vpop.eup %6784 }
 0x452   :  { %v4186_v51 = vmul.f32 %v6785_v50, %v4184_v20  ;;  %vm4191_vm0 = vweird.f32 %v6785_v50 }
 0x453   :  { %vm4192_vm3 = vmor %vm4190_vm1, %vm4191_vm0 }
 0x454   :  { %v4187_v52 = vsub.f32 1.0, %v4186_v51 }
 0x456   :  { %v4188_v36 = vmul.f32 %v6785_v50, %v4187_v52 }
 0x458   :  { %v4189_v55 = vadd.f32 %v6785_v50, %v4188_v36 }
 0x45a   :  { %v4193_v57 = vsel %vm4192_vm3, %v6785_v50, %v4189_v55 }
 0x45b   :  { %v4198_v58 = vsel %vm4195_vm4, %v4197_v56, %v4193_v57 }
 0x45c   :  { %4201 = vst.msk [vmem:[%s7169_s7] sm:$0xff] %vm4200_vm2, %v4198_v58 }
 0x45d   :  { %4206 = vsyncpa [#allocation4], 1 }
 0x45e   :  { %4207 = vsyncpa [#allocation6], 1 }
 0x45f   :  { %4208 = vsyncpa [#allocation9], 1 }

</bundles_post_ra>
